<compile_context>
chip_gen: v7x
topology: tpu7x:2x2x1
jax: 0.10.0
libtpu: 0.0.40
codegen_flags: <defaults>
</compile_context>

<pallas_src>
import functools

import jax
import jax.numpy as jnp
from jax.experimental import pallas as pl
from jax.experimental.pallas import tpu as pltpu


def convgru_kernel(slab_ref, w1_ref, woh_ref, b1_ref, out_ref,
                   xpatch_ref, hr_ref, hrpatch_ref,
                   *, H, W, p, Ci, Ch, OFF):
    k = 2 * p + 1
    Wp = W + 2 * p
    M = H * Wp
    C = Ci + Ch

    # ------------------------------------------------------------------
    # In-kernel im2col of the flat-padded [h|x] slab: 9 shifted sublane
    # slices (read f32, cast once at write) into lane blocks of one bf16
    # (M, kk*C) patch.
    # ------------------------------------------------------------------
    for ky in range(k):
        for kx in range(k):
            t = ky * k + kx
            s = OFF + (ky - p) * Wp + (kx - p)
            xpatch_ref[:, t * C:(t + 1) * C] = (
                slab_ref[0, s:s + M, :].astype(jnp.bfloat16))

    # ------------------------------------------------------------------
    # ONE fused MXU matmul: [update | reset | out_gate(x-part) | pad],
    # K = kk*C, N padded to a multiple of 128.  f32 accumulation + bias.
    # ------------------------------------------------------------------
    zro = jnp.dot(xpatch_ref[...], w1_ref[...],
                  preferred_element_type=jnp.float32) + b1_ref[...]

    sig = jax.nn.sigmoid(zro[:, :2 * Ch])          # one 64-lane EUP pass
    update = sig[:, :Ch]
    reset = sig[:, Ch:2 * Ch]
    o_acc = zro[:, 2 * Ch:3 * Ch]                  # out-gate x-part (+ bias)

    # f32 h at the output positions ([h|x] order -> lanes 0..Ch-1, aligned).
    h = slab_ref[0, OFF:OFF + M, :Ch]

    # Flat-padded f32 h*reset.  Halo rows are re-zeroed every grid step
    # (megacore-safe); interior positions on W-padding columns are already
    # zero because h is zero there.
    hr_ref[:OFF, :] = jnp.zeros((OFF, Ch), jnp.float32)
    hr_ref[OFF + M:, :] = jnp.zeros((OFF, Ch), jnp.float32)
    hr_ref[OFF:OFF + M, :] = h * reset

    # ------------------------------------------------------------------
    # Second in-kernel im2col (h*reset) + ONE K=kk*Ch matmul for the
    # out-gate h-contribution (replaces 9 tiny K=Ch dots).
    # ------------------------------------------------------------------
    for ky in range(k):
        for kx in range(k):
            t = ky * k + kx
            s = OFF + (ky - p) * Wp + (kx - p)
            hrpatch_ref[:, t * Ch:(t + 1) * Ch] = (
                hr_ref[s:s + M, :].astype(jnp.bfloat16))

    o_acc = o_acc + jnp.dot(hrpatch_ref[...], woh_ref[...],
                            preferred_element_type=jnp.float32)

    # NOTE: no tanh — the PyTorch module overwrites the tanh'd value with the
    # raw out-gate conv output before mixing (bug replicated intentionally).
    new_state = h * (1.0 - update) + o_acc * update        # (M, Ch) f32

    # Store only the valid W columns -> (N, H, W, Ch) output directly,
    # no post-kernel slice pass over HBM.
    for r in range(H):
        a = r * Wp + p
        out_ref[0, r, :, :] = new_state[a:a + W, :].astype(out_ref.dtype)


def convgru_cell(x, h, params):
    """x: (N, H, W, Ci), h: (N, H, W, Ch), NHWC float32 -> (N, H, W, Ch)."""
    N, H, W, Ci = x.shape
    Ch = h.shape[-1]
    k = params["k"]
    p = (k - 1) // 2
    kk = k * k
    Wp = W + 2 * p
    M = H * Wp
    C = Ci + Ch
    OFF = ((p * Wp + p + 7) // 8) * 8          # sublane-aligned zero-row halo
    L = M + 2 * OFF
    NP = params["w1"].shape[1]                 # fused-gate N (padded to 128)

    # Flat-padded stacked slab in [h | x] channel order: W padded with p zero
    # columns per side, then OFF zero rows before/after the flattened H*Wp
    # block, so every conv tap is a contiguous static sublane slice.
    stacked = jnp.concatenate([h, x], axis=-1)                        # (N,H,W,C)
    slab = jnp.pad(stacked, ((0, 0), (0, 0), (p, p), (0, 0))).reshape(N, M, C)
    slab = jnp.pad(slab, ((0, 0), (OFF, OFF), (0, 0)))                # (N,L,C)

    kernel = functools.partial(convgru_kernel, H=H, W=W, p=p,
                               Ci=Ci, Ch=Ch, OFF=OFF)

    return pl.pallas_call(
        kernel,
        out_shape=jax.ShapeDtypeStruct((N, H, W, Ch), jnp.float32),
        grid=(N,),
        in_specs=[
            pl.BlockSpec((1, L, C), lambda b: (b, 0, 0)),        # [h|x] slab f32
            pl.BlockSpec((kk * C, NP), lambda b: (0, 0)),        # fused gate wts
            pl.BlockSpec((kk * Ch, Ch), lambda b: (0, 0)),       # out-gate h wts
            pl.BlockSpec((1, NP), lambda b: (0, 0)),             # fused biases
        ],
        out_specs=pl.BlockSpec((1, H, W, Ch), lambda b: (b, 0, 0, 0)),
        scratch_shapes=[
            pltpu.VMEM((M, kk * C), jnp.bfloat16),    # im2col of [h|x]
            pltpu.VMEM((L, Ch), jnp.float32),         # flat-padded h*reset
            pltpu.VMEM((M, kk * Ch), jnp.bfloat16),   # im2col of h*reset
        ],
        compiler_params=pltpu.CompilerParams(
            dimension_semantics=("parallel",)),
    )(slab, params["w1"], params["woh"], params["b1"])


# ---------------------------------------------------------------------------
# parameter setup (deterministic, synthetic) + pure-JAX reference
# ---------------------------------------------------------------------------
def init_gate(key, cin, ch, k):
    # TODO(synk): PyTorch uses orthogonal init; replaced with a deterministic
    # scaled-normal init (forward semantics are unaffected).
    w = 0.1 * jax.random.normal(key, (k, k, cin, ch), jnp.float32)  # HWIO
    b = jnp.zeros((ch,), jnp.float32)
    return w, b


def build_params(gates, Ci, Ch, k):
    (wz, bz), (wr, br), (wo, bo) = gates       # HWIO, input channels = [x | h]
    kk = k * k
    C = Ci + Ch
    NP = ((3 * Ch + 127) // 128) * 128         # pad fused-gate N to full lanes

    def reorder(w):                            # [x|h] -> [h|x] input order
        return jnp.concatenate([w[:, :, Ci:, :], w[:, :, :Ci, :]], axis=2)

    def flat(w):                               # HWIO -> (kk*C, Ch), tap-major
        return w.reshape(kk * C, Ch)

    # Fused weight for [update | reset | out-gate(x-part)]; the out-gate's
    # h-input rows are zeroed here (that contribution uses h*reset in-kernel).
    wo_x = wo.at[:, :, Ci:, :].set(0.0)
    w1 = jnp.concatenate(
        [flat(reorder(wz)), flat(reorder(wr)), flat(reorder(wo_x))], axis=-1)
    w1 = jnp.pad(w1, ((0, 0), (0, NP - 3 * Ch))).astype(jnp.bfloat16)
    woh = wo[:, :, Ci:, :].reshape(kk * Ch, Ch).astype(jnp.bfloat16)
    b1 = jnp.pad(jnp.concatenate([bz, br, bo]), (0, NP - 3 * Ch))
    b1 = b1.reshape(1, NP).astype(jnp.float32)
    return dict(k=k, w1=w1, woh=woh, b1=b1)


def reference(x, h, gates):
    (wz, bz), (wr, br), (wo, bo) = gates

    def conv(inp, w, b):
        return jax.lax.conv_general_dilated(
            inp, w, window_strides=(1, 1), padding="SAME",
            dimension_numbers=("NHWC", "HWIO", "NHWC")) + b

    stacked = jnp.concatenate([x, h], axis=-1)
    update = jax.nn.sigmoid(conv(stacked, wz, bz))
    reset = jax.nn.sigmoid(conv(stacked, wr, br))
    out_inputs = conv(jnp.concatenate([x, h * reset], axis=-1), wo, bo)  # no tanh
    return h * (1.0 - update) + out_inputs * update


if __name__ == "__main__":
    N, Ci, Ch, H, W, K = 2, 4, 32, 16, 16, 3

    key = jax.random.PRNGKey(0)
    kx, kh, k1, k2, k3 = jax.random.split(key, 5)
    x = jax.random.normal(kx, (N, H, W, Ci), jnp.float32)   # NCHW equiv: (2,4,16,16)
    prev_state = jax.random.normal(kh, (N, H, W, Ch), jnp.float32)

    gates = [init_gate(kk_, Ci + Ch, Ch, K) for kk_ in (k1, k2, k3)]
    params = build_params(gates, Ci, Ch, K)

    out = convgru_cell(x, prev_state, params)
    out = jax.block_until_ready(out)

    ref = reference(x, prev_state, gates)
    err = float(jnp.max(jnp.abs(out - ref)))
    # Tolerance accounts for bf16 matmul operands (f32 accumulation/gating).
    assert err < 5e-2, f"max abs error too large: {err}"
    print("KERNEL_OK")
</pallas_src>

<mosaic_0001>
module attributes {stable_mosaic.version = 11 : i64} {
  func.func @convgru_kernel(%arg0: i32, %arg1: memref<1x336x36xf32, #tpu.memory_space<vmem>>, %arg2: memref<324x128xbf16, #tpu.memory_space<vmem>>, %arg3: memref<288x32xbf16, #tpu.memory_space<vmem>>, %arg4: memref<1x128xf32, #tpu.memory_space<vmem>>, %arg5: memref<1x16x16x32xf32, #tpu.memory_space<vmem>>, %arg6: memref<288x324xbf16, #tpu.memory_space<vmem>>, %arg7: memref<336x32xf32, #tpu.memory_space<vmem>>, %arg8: memref<288x288xbf16, #tpu.memory_space<vmem>>) attributes {dimension_semantics = [#tpu.dimension_semantics<parallel>], iteration_bounds = array<i64: 2>, scalar_prefetch = 0 : i64, scratch_operands = 3 : i64, tpu.core_type = #tpu.core_type<tc>, window_params = [{transform_indices = @transform_0, window_bounds = array<i64: 1, 336, 36>}, {pipeline_mode = #tpu.pipeline_mode<synchronous>, transform_indices = @transform_1, window_bounds = array<i64: 324, 128>}, {pipeline_mode = #tpu.pipeline_mode<synchronous>, transform_indices = @transform_2, window_bounds = array<i64: 288, 32>}, {pipeline_mode = #tpu.pipeline_mode<synchronous>, transform_indices = @transform_3, window_bounds = array<i64: 1, 128>}, {transform_indices = @transform_4, window_bounds = array<i64: 1, 16, 16, 32>}]} {
    %c0 = arith.constant 0 : index
    %c5 = arith.constant 5 : index
    %c0_0 = arith.constant 0 : index
    %0 = vector.load %arg1[%c0, %c5, %c0_0] : memref<1x336x36xf32, #tpu.memory_space<vmem>>, vector<1x288x36xf32>
    %1 = vector.shape_cast %0 : vector<1x288x36xf32> to vector<288x36xf32>
    %2 = arith.truncf %1 : vector<288x36xf32> to vector<288x36xbf16>
    %c0_1 = arith.constant 0 : index
    %c0_2 = arith.constant 0 : index
    %3 = vector.load %arg6[%c0_1, %c0_2] : memref<288x324xbf16, #tpu.memory_space<vmem>>, vector<288x36xbf16>
    tpu.vector_store %arg6[%c0_1, %c0_2], %2 {strides = array<i32>} : memref<288x324xbf16, #tpu.memory_space<vmem>>, vector<288x36xbf16>,
    %c0_3 = arith.constant 0 : index
    %c6 = arith.constant 6 : index
    %c0_4 = arith.constant 0 : index
    %4 = vector.load %arg1[%c0_3, %c6, %c0_4] : memref<1x336x36xf32, #tpu.memory_space<vmem>>, vector<1x288x36xf32>
    %5 = vector.shape_cast %4 : vector<1x288x36xf32> to vector<288x36xf32>
    %6 = arith.truncf %5 : vector<288x36xf32> to vector<288x36xbf16>
    %c0_5 = arith.constant 0 : index
    %c36 = arith.constant 36 : index
    %7 = vector.load %arg6[%c0_5, %c36] : memref<288x324xbf16, #tpu.memory_space<vmem>>, vector<288x36xbf16>
    tpu.vector_store %arg6[%c0_5, %c36], %6 {strides = array<i32>} : memref<288x324xbf16, #tpu.memory_space<vmem>>, vector<288x36xbf16>,
    %c0_6 = arith.constant 0 : index
    %c7 = arith.constant 7 : index
    %c0_7 = arith.constant 0 : index
    %8 = vector.load %arg1[%c0_6, %c7, %c0_7] : memref<1x336x36xf32, #tpu.memory_space<vmem>>, vector<1x288x36xf32>
    %9 = vector.shape_cast %8 : vector<1x288x36xf32> to vector<288x36xf32>
    %10 = arith.truncf %9 : vector<288x36xf32> to vector<288x36xbf16>
    %c0_8 = arith.constant 0 : index
    %c72 = arith.constant 72 : index
    %11 = vector.load %arg6[%c0_8, %c72] : memref<288x324xbf16, #tpu.memory_space<vmem>>, vector<288x36xbf16>
    tpu.vector_store %arg6[%c0_8, %c72], %10 {strides = array<i32>} : memref<288x324xbf16, #tpu.memory_space<vmem>>, vector<288x36xbf16>,
    %c0_9 = arith.constant 0 : index
    %c23 = arith.constant 23 : index
    %c0_10 = arith.constant 0 : index
    %12 = vector.load %arg1[%c0_9, %c23, %c0_10] : memref<1x336x36xf32, #tpu.memory_space<vmem>>, vector<1x288x36xf32>
    %13 = vector.shape_cast %12 : vector<1x288x36xf32> to vector<288x36xf32>
    %14 = arith.truncf %13 : vector<288x36xf32> to vector<288x36xbf16>
    %c0_11 = arith.constant 0 : index
    %c108 = arith.constant 108 : index
    %15 = vector.load %arg6[%c0_11, %c108] : memref<288x324xbf16, #tpu.memory_space<vmem>>, vector<288x36xbf16>
    tpu.vector_store %arg6[%c0_11, %c108], %14 {strides = array<i32>} : memref<288x324xbf16, #tpu.memory_space<vmem>>, vector<288x36xbf16>,
    %c0_12 = arith.constant 0 : index
    %c24 = arith.constant 24 : index
    %c0_13 = arith.constant 0 : index
    %16 = vector.load %arg1[%c0_12, %c24, %c0_13] : memref<1x336x36xf32, #tpu.memory_space<vmem>>, vector<1x288x36xf32>
    %17 = vector.shape_cast %16 : vector<1x288x36xf32> to vector<288x36xf32>
    %18 = arith.truncf %17 : vector<288x36xf32> to vector<288x36xbf16>
    %c0_14 = arith.constant 0 : index
    %c144 = arith.constant 144 : index
    %19 = vector.load %arg6[%c0_14, %c144] : memref<288x324xbf16, #tpu.memory_space<vmem>>, vector<288x36xbf16>
    tpu.vector_store %arg6[%c0_14, %c144], %18 {strides = array<i32>} : memref<288x324xbf16, #tpu.memory_space<vmem>>, vector<288x36xbf16>,
    %c0_15 = arith.constant 0 : index
    %c25 = arith.constant 25 : index
    %c0_16 = arith.constant 0 : index
    %20 = vector.load %arg1[%c0_15, %c25, %c0_16] : memref<1x336x36xf32, #tpu.memory_space<vmem>>, vector<1x288x36xf32>
    %21 = vector.shape_cast %20 : vector<1x288x36xf32> to vector<288x36xf32>
    %22 = arith.truncf %21 : vector<288x36xf32> to vector<288x36xbf16>
    %c0_17 = arith.constant 0 : index
    %c180 = arith.constant 180 : index
    %23 = vector.load %arg6[%c0_17, %c180] : memref<288x324xbf16, #tpu.memory_space<vmem>>, vector<288x36xbf16>
    tpu.vector_store %arg6[%c0_17, %c180], %22 {strides = array<i32>} : memref<288x324xbf16, #tpu.memory_space<vmem>>, vector<288x36xbf16>,
    %c0_18 = arith.constant 0 : index
    %c41 = arith.constant 41 : index
    %c0_19 = arith.constant 0 : index
    %24 = vector.load %arg1[%c0_18, %c41, %c0_19] : memref<1x336x36xf32, #tpu.memory_space<vmem>>, vector<1x288x36xf32>
    %25 = vector.shape_cast %24 : vector<1x288x36xf32> to vector<288x36xf32>
    %26 = arith.truncf %25 : vector<288x36xf32> to vector<288x36xbf16>
    %c0_20 = arith.constant 0 : index
    %c216 = arith.constant 216 : index
    %27 = vector.load %arg6[%c0_20, %c216] : memref<288x324xbf16, #tpu.memory_space<vmem>>, vector<288x36xbf16>
    tpu.vector_store %arg6[%c0_20, %c216], %26 {strides = array<i32>} : memref<288x324xbf16, #tpu.memory_space<vmem>>, vector<288x36xbf16>,
    %c0_21 = arith.constant 0 : index
    %c42 = arith.constant 42 : index
    %c0_22 = arith.constant 0 : index
    %28 = vector.load %arg1[%c0_21, %c42, %c0_22] : memref<1x336x36xf32, #tpu.memory_space<vmem>>, vector<1x288x36xf32>
    %29 = vector.shape_cast %28 : vector<1x288x36xf32> to vector<288x36xf32>
    %30 = arith.truncf %29 : vector<288x36xf32> to vector<288x36xbf16>
    %c0_23 = arith.constant 0 : index
    %c252 = arith.constant 252 : index
    %31 = vector.load %arg6[%c0_23, %c252] : memref<288x324xbf16, #tpu.memory_space<vmem>>, vector<288x36xbf16>
    tpu.vector_store %arg6[%c0_23, %c252], %30 {strides = array<i32>} : memref<288x324xbf16, #tpu.memory_space<vmem>>, vector<288x36xbf16>,
    %c0_24 = arith.constant 0 : index
    %c43 = arith.constant 43 : index
    %c0_25 = arith.constant 0 : index
    %32 = vector.load %arg1[%c0_24, %c43, %c0_25] : memref<1x336x36xf32, #tpu.memory_space<vmem>>, vector<1x288x36xf32>
    %33 = vector.shape_cast %32 : vector<1x288x36xf32> to vector<288x36xf32>
    %34 = arith.truncf %33 : vector<288x36xf32> to vector<288x36xbf16>
    %c0_26 = arith.constant 0 : index
    %c288 = arith.constant 288 : index
    %35 = vector.load %arg6[%c0_26, %c288] : memref<288x324xbf16, #tpu.memory_space<vmem>>, vector<288x36xbf16>
    tpu.vector_store %arg6[%c0_26, %c288], %34 {strides = array<i32>} : memref<288x324xbf16, #tpu.memory_space<vmem>>, vector<288x36xbf16>,
    %c0_27 = arith.constant 0 : index
    %c0_28 = arith.constant 0 : index
    %36 = vector.load %arg6[%c0_27, %c0_28] : memref<288x324xbf16, #tpu.memory_space<vmem>>, vector<288x324xbf16>
    %c0_29 = arith.constant 0 : index
    %c0_30 = arith.constant 0 : index
    %37 = vector.load %arg2[%c0_29, %c0_30] : memref<324x128xbf16, #tpu.memory_space<vmem>>, vector<324x128xbf16>
    %cst = arith.constant dense<0.000000e+00> : vector<288x128xf32>
    %38 = tpu.matmul %36, %37, %cst {dimension_numbers = #tpu.dot_dimension_numbers<[1], [0], [0], [1], [0, 0, 1, 1], [], []>} : vector<288x324xbf16>, vector<324x128xbf16>, vector<288x128xf32> -> vector<288x128xf32>
    %c0_31 = arith.constant 0 : index
    %c0_32 = arith.constant 0 : index
    %39 = vector.load %arg4[%c0_31, %c0_32] : memref<1x128xf32, #tpu.memory_space<vmem>>, vector<1x128xf32>
    %40 = vector.broadcast %39 : vector<1x128xf32> to vector<288x128xf32>
    %41 = arith.addf %38, %40 : vector<288x128xf32>
    %42 = vector.extract_strided_slice %41 {offsets = [0, 0], sizes = [288, 64], strides = [1, 1]} : vector<288x128xf32> to vector<288x64xf32>
    %43 = arith.negf %42 : vector<288x64xf32>
    %44 = math.exp %43 : vector<288x64xf32>
    %cst_33 = arith.constant 1.000000e+00 : f32
    %45 = vector.broadcast %cst_33 : f32 to vector<288x64xf32>
    %46 = arith.addf %45, %44 : vector<288x64xf32>
    %47 = arith.divf %45, %46 : vector<288x64xf32>
    %48 = vector.extract_strided_slice %47 {offsets = [0, 0], sizes = [288, 32], strides = [1, 1]} : vector<288x64xf32> to vector<288x32xf32>
    %49 = vector.extract_strided_slice %47 {offsets = [0, 32], sizes = [288, 32], strides = [1, 1]} : vector<288x64xf32> to vector<288x32xf32>
    %50 = vector.extract_strided_slice %41 {offsets = [0, 64], sizes = [288, 32], strides = [1, 1]} : vector<288x128xf32> to vector<288x32xf32>
    %c0_34 = arith.constant 0 : index
    %c24_35 = arith.constant 24 : index
    %c0_36 = arith.constant 0 : index
    %51 = vector.load %arg1[%c0_34, %c24_35, %c0_36] : memref<1x336x36xf32, #tpu.memory_space<vmem>>, vector<1x288x32xf32>
    %52 = vector.shape_cast %51 : vector<1x288x32xf32> to vector<288x32xf32>
    %cst_37 = arith.constant 0.000000e+00 : f32
    %53 = vector.broadcast %cst_37 : f32 to vector<24x32xf32>
    %c0_38 = arith.constant 0 : index
    %c0_39 = arith.constant 0 : index
    %54 = vector.load %arg7[%c0_38, %c0_39] : memref<336x32xf32, #tpu.memory_space<vmem>>, vector<24x32xf32>
    tpu.vector_store %arg7[%c0_38, %c0_39], %53 {strides = array<i32>} : memref<336x32xf32, #tpu.memory_space<vmem>>, vector<24x32xf32>,
    %cst_40 = arith.constant 0.000000e+00 : f32
    %55 = vector.broadcast %cst_40 : f32 to vector<24x32xf32>
    %c312 = arith.constant 312 : index
    %c0_41 = arith.constant 0 : index
    %56 = vector.load %arg7[%c312, %c0_41] : memref<336x32xf32, #tpu.memory_space<vmem>>, vector<24x32xf32>
    tpu.vector_store %arg7[%c312, %c0_41], %55 {strides = array<i32>} : memref<336x32xf32, #tpu.memory_space<vmem>>, vector<24x32xf32>,
    %57 = arith.mulf %52, %49 : vector<288x32xf32>
    %c24_42 = arith.constant 24 : index
    %c0_43 = arith.constant 0 : index
    %58 = vector.load %arg7[%c24_42, %c0_43] : memref<336x32xf32, #tpu.memory_space<vmem>>, vector<288x32xf32>
    tpu.vector_store %arg7[%c24_42, %c0_43], %57 {strides = array<i32>} : memref<336x32xf32, #tpu.memory_space<vmem>>, vector<288x32xf32>,
    %c5_44 = arith.constant 5 : index
    %c0_45 = arith.constant 0 : index
    %59 = vector.load %arg7[%c5_44, %c0_45] : memref<336x32xf32, #tpu.memory_space<vmem>>, vector<288x32xf32>
    %60 = arith.truncf %59 : vector<288x32xf32> to vector<288x32xbf16>
    %c0_46 = arith.constant 0 : index
    %c0_47 = arith.constant 0 : index
    %61 = vector.load %arg8[%c0_46, %c0_47] : memref<288x288xbf16, #tpu.memory_space<vmem>>, vector<288x32xbf16>
    tpu.vector_store %arg8[%c0_46, %c0_47], %60 {strides = array<i32>} : memref<288x288xbf16, #tpu.memory_space<vmem>>, vector<288x32xbf16>,
    %c6_48 = arith.constant 6 : index
    %c0_49 = arith.constant 0 : index
    %62 = vector.load %arg7[%c6_48, %c0_49] : memref<336x32xf32, #tpu.memory_space<vmem>>, vector<288x32xf32>
    %63 = arith.truncf %62 : vector<288x32xf32> to vector<288x32xbf16>
    %c0_50 = arith.constant 0 : index
    %c32 = arith.constant 32 : index
    %64 = vector.load %arg8[%c0_50, %c32] : memref<288x288xbf16, #tpu.memory_space<vmem>>, vector<288x32xbf16>
    tpu.vector_store %arg8[%c0_50, %c32], %63 {strides = array<i32>} : memref<288x288xbf16, #tpu.memory_space<vmem>>, vector<288x32xbf16>,
    %c7_51 = arith.constant 7 : index
    %c0_52 = arith.constant 0 : index
    %65 = vector.load %arg7[%c7_51, %c0_52] : memref<336x32xf32, #tpu.memory_space<vmem>>, vector<288x32xf32>
    %66 = arith.truncf %65 : vector<288x32xf32> to vector<288x32xbf16>
    %c0_53 = arith.constant 0 : index
    %c64 = arith.constant 64 : index
    %67 = vector.load %arg8[%c0_53, %c64] : memref<288x288xbf16, #tpu.memory_space<vmem>>, vector<288x32xbf16>
    tpu.vector_store %arg8[%c0_53, %c64], %66 {strides = array<i32>} : memref<288x288xbf16, #tpu.memory_space<vmem>>, vector<288x32xbf16>,
    %c23_54 = arith.constant 23 : index
    %c0_55 = arith.constant 0 : index
    %68 = vector.load %arg7[%c23_54, %c0_55] : memref<336x32xf32, #tpu.memory_space<vmem>>, vector<288x32xf32>
    %69 = arith.truncf %68 : vector<288x32xf32> to vector<288x32xbf16>
    %c0_56 = arith.constant 0 : index
    %c96 = arith.constant 96 : index
    %70 = vector.load %arg8[%c0_56, %c96] : memref<288x288xbf16, #tpu.memory_space<vmem>>, vector<288x32xbf16>
    tpu.vector_store %arg8[%c0_56, %c96], %69 {strides = array<i32>} : memref<288x288xbf16, #tpu.memory_space<vmem>>, vector<288x32xbf16>,
    %c24_57 = arith.constant 24 : index
    %c0_58 = arith.constant 0 : index
    %71 = vector.load %arg7[%c24_57, %c0_58] : memref<336x32xf32, #tpu.memory_space<vmem>>, vector<288x32xf32>
    %72 = arith.truncf %71 : vector<288x32xf32> to vector<288x32xbf16>
    %c0_59 = arith.constant 0 : index
    %c128 = arith.constant 128 : index
    %73 = vector.load %arg8[%c0_59, %c128] : memref<288x288xbf16, #tpu.memory_space<vmem>>, vector<288x32xbf16>
    tpu.vector_store %arg8[%c0_59, %c128], %72 {strides = array<i32>} : memref<288x288xbf16, #tpu.memory_space<vmem>>, vector<288x32xbf16>,
    %c25_60 = arith.constant 25 : index
    %c0_61 = arith.constant 0 : index
    %74 = vector.load %arg7[%c25_60, %c0_61] : memref<336x32xf32, #tpu.memory_space<vmem>>, vector<288x32xf32>
    %75 = arith.truncf %74 : vector<288x32xf32> to vector<288x32xbf16>
    %c0_62 = arith.constant 0 : index
    %c160 = arith.constant 160 : index
    %76 = vector.load %arg8[%c0_62, %c160] : memref<288x288xbf16, #tpu.memory_space<vmem>>, vector<288x32xbf16>
    tpu.vector_store %arg8[%c0_62, %c160], %75 {strides = array<i32>} : memref<288x288xbf16, #tpu.memory_space<vmem>>, vector<288x32xbf16>,
    %c41_63 = arith.constant 41 : index
    %c0_64 = arith.constant 0 : index
    %77 = vector.load %arg7[%c41_63, %c0_64] : memref<336x32xf32, #tpu.memory_space<vmem>>, vector<288x32xf32>
    %78 = arith.truncf %77 : vector<288x32xf32> to vector<288x32xbf16>
    %c0_65 = arith.constant 0 : index
    %c192 = arith.constant 192 : index
    %79 = vector.load %arg8[%c0_65, %c192] : memref<288x288xbf16, #tpu.memory_space<vmem>>, vector<288x32xbf16>
    tpu.vector_store %arg8[%c0_65, %c192], %78 {strides = array<i32>} : memref<288x288xbf16, #tpu.memory_space<vmem>>, vector<288x32xbf16>,
    %c42_66 = arith.constant 42 : index
    %c0_67 = arith.constant 0 : index
    %80 = vector.load %arg7[%c42_66, %c0_67] : memref<336x32xf32, #tpu.memory_space<vmem>>, vector<288x32xf32>
    %81 = arith.truncf %80 : vector<288x32xf32> to vector<288x32xbf16>
    %c0_68 = arith.constant 0 : index
    %c224 = arith.constant 224 : index
    %82 = vector.load %arg8[%c0_68, %c224] : memref<288x288xbf16, #tpu.memory_space<vmem>>, vector<288x32xbf16>
    tpu.vector_store %arg8[%c0_68, %c224], %81 {strides = array<i32>} : memref<288x288xbf16, #tpu.memory_space<vmem>>, vector<288x32xbf16>,
    %c43_69 = arith.constant 43 : index
    %c0_70 = arith.constant 0 : index
    %83 = vector.load %arg7[%c43_69, %c0_70] : memref<336x32xf32, #tpu.memory_space<vmem>>, vector<288x32xf32>
    %84 = arith.truncf %83 : vector<288x32xf32> to vector<288x32xbf16>
    %c0_71 = arith.constant 0 : index
    %c256 = arith.constant 256 : index
    %85 = vector.load %arg8[%c0_71, %c256] : memref<288x288xbf16, #tpu.memory_space<vmem>>, vector<288x32xbf16>
    tpu.vector_store %arg8[%c0_71, %c256], %84 {strides = array<i32>} : memref<288x288xbf16, #tpu.memory_space<vmem>>, vector<288x32xbf16>,
    %c0_72 = arith.constant 0 : index
    %c0_73 = arith.constant 0 : index
    %86 = vector.load %arg8[%c0_72, %c0_73] : memref<288x288xbf16, #tpu.memory_space<vmem>>, vector<288x288xbf16>
    %c0_74 = arith.constant 0 : index
    %c0_75 = arith.constant 0 : index
    %87 = vector.load %arg3[%c0_74, %c0_75] : memref<288x32xbf16, #tpu.memory_space<vmem>>, vector<288x32xbf16>
    %cst_76 = arith.constant dense<0.000000e+00> : vector<288x32xf32>
    %88 = tpu.matmul %86, %87, %cst_76 {dimension_numbers = #tpu.dot_dimension_numbers<[1], [0], [0], [1], [0, 0, 1, 1], [], []>} : vector<288x288xbf16>, vector<288x32xbf16>, vector<288x32xf32> -> vector<288x32xf32>
    %89 = arith.addf %50, %88 : vector<288x32xf32>
    %cst_77 = arith.constant 1.000000e+00 : f32
    %90 = vector.broadcast %cst_77 : f32 to vector<288x32xf32>
    %91 = arith.subf %90, %48 : vector<288x32xf32>
    %92 = arith.mulf %52, %91 : vector<288x32xf32>
    %93 = arith.mulf %89, %48 : vector<288x32xf32>
    %94 = arith.addf %92, %93 : vector<288x32xf32>
    %95 = vector.extract_strided_slice %94 {offsets = [1, 0], sizes = [16, 32], strides = [1, 1]} : vector<288x32xf32> to vector<16x32xf32>
    %c0_78 = arith.constant 0 : index
    %c0_79 = arith.constant 0 : index
    %c0_80 = arith.constant 0 : index
    %c0_81 = arith.constant 0 : index
    %96 = vector.load %arg5[%c0_78, %c0_79, %c0_80, %c0_81] : memref<1x16x16x32xf32, #tpu.memory_space<vmem>>, vector<1x1x16x32xf32>
    %97 = vector.shape_cast %96 : vector<1x1x16x32xf32> to vector<16x32xf32>
    %98 = vector.shape_cast %95 : vector<16x32xf32> to vector<1x1x16x32xf32>
    tpu.vector_store %arg5[%c0_78, %c0_79, %c0_80, %c0_81], %98 {strides = array<i32>} : memref<1x16x16x32xf32, #tpu.memory_space<vmem>>, vector<1x1x16x32xf32>,
    %99 = vector.extract_strided_slice %94 {offsets = [19, 0], sizes = [16, 32], strides = [1, 1]} : vector<288x32xf32> to vector<16x32xf32>
    %c0_82 = arith.constant 0 : index
    %c1 = arith.constant 1 : index
    %c0_83 = arith.constant 0 : index
    %c0_84 = arith.constant 0 : index
    %100 = vector.load %arg5[%c0_82, %c1, %c0_83, %c0_84] : memref<1x16x16x32xf32, #tpu.memory_space<vmem>>, vector<1x1x16x32xf32>
    %101 = vector.shape_cast %100 : vector<1x1x16x32xf32> to vector<16x32xf32>
    %102 = vector.shape_cast %99 : vector<16x32xf32> to vector<1x1x16x32xf32>
    tpu.vector_store %arg5[%c0_82, %c1, %c0_83, %c0_84], %102 {strides = array<i32>} : memref<1x16x16x32xf32, #tpu.memory_space<vmem>>, vector<1x1x16x32xf32>,
    %103 = vector.extract_strided_slice %94 {offsets = [37, 0], sizes = [16, 32], strides = [1, 1]} : vector<288x32xf32> to vector<16x32xf32>
    %c0_85 = arith.constant 0 : index
    %c2 = arith.constant 2 : index
    %c0_86 = arith.constant 0 : index
    %c0_87 = arith.constant 0 : index
    %104 = vector.load %arg5[%c0_85, %c2, %c0_86, %c0_87] : memref<1x16x16x32xf32, #tpu.memory_space<vmem>>, vector<1x1x16x32xf32>
    %105 = vector.shape_cast %104 : vector<1x1x16x32xf32> to vector<16x32xf32>
    %106 = vector.shape_cast %103 : vector<16x32xf32> to vector<1x1x16x32xf32>
    tpu.vector_store %arg5[%c0_85, %c2, %c0_86, %c0_87], %106 {strides = array<i32>} : memref<1x16x16x32xf32, #tpu.memory_space<vmem>>, vector<1x1x16x32xf32>,
    %107 = vector.extract_strided_slice %94 {offsets = [55, 0], sizes = [16, 32], strides = [1, 1]} : vector<288x32xf32> to vector<16x32xf32>
    %c0_88 = arith.constant 0 : index
    %c3 = arith.constant 3 : index
    %c0_89 = arith.constant 0 : index
    %c0_90 = arith.constant 0 : index
    %108 = vector.load %arg5[%c0_88, %c3, %c0_89, %c0_90] : memref<1x16x16x32xf32, #tpu.memory_space<vmem>>, vector<1x1x16x32xf32>
    %109 = vector.shape_cast %108 : vector<1x1x16x32xf32> to vector<16x32xf32>
    %110 = vector.shape_cast %107 : vector<16x32xf32> to vector<1x1x16x32xf32>
    tpu.vector_store %arg5[%c0_88, %c3, %c0_89, %c0_90], %110 {strides = array<i32>} : memref<1x16x16x32xf32, #tpu.memory_space<vmem>>, vector<1x1x16x32xf32>,
    %111 = vector.extract_strided_slice %94 {offsets = [73, 0], sizes = [16, 32], strides = [1, 1]} : vector<288x32xf32> to vector<16x32xf32>
    %c0_91 = arith.constant 0 : index
    %c4 = arith.constant 4 : index
    %c0_92 = arith.constant 0 : index
    %c0_93 = arith.constant 0 : index
    %112 = vector.load %arg5[%c0_91, %c4, %c0_92, %c0_93] : memref<1x16x16x32xf32, #tpu.memory_space<vmem>>, vector<1x1x16x32xf32>
    %113 = vector.shape_cast %112 : vector<1x1x16x32xf32> to vector<16x32xf32>
    %114 = vector.shape_cast %111 : vector<16x32xf32> to vector<1x1x16x32xf32>
    tpu.vector_store %arg5[%c0_91, %c4, %c0_92, %c0_93], %114 {strides = array<i32>} : memref<1x16x16x32xf32, #tpu.memory_space<vmem>>, vector<1x1x16x32xf32>,
    %115 = vector.extract_strided_slice %94 {offsets = [91, 0], sizes = [16, 32], strides = [1, 1]} : vector<288x32xf32> to vector<16x32xf32>
    %c0_94 = arith.constant 0 : index
    %c5_95 = arith.constant 5 : index
    %c0_96 = arith.constant 0 : index
    %c0_97 = arith.constant 0 : index
    %116 = vector.load %arg5[%c0_94, %c5_95, %c0_96, %c0_97] : memref<1x16x16x32xf32, #tpu.memory_space<vmem>>, vector<1x1x16x32xf32>
    %117 = vector.shape_cast %116 : vector<1x1x16x32xf32> to vector<16x32xf32>
    %118 = vector.shape_cast %115 : vector<16x32xf32> to vector<1x1x16x32xf32>
    tpu.vector_store %arg5[%c0_94, %c5_95, %c0_96, %c0_97], %118 {strides = array<i32>} : memref<1x16x16x32xf32, #tpu.memory_space<vmem>>, vector<1x1x16x32xf32>,
    %119 = vector.extract_strided_slice %94 {offsets = [109, 0], sizes = [16, 32], strides = [1, 1]} : vector<288x32xf32> to vector<16x32xf32>
    %c0_98 = arith.constant 0 : index
    %c6_99 = arith.constant 6 : index
    %c0_100 = arith.constant 0 : index
    %c0_101 = arith.constant 0 : index
    %120 = vector.load %arg5[%c0_98, %c6_99, %c0_100, %c0_101] : memref<1x16x16x32xf32, #tpu.memory_space<vmem>>, vector<1x1x16x32xf32>
    %121 = vector.shape_cast %120 : vector<1x1x16x32xf32> to vector<16x32xf32>
    %122 = vector.shape_cast %119 : vector<16x32xf32> to vector<1x1x16x32xf32>
    tpu.vector_store %arg5[%c0_98, %c6_99, %c0_100, %c0_101], %122 {strides = array<i32>} : memref<1x16x16x32xf32, #tpu.memory_space<vmem>>, vector<1x1x16x32xf32>,
    %123 = vector.extract_strided_slice %94 {offsets = [127, 0], sizes = [16, 32], strides = [1, 1]} : vector<288x32xf32> to vector<16x32xf32>
    %c0_102 = arith.constant 0 : index
    %c7_103 = arith.constant 7 : index
    %c0_104 = arith.constant 0 : index
    %c0_105 = arith.constant 0 : index
    %124 = vector.load %arg5[%c0_102, %c7_103, %c0_104, %c0_105] : memref<1x16x16x32xf32, #tpu.memory_space<vmem>>, vector<1x1x16x32xf32>
    %125 = vector.shape_cast %124 : vector<1x1x16x32xf32> to vector<16x32xf32>
    %126 = vector.shape_cast %123 : vector<16x32xf32> to vector<1x1x16x32xf32>
    tpu.vector_store %arg5[%c0_102, %c7_103, %c0_104, %c0_105], %126 {strides = array<i32>} : memref<1x16x16x32xf32, #tpu.memory_space<vmem>>, vector<1x1x16x32xf32>,
    %127 = vector.extract_strided_slice %94 {offsets = [145, 0], sizes = [16, 32], strides = [1, 1]} : vector<288x32xf32> to vector<16x32xf32>
    %c0_106 = arith.constant 0 : index
    %c8 = arith.constant 8 : index
    %c0_107 = arith.constant 0 : index
    %c0_108 = arith.constant 0 : index
    %128 = vector.load %arg5[%c0_106, %c8, %c0_107, %c0_108] : memref<1x16x16x32xf32, #tpu.memory_space<vmem>>, vector<1x1x16x32xf32>
    %129 = vector.shape_cast %128 : vector<1x1x16x32xf32> to vector<16x32xf32>
    %130 = vector.shape_cast %127 : vector<16x32xf32> to vector<1x1x16x32xf32>
    tpu.vector_store %arg5[%c0_106, %c8, %c0_107, %c0_108], %130 {strides = array<i32>} : memref<1x16x16x32xf32, #tpu.memory_space<vmem>>, vector<1x1x16x32xf32>,
    %131 = vector.extract_strided_slice %94 {offsets = [163, 0], sizes = [16, 32], strides = [1, 1]} : vector<288x32xf32> to vector<16x32xf32>
    %c0_109 = arith.constant 0 : index
    %c9 = arith.constant 9 : index
    %c0_110 = arith.constant 0 : index
    %c0_111 = arith.constant 0 : index
    %132 = vector.load %arg5[%c0_109, %c9, %c0_110, %c0_111] : memref<1x16x16x32xf32, #tpu.memory_space<vmem>>, vector<1x1x16x32xf32>
    %133 = vector.shape_cast %132 : vector<1x1x16x32xf32> to vector<16x32xf32>
    %134 = vector.shape_cast %131 : vector<16x32xf32> to vector<1x1x16x32xf32>
    tpu.vector_store %arg5[%c0_109, %c9, %c0_110, %c0_111], %134 {strides = array<i32>} : memref<1x16x16x32xf32, #tpu.memory_space<vmem>>, vector<1x1x16x32xf32>,
    %135 = vector.extract_strided_slice %94 {offsets = [181, 0], sizes = [16, 32], strides = [1, 1]} : vector<288x32xf32> to vector<16x32xf32>
    %c0_112 = arith.constant 0 : index
    %c10 = arith.constant 10 : index
    %c0_113 = arith.constant 0 : index
    %c0_114 = arith.constant 0 : index
    %136 = vector.load %arg5[%c0_112, %c10, %c0_113, %c0_114] : memref<1x16x16x32xf32, #tpu.memory_space<vmem>>, vector<1x1x16x32xf32>
    %137 = vector.shape_cast %136 : vector<1x1x16x32xf32> to vector<16x32xf32>
    %138 = vector.shape_cast %135 : vector<16x32xf32> to vector<1x1x16x32xf32>
    tpu.vector_store %arg5[%c0_112, %c10, %c0_113, %c0_114], %138 {strides = array<i32>} : memref<1x16x16x32xf32, #tpu.memory_space<vmem>>, vector<1x1x16x32xf32>,
    %139 = vector.extract_strided_slice %94 {offsets = [199, 0], sizes = [16, 32], strides = [1, 1]} : vector<288x32xf32> to vector<16x32xf32>
    %c0_115 = arith.constant 0 : index
    %c11 = arith.constant 11 : index
    %c0_116 = arith.constant 0 : index
    %c0_117 = arith.constant 0 : index
    %140 = vector.load %arg5[%c0_115, %c11, %c0_116, %c0_117] : memref<1x16x16x32xf32, #tpu.memory_space<vmem>>, vector<1x1x16x32xf32>
    %141 = vector.shape_cast %140 : vector<1x1x16x32xf32> to vector<16x32xf32>
    %142 = vector.shape_cast %139 : vector<16x32xf32> to vector<1x1x16x32xf32>
    tpu.vector_store %arg5[%c0_115, %c11, %c0_116, %c0_117], %142 {strides = array<i32>} : memref<1x16x16x32xf32, #tpu.memory_space<vmem>>, vector<1x1x16x32xf32>,
    %143 = vector.extract_strided_slice %94 {offsets = [217, 0], sizes = [16, 32], strides = [1, 1]} : vector<288x32xf32> to vector<16x32xf32>
    %c0_118 = arith.constant 0 : index
    %c12 = arith.constant 12 : index
    %c0_119 = arith.constant 0 : index
    %c0_120 = arith.constant 0 : index
    %144 = vector.load %arg5[%c0_118, %c12, %c0_119, %c0_120] : memref<1x16x16x32xf32, #tpu.memory_space<vmem>>, vector<1x1x16x32xf32>
    %145 = vector.shape_cast %144 : vector<1x1x16x32xf32> to vector<16x32xf32>
    %146 = vector.shape_cast %143 : vector<16x32xf32> to vector<1x1x16x32xf32>
    tpu.vector_store %arg5[%c0_118, %c12, %c0_119, %c0_120], %146 {strides = array<i32>} : memref<1x16x16x32xf32, #tpu.memory_space<vmem>>, vector<1x1x16x32xf32>,
    %147 = vector.extract_strided_slice %94 {offsets = [235, 0], sizes = [16, 32], strides = [1, 1]} : vector<288x32xf32> to vector<16x32xf32>
    %c0_121 = arith.constant 0 : index
    %c13 = arith.constant 13 : index
    %c0_122 = arith.constant 0 : index
    %c0_123 = arith.constant 0 : index
    %148 = vector.load %arg5[%c0_121, %c13, %c0_122, %c0_123] : memref<1x16x16x32xf32, #tpu.memory_space<vmem>>, vector<1x1x16x32xf32>
    %149 = vector.shape_cast %148 : vector<1x1x16x32xf32> to vector<16x32xf32>
    %150 = vector.shape_cast %147 : vector<16x32xf32> to vector<1x1x16x32xf32>
    tpu.vector_store %arg5[%c0_121, %c13, %c0_122, %c0_123], %150 {strides = array<i32>} : memref<1x16x16x32xf32, #tpu.memory_space<vmem>>, vector<1x1x16x32xf32>,
    %151 = vector.extract_strided_slice %94 {offsets = [253, 0], sizes = [16, 32], strides = [1, 1]} : vector<288x32xf32> to vector<16x32xf32>
    %c0_124 = arith.constant 0 : index
    %c14 = arith.constant 14 : index
    %c0_125 = arith.constant 0 : index
    %c0_126 = arith.constant 0 : index
    %152 = vector.load %arg5[%c0_124, %c14, %c0_125, %c0_126] : memref<1x16x16x32xf32, #tpu.memory_space<vmem>>, vector<1x1x16x32xf32>
    %153 = vector.shape_cast %152 : vector<1x1x16x32xf32> to vector<16x32xf32>
    %154 = vector.shape_cast %151 : vector<16x32xf32> to vector<1x1x16x32xf32>
    tpu.vector_store %arg5[%c0_124, %c14, %c0_125, %c0_126], %154 {strides = array<i32>} : memref<1x16x16x32xf32, #tpu.memory_space<vmem>>, vector<1x1x16x32xf32>,
    %155 = vector.extract_strided_slice %94 {offsets = [271, 0], sizes = [16, 32], strides = [1, 1]} : vector<288x32xf32> to vector<16x32xf32>
    %c0_127 = arith.constant 0 : index
    %c15 = arith.constant 15 : index
    %c0_128 = arith.constant 0 : index
    %c0_129 = arith.constant 0 : index
    %156 = vector.load %arg5[%c0_127, %c15, %c0_128, %c0_129] : memref<1x16x16x32xf32, #tpu.memory_space<vmem>>, vector<1x1x16x32xf32>
    %157 = vector.shape_cast %156 : vector<1x1x16x32xf32> to vector<16x32xf32>
    %158 = vector.shape_cast %155 : vector<16x32xf32> to vector<1x1x16x32xf32>
    tpu.vector_store %arg5[%c0_127, %c15, %c0_128, %c0_129], %158 {strides = array<i32>} : memref<1x16x16x32xf32, #tpu.memory_space<vmem>>, vector<1x1x16x32xf32>,
    return
  }
  func.func @transform_0(%arg0: i32) -> (i32, i32, i32) {
    %c0_i32 = arith.constant 0 : i32
    %c0_i32_0 = arith.constant 0 : i32
    %c0_i32_1 = arith.constant 0 : i32
    return %arg0, %c0_i32, %c0_i32_0 : i32, i32, i32
  }
  func.func @transform_1(%arg0: i32) -> (i32, i32) {
    %c0_i32 = arith.constant 0 : i32
    %c0_i32_0 = arith.constant 0 : i32
    %c0_i32_1 = arith.constant 0 : i32
    return %c0_i32, %c0_i32_0 : i32, i32
  }
  func.func @transform_2(%arg0: i32) -> (i32, i32) {
    %c0_i32 = arith.constant 0 : i32
    %c0_i32_0 = arith.constant 0 : i32
    %c0_i32_1 = arith.constant 0 : i32
    return %c0_i32, %c0_i32_0 : i32, i32
  }
  func.func @transform_3(%arg0: i32) -> (i32, i32) {
    %c0_i32 = arith.constant 0 : i32
    %c0_i32_0 = arith.constant 0 : i32
    %c0_i32_1 = arith.constant 0 : i32
    return %c0_i32, %c0_i32_0 : i32, i32
  }
  func.func @transform_4(%arg0: i32) -> (i32, i32, i32, i32) {
    %c0_i32 = arith.constant 0 : i32
    %c0_i32_0 = arith.constant 0 : i32
    %c0_i32_1 = arith.constant 0 : i32
    %c0_i32_2 = arith.constant 0 : i32
    return %arg0, %c0_i32, %c0_i32_0, %c0_i32_1 : i32, i32, i32, i32
  }
}

</mosaic_0001>

<bundles_post_ra>
// kernel: tpu_custom_call.1
= control target key start
LH: loop header
LB: loop body
LE: loop exit
PB: predicated region body
PF: predicated region fallthrough
CT: control target
= control target key end

     0   :  { %9 = vsyncpa [#allocation6], 0  ;;  %s7883_s0 = inlined_call_operand.vmem [shape: f32[2,336,36], index: 0, kind: input, shape index: {}]   ;;  %s7884_s1 = inlined_call_operand.vmem [shape: bf16[324,128], index: 1, kind: input, shape index: {}]   ;;  %s7885_s2 = inlined_call_operand.vmem [shape: bf16[288,32], index: 2, kind: input, shape index: {}]   ;;  %s7886_s3 = inlined_call_operand.vmem [shape: f32[1,128], index: 3, kind: input, shape index: {}]   ;;  %s7887_s4 = inlined_call_operand.hbm [shape: f32[2,16,16,32], index: 4, kind: output, shape index: {}]  }
   0x1   :  { %11 = vsyncpa [#allocation6 + $0x1], 0  ;;  %s5675_s15 = smov 0   ;;  %s5677_s16 = smov 0  }
   0x2   :  { %s5679_s17 = smov 0   ;;  %s5681_s18 = smov 0  }
   0x3 LB: > { %s5696_s19 = sadd.s32 4294967295, %s5633_s18   ;;  %s4992_s20 = sadd.s32 4294967294, %s5633_s18   ;;  %s5633_s18 = sphi %s5681_s18, %s8076_s18   ;;  %s5629_s17 = sphi %s5679_s17, %s8075_s17   ;;  %s5625_s16 = sphi %s5677_s16, %s8074_s16   ;;  %s5621_s15 = sphi %s5675_s15, %s8073_s15  }
   0x4   : > { %s5700_s21 = sadd.s32 1, %s5633_s18   ;;  %s113_s22 = sadd.s32 1, %s5629_s17 }
   0x5   : > { %s110_s23 = ssub.s32 %s5633_s18, %s5700_s21  ;;  %p123_p0 = scmp.ne.s32.totalorder %s5629_s17, %s5625_s16 }
   0x6   : > { %p111_p1 = scmp.eq.s32.totalorder %s110_s23, 0  ;;  %p124_p2 = scmp.eq.s32.totalorder %s5696_s19, 1 }
   0x7   : > { %p129_p3 = scmp.ne.s32.totalorder %s5625_s16, %s5621_s15  ;;  %p130_p4 = scmp.eq.s32.totalorder %s4992_s20, 1 }
   0x8   : > { %s5711_s24 = scalar_select %p111_p1, %s5629_s17, %s113_s22  }
   0x9   : > { %p5713_p5 = por %p124_p2, %p123_p0  ;;  %p5717_p6 = por %p130_p4, %p129_p3 }
   0xa   : > { %p4995_p7 = scmp.ge.s32.totalorder %s5633_s18, 1  ;;  %p165_p8 = scmp.lt.s32.totalorder %s5633_s18, 3 }
   0xc   : > { %p166_p9 = pnand %p4995_p7, %p165_p8 }
   0xe   : > { %169 = sbr.rel (%p166_p9) target bundleno = 1515 (0x5eb), region = 36 }
  0x15   : > { %p191_p10 = scmp.lt.s32.totalorder %s5696_s19, 1  ;;  %v5349_v0 = vld [vmem:[%s7884_s1] sm:$0xff]   ;;  %v7888_v1 = vmov 0   ;;  %v5350_v2 = vld [vmem:[%s7884_s1 + $0x8] sm:$0xff]   ;;  %v5351_v3 = vld [vmem:[%s7884_s1 + $0x10] sm:$0xff]   ;;  %s5636_s12 = smov 52  }
  0x16   : > { %1752 = vmatprep.subr.bf16.mxu0 %v7888_v1  ;;  %v5352_v15 = vld [vmem:[%s7884_s1 + $0x18] sm:$0xff]   ;;  %s5637_s20 = smov 108   ;;  %s5638_s22 = smov 36   ;;  %v5353_v22 = vld [vmem:[%s7884_s1 + $0x20] sm:$0xff]   ;;  %v5354_v46 = vld [vmem:[%s7884_s1 + $0x28] sm:$0xff]   ;;  %vm251_vm0 = vcmask 293888  }
  0x17   : > { %s192_s29 = scalar_select %p191_p10, %s5696_s19, 1  ;;  %1753 = vmatpush1.bf16.msra.mxu0 %v5349_v0  ;;  %v5355_v48 = vld [vmem:[%s7884_s1 + $0x30] sm:$0xff]   ;;  %v5356_v55 = vld [vmem:[%s7884_s1 + $0x38] sm:$0xff]   ;;  %v5357_v60 = vld [vmem:[%s7884_s1 + $0x40] sm:$0xff]   ;;  %vm1748_vm1 = vcmask 1041408   ;;  %vm688_vm2 = vcmask 130048  }
  0x18   : > { %1754 = vmatprep.subr.bf16.mxu0 %v7888_v1  ;;  %s5639_s28 = smov 16   ;;  %s5641_s30 = smov 88   ;;  %vm396_vm3 = vcmask 589088   ;;  %vm850_vm4 = vcmask 425088   ;;  %vm995_vm5 = vcmask 720288   ;;  %vm541_vm6 = vcmask 884288  }
  0x19   : > { %s5295_s6 = smul.u32 336, %s192_s29  ;;  %s5640_s29 = smov 72   ;;  %vm1140_vm7 = vcmask 1015488   ;;  %vm686_vm8 = vcmask 1048416   ;;  %vm1285_vm9 = vcmask 1048544   ;;  %vm1287_vm10 = vcmask 261120  }
  0x1a   : > { %s5642_s5 = smov 124   ;;  %s5643_s11 = smov 32   ;;  %vm1449_vm11 = vcmask 556288   ;;  %vm1693_vm12 = vcmask 556032   ;;  %vm2778_vm13 = vcmask 523520   ;;  %vm2923_vm14 = vcmask 785920  }
  0x1b   : > { %s5736_s9 = scalar_lea.vmem %s7883_s0, %s5295_s6  ;;  %1755 = vmatpush1.bf16.msra.mxu0 %v5350_v2  ;;  %vm3068_vm15 = vcmask 1048320   ;;  %s5647_s14 = smov [#allocation5]  }
  0x1c   : > { %v869_v4 = vld [vmem:[%s5736_s9 + $0x19] sm:$0xff]  ;;  %v870_v5 = vld [vmem:[%s5736_s9 + $0x21] sm:$0xff]  ;;  %1756 = vmatprep.subr.bf16.mxu0 %v7888_v1  ;;  %v271_v13 = vld [vmem:[%s5736_s9 + $0xe] sm:$0xff]  ;;  %s5575_s23 = sshll.u32 %s5647_s14, 4  ;;  %s5576_s23 = int_to_ptr.vmem [resolvable:$false] %s5575_s23 }
  0x1d   : > { %v560_v6 = vld [vmem:[%s5736_s9 + $0x17] sm:$0xff]  ;;  %v905_v7 = vpack.c.bf16 %v870_v5, %v869_v4  ;;  %v561_v8 = vld [vmem:[%s5736_s9 + $0x1f] sm:$0xff]  ;;  %v415_v17 = vld [vmem:[%s5736_s9 + $0x7] sm:$0xff]  ;;  %s5577_s27 = scalar_lea.vmem %s5576_s23, 8192 }
  0x1e   : > { %v724_v9 = vld [vmem:[%s5736_s9 + $0x18] sm:$0xff]  ;;  %v725_v10 = vld [vmem:[%s5736_s9 + $0x20] sm:$0xff]  ;;  %v5748_v11 = vpack.c.bf16 %v561_v8, %v560_v6  ;;  %v416_v18 = vld [vmem:[%s5736_s9 + $0xf] sm:$0xff] }
  0x1f   : > { %v270_v12 = vld [vmem:[%s5736_s9 + $0x6] sm:$0xff]  ;;  %941 = vrot.lane.b32.xlu1 %v905_v7, %s5636_s12  ;;  %1757 = vmatpush1.bf16.msra.mxu0 %v5351_v3  ;;  %v760_v16 = vpack.c.bf16 %v725_v10, %v724_v9  ;;  %v1015_v20 = vld [vmem:[%s5736_s9 + $0x31] sm:$0xff]  ;;  %v451_v21 = vpack.c.bf16 %v416_v18, %v415_v17  ;;  %v1016_v33 = vld [vmem:[%s5736_s9 + $0x39] sm:$0xff] }
  0x20   : > { %v306_v14 = vpack.c.bf16 %v271_v13, %v270_v12  ;;  %632 = vrot.lane.b32.xlu0 %v5748_v11, %s5637_s20  ;;  %1758 = vmatprep.subr.bf16.mxu0 %v7888_v1  ;;  %v1014_v19 = vld [vmem:[%s5736_s9 + $0x29] sm:$0xff]  ;;  %v1160_v27 = vld [vmem:[%s5736_s9 + $0x32] sm:$0xff]  ;;  %v1017_v34 = vld [vmem:[%s5736_s9 + $0x41] sm:$0xff] }
  0x21   : > { %v1050_v23 = vpack.c.bf16 %v1015_v20, %v1014_v19  ;;  %v562_v24 = vld [vmem:[%s5736_s9 + $0x27] sm:$0xff]  ;;  %v563_v25 = vld [vmem:[%s5736_s9 + $0x2f] sm:$0xff]  ;;  %v273_v36 = vld [vmem:[%s5736_s9 + $0x1e] sm:$0xff]  ;;  %v1051_v37 = vpack.c.bf16 %v1017_v34, %v1016_v33 }
  0x22   : > { %v1159_v26 = vld [vmem:[%s5736_s9 + $0x2a] sm:$0xff]  ;;  %v5774_v28 = vpack.c.bf16 %v563_v25, %v562_v24  ;;  %v272_v35 = vld [vmem:[%s5736_s9 + $0x16] sm:$0xff]  ;;  %v1162_v40 = vld [vmem:[%s5736_s9 + $0x42] sm:$0xff] }
  0x23   : > { %342 = vrot.lane.b32.xlu1 %v306_v14, %s5638_s22  ;;  %1759 = vmatpush1.bf16.msra.mxu0 %v5352_v15  ;;  %v1195_v29 = vpack.c.bf16 %v1160_v27, %v1159_v26  ;;  %v726_v30 = vld [vmem:[%s5736_s9 + $0x28] sm:$0xff]  ;;  %v727_v31 = vld [vmem:[%s5736_s9 + $0x30] sm:$0xff]  ;;  %v307_v38 = vpack.c.bf16 %v273_v36, %v272_v35  ;;  %v1161_v39 = vld [vmem:[%s5736_s9 + $0x3a] sm:$0xff] }
  0x24   : > { %796 = vrot.lane.b32.xlu0 %v760_v16, %s5639_s28  ;;  %1760 = vmatprep.subr.bf16.mxu0 %v7888_v1  ;;  %v761_v32 = vpack.c.bf16 %v727_v31, %v726_v30  ;;  %v1196_v41 = vpack.c.bf16 %v1162_v40, %v1161_v39  ;;  %v1325_v42 = vld [vmem:[%s5736_s9 + $0x3b] sm:$0xff]  ;;  %v1326_v43 = vld [vmem:[%s5736_s9 + $0x43] sm:$0xff]  ;;  %v1323_v44 = vld [vmem:[%s5736_s9 + $0x2b] sm:$0xff] }
  0x25   : > { %v1324_v45 = vld [vmem:[%s5736_s9 + $0x33] sm:$0xff]  ;;  %v1360_v47 = vpack.c.bf16 %v1326_v43, %v1325_v42  ;;  %v729_v51 = vld [vmem:[%s5736_s9 + $0x40] sm:$0xff]  ;;  %v1018_v61 = vld [vmem:[%s5736_s9 + $0x49] sm:$0xff] }
  0x26   : > { %v1359_v49 = vpack.c.bf16 %v1324_v45, %v1323_v44  ;;  %v728_v50 = vld [vmem:[%s5736_s9 + $0x38] sm:$0xff]  ;;  %v274_v57 = vld [vmem:[%s5736_s9 + $0x26] sm:$0xff]  ;;  %v275_v58 = vld [vmem:[%s5736_s9 + $0x2e] sm:$0xff] }
  0x27   : > { %487 = vrot.lane.b32.xlu1 %v451_v21, %s5640_s29  ;;  %1761 = vmatpush1.bf16.msra.mxu0 %v5353_v22  ;;  %v564_v52 = vld [vmem:[%s5736_s9 + $0x37] sm:$0xff]  ;;  %v565_v53 = vld [vmem:[%s5736_s9 + $0x3f] sm:$0xff]  ;;  %v762_v54 = vpack.c.bf16 %v729_v51, %v728_v50  ;;  %v308_v59 = vpack.c.bf16 %v275_v58, %v274_v57  ;;  %v198_v0 = vld [vmem:[%s5736_s9 + $0xd] sm:$0xff] }
  0x28   : > { %1086 = vrot.lane.b32.xlu0 %v1050_v23, %s5641_s30  ;;  %1762 = vmatprep.subr.bf16.mxu0 %v7888_v1  ;;  %v5816_v56 = vpack.c.bf16 %v565_v53, %v564_v52  ;;  %v1019_v62 = vld [vmem:[%s5736_s9 + $0x51] sm:$0xff]  ;;  %v197_v63 = vld [vmem:[%s5736_s9 + $0x5] sm:$0xff]  ;;  %v1165_v6 = vld [vmem:[%s5736_s9 + $0x5a] sm:$0xff] }
  0x29   : > { %v1163_v2 = vld [vmem:[%s5736_s9 + $0x4a] sm:$0xff]  ;;  %v233_v4 = vpack.c.bf16 %v198_v0, %v197_v63  ;;  %v5838_v5 = vpack.c.bf16 %v1019_v62, %v1018_v61  ;;  %v1166_v7 = vld [vmem:[%s5736_s9 + $0x62] sm:$0xff]  ;;  %v1164_v8 = vld [vmem:[%s5736_s9 + $0x52] sm:$0xff] }
  0x2a   : > { %v5358_v3 = vld [vmem:[%s7884_s1 + $0x48] sm:$0xff]   ;;  %v1198_v9 = vpack.c.bf16 %v1166_v7, %v1165_v6  ;;  %v5359_v12 = vld [vmem:[%s7884_s1 + $0x50] sm:$0xff]   ;;  %v1197_v13 = vpack.c.bf16 %v1164_v8, %v1163_v2  ;;  %v5364_v16 = vld [vmem:[%s7884_s1 + $0x80] sm:$0xff]  }
  0x2b   : > { %634 = vrot.lane.b32.xlu1 %v5774_v28, %s5637_s20  ;;  %1763 = vmatpush1.bf16.msra.mxu0 %v5354_v46  ;;  %252 = vst.msk [vmem:[#allocation2] sm:$0xff] %vm251_vm0, %v233_v4  ;;  %v1327_v10 = vld [vmem:[%s5736_s9 + $0x4b] sm:$0xff]  ;;  %v1330_v14 = vld [vmem:[%s5736_s9 + $0x63] sm:$0xff]  ;;  %v1328_v15 = vld [vmem:[%s5736_s9 + $0x53] sm:$0xff] }
  0x2c   : > { %1231 = vrot.lane.b32.xlu0 %v1195_v29, %s5642_s5  ;;  %1764 = vmatprep.subr.bf16.mxu0 %v7888_v1  ;;  %v730_v17 = vld [vmem:[%s5736_s9 + $0x48] sm:$0xff]  ;;  %v5360_v20 = vld [vmem:[%s7884_s1 + $0x58] sm:$0xff]   ;;  %v731_v24 = vld [vmem:[%s5736_s9 + $0x50] sm:$0xff] }
  0x2d   : > { %v566_v19 = vld [vmem:[%s5736_s9 + $0x47] sm:$0xff]  ;;  %v199_v21 = vld [vmem:[%s5736_s9 + $0x15] sm:$0xff]  ;;  %v200_v22 = vld [vmem:[%s5736_s9 + $0x1d] sm:$0xff]  ;;  %5204 = vmatprep.subr.bf16.mxu1 %v5364_v16 }
  0x2e   : > { %v234_v25 = vpack.c.bf16 %v200_v22, %v199_v21  ;;  %v567_v26 = vld [vmem:[%s5736_s9 + $0x4f] sm:$0xff]  ;;  %5205 = vmatpush3.bf16.msra.mxu1 %v5364_v16  ;;  %v5361_v30 = vld [vmem:[%s7884_s1 + $0x60] sm:$0xff]   ;;  %v5368_v40 = vld [vmem:[%s7884_s1 + $0x98] sm:$0xff]  }
  0x2f   : > { %943 = vrot.lane.b32.xlu1 %v1050_v23, %s5636_s12  ;;  %1765 = vmatpush1.bf16.msra.mxu0 %v5355_v48  ;;  %v1361_v23 = vpack.c.bf16 %v1328_v15, %v1327_v10  ;;  %v5366_v27 = vld [vmem:[%s7884_s1 + $0x88] sm:$0xff]   ;;  %v276_v29 = vld [vmem:[%s5736_s9 + $0x36] sm:$0xff]  ;;  %v5882_v31 = vpack.c.bf16 %v567_v26, %v566_v19  ;;  %v5369_v43 = vld [vmem:[%s7884_s1 + $0xa0] ss:$0 sps:$4 sm:$0x33]  }
  0x30   : > { %798 = vrot.lane.b32.xlu0 %v761_v32, %s5639_s28  ;;  %1766 = vmatprep.subr.bf16.mxu0 %v7888_v1  ;;  %253 = vst.msk [vmem:[#allocation2 + $0x18] sm:$0xff] %vm251_vm0, %v234_v25  ;;  %v277_v32 = vld [vmem:[%s5736_s9 + $0x3e] sm:$0xff]  ;;  %v5367_v33 = vld [vmem:[%s7884_s1 + $0x90] sm:$0xff]   ;;  %v5362_v35 = vld [vmem:[%s7884_s1 + $0x68] sm:$0xff]  }
  0x31   : > { %5206 = vmatprep.subr.bf16.mxu1 %v5366_v27  ;;  %v309_v34 = vpack.c.bf16 %v277_v32, %v276_v29  ;;  %v201_v36 = vld [vmem:[%s5736_s9 + $0x25] sm:$0xff]  ;;  %v5363_v42 = vld [vmem:[%s7884_s1 + $0x70] sm:$0xff]   ;;  %v732_v46 = vld [vmem:[%s5736_s9 + $0x58] sm:$0xff] }
  0x32   : > { %5207 = vmatpush3.bf16.msra.mxu1 %v5366_v27  ;;  %v1021_v39 = vld [vmem:[%s5736_s9 + $0x61] sm:$0xff]  ;;  %v568_v45 = vld [vmem:[%s5736_s9 + $0x57] sm:$0xff]  ;;  %v279_v58 = vld [vmem:[%s5736_s9 + $0x4e] sm:$0xff] }
  0x33   : > { %1088 = vrot.lane.b32.xlu1 %v1051_v37, %s5641_s30  ;;  %1767 = vmatpush1.bf16.msra.mxu0 %v5356_v55  ;;  %v569_v48 = vld [vmem:[%s5736_s9 + $0x5f] sm:$0xff]  ;;  %v1022_v62 = vld [vmem:[%s5736_s9 + $0x69] sm:$0xff]  ;;  %v1023_v63 = vld [vmem:[%s5736_s9 + $0x71] sm:$0xff] }
  0x34   : > { %344 = vrot.lane.b32.xlu0 %v307_v38, %s5638_s22  ;;  %1768 = vmatprep.subr.bf16.mxu0 %v7888_v1  ;;  %v1020_v38 = vld [vmem:[%s5736_s9 + $0x59] sm:$0xff]  ;;  %v5927_v55 = vpack.c.bf16 %v569_v48, %v568_v45  ;;  %v278_v57 = vld [vmem:[%s5736_s9 + $0x46] sm:$0xff]  ;;  %v735_v16 = vld [vmem:[%s5736_s9 + $0x70] sm:$0xff] }
  0x35   : > { %5208 = vmatprep.subr.bf16.mxu1 %v5367_v33  ;;  %v1053_v44 = vpack.c.bf16 %v1021_v39, %v1020_v38  ;;  %v204_v50 = vld [vmem:[%s5736_s9 + $0x3d] sm:$0xff]  ;;  %v1167_v4 = vld [vmem:[%s5736_s9 + $0x6a] sm:$0xff]  ;;  %v207_v10 = vld [vmem:[%s5736_s9 + $0x55] sm:$0xff] }
  0x36   : > { %5209 = vmatpush3.bf16.msra.mxu1 %v5367_v33  ;;  %v5365_v53 = vld [vmem:[%s7884_s1 + $0x78] sm:$0xff]   ;;  %v1170_v2 = vld [vmem:[%s5736_s9 + $0x82] sm:$0xff]  ;;  %v210_v27 = vld [vmem:[%s5736_s9 + $0x6d] sm:$0xff] }
  0x37   : > { %1233 = vrot.lane.b32.xlu1 %v1196_v41, %s5642_s5  ;;  %1769 = vmatpush1.bf16.msra.mxu0 %v5357_v60  ;;  %v310_v60 = vpack.c.bf16 %v279_v58, %v278_v57  ;;  %v1169_v0 = vld [vmem:[%s5736_s9 + $0x7a] sm:$0xff]  ;;  %v1334_v7 = vld [vmem:[%s5736_s9 + $0x83] sm:$0xff]  ;;  %v283_v39 = vld [vmem:[%s5736_s9 + $0x6e] sm:$0xff] }
  0x38   : > { %489 = vrot.lane.b32.xlu0 %v5748_v11, %s5640_s29  ;;  %1770 = vmatprep.subr.bf16.mxu0 %v7888_v1  ;;  %v1329_v11 = vld [vmem:[%s5736_s9 + $0x5b] sm:$0xff]  ;;  %v1200_v8 = vpack.c.bf16 %v1170_v2, %v1169_v0  ;;  %v734_v15 = vld [vmem:[%s5736_s9 + $0x68] sm:$0xff] }
  0x39   : > { %v1362_v18 = vpack.c.bf16 %v1330_v14, %v1329_v11  ;;  %5210 = vmatprep.subr.bf16.mxu1 %v5368_v40  ;;  %v1333_v6 = vld [vmem:[%s5736_s9 + $0x7b] sm:$0xff]  ;;  %v570_v19 = vld [vmem:[%s5736_s9 + $0x67] sm:$0xff] }
  0x3a   : > { %5211 = vmatpush3.bf16.msra.mxu1 %v5368_v40  ;;  %v208_v11 = vld [vmem:[%s5736_s9 + $0x5d] sm:$0xff]  ;;  %v209_v26 = vld [vmem:[%s5736_s9 + $0x65] sm:$0xff] }
  0x3b   : > { %1397 = vrot.lane.b32.xlu1 %v1360_v47, %s5643_s11  ;;  %1771 = vmatpush1.bf16.msra.mxu0 %v5358_v3  ;;  %v733_v47 = vld [vmem:[%s5736_s9 + $0x60] sm:$0xff]  ;;  %v1054_v3 = vpack.c.bf16 %v1023_v63, %v1022_v62  ;;  %v238_v14 = vpack.c.bf16 %v208_v11, %v207_v10  ;;  %v280_v21 = vld [vmem:[%s5736_s9 + $0x56] sm:$0xff] }
  0x3c   : > { %1395 = vrot.lane.b32.xlu0 %v1359_v49, %s5643_s11  ;;  %1772 = vmatprep.subr.bf16.mxu0 %v7888_v1  ;;  %v203_v49 = vld [vmem:[%s5736_s9 + $0x35] sm:$0xff]  ;;  %v764_v52 = vpack.c.bf16 %v733_v47, %v732_v46  ;;  %v281_v22 = vld [vmem:[%s5736_s9 + $0x5e] sm:$0xff]  ;;  %v282_v38 = vld [vmem:[%s5736_s9 + $0x66] sm:$0xff] }
  0x3d   : > { %v236_v51 = vpack.c.bf16 %v204_v50, %v203_v49  ;;  %5294 = vmatprep.subr.msk.bf16.mxu1 %vm1748_vm1, %v5369_v43  ;;  %257 = vst.msk [vmem:[#allocation2 + $0x78] sm:$0xff] %vm251_vm0, %v238_v14  ;;  %v311_v25 = vpack.c.bf16 %v281_v22, %v280_v21  ;;  %v1025_v29 = vld [vmem:[%s5736_s9 + $0x81] sm:$0xff]  ;;  %v736_v32 = vld [vmem:[%s5736_s9 + $0x78] sm:$0xff]  ;;  %v312_v40 = vpack.c.bf16 %v283_v39, %v282_v38  ;;  %v1171_v46 = vld [vmem:[%s5736_s9 + $0x8a] sm:$0xff] }
  0x3e   : > { %v737_v33 = vld [vmem:[%s5736_s9 + $0x80] sm:$0xff]  ;;  %v1172_v47 = vld [vmem:[%s5736_s9 + $0x92] sm:$0xff] }
  0x3f   : > { %800 = vrot.lane.b32.xlu1 %v762_v54, %s5639_s28  ;;  %1773 = vmatpush1.bf16.msra.mxu0 %v5359_v12  ;;  %v1750_v54 = vsel %vm1748_vm1, %v5369_v43, 0  ;;  %255 = vst.msk [vmem:[#allocation2 + $0x48] sm:$0xff] %vm251_vm0, %v236_v51  ;;  %v1331_v12 = vld [vmem:[%s5736_s9 + $0x6b] sm:$0xff]  ;;  %v1174_v45 = vld [vmem:[%s5736_s9 + $0xa2] sm:$0xff]  ;;  %v1201_v50 = vpack.c.bf16 %v1172_v47, %v1171_v46  ;;  %v284_v2 = vld [vmem:[%s5736_s9 + $0x76] sm:$0xff]  ;;  %vm4848_vm1 = vcmask 253952  }
  0x40   : > { %636 = vrot.lane.b32.xlu0 %v5816_v56, %s5637_s20  ;;  %1774 = vmatprep.subr.bf16.mxu0 %v7888_v1  ;;  %v1337_v49 = vld [vmem:[%s5736_s9 + $0x9b] sm:$0xff]  ;;  %v1338_v51 = vld [vmem:[%s5736_s9 + $0xa3] sm:$0xff]  ;;  %v575_v62 = vld [vmem:[%s5736_s9 + $0x8f] sm:$0xff] }
  0x41   : > { %5213 = vmatpush3.bf16.msra.mxu1 %v1750_v54  ;;  %v1335_v54 = vld [vmem:[%s5736_s9 + $0x8b] sm:$0xff]  ;;  %v1366_v58 = vpack.c.bf16 %v1338_v51, %v1337_v49  ;;  %v1028_v10 = vld [vmem:[%s5736_s9 + $0x99] sm:$0xff]  ;;  %v1029_v11 = vld [vmem:[%s5736_s9 + $0xa1] sm:$0xff] }
  0x42   : > { %3915 = vmatprep.subr.bf16.mxu1 %v7888_v1  ;;  %v1057_v14 = vpack.c.bf16 %v1029_v11, %v1028_v10  ;;  %v216_v46 = vld [vmem:[%s5736_s9 + $0x9d] sm:$0xff]  ;;  %v1340_v49 = vld [vmem:[%s5736_s9 + $0xb3] sm:$0xff] }
  0x43   : > { %346 = vrot.lane.b32.xlu1 %v308_v59, %s5638_s22  ;;  %1775 = vmatpush1.bf16.msra.mxu0 %v5360_v20  ;;  %v206_v59 = vld [vmem:[%s5736_s9 + $0x4d] sm:$0xff]  ;;  %v1032_v10 = vld [vmem:[%s5736_s9 + $0xb9] sm:$0xff]  ;;  %v1033_v11 = vld [vmem:[%s5736_s9 + $0xc1] sm:$0xff] }
  0x44   : > { %945 = vrot.lane.b32.xlu0 %v1051_v37, %s5636_s12  ;;  %1776 = vmatprep.subr.bf16.mxu0 %v7888_v1  ;;  %v202_v37 = vld [vmem:[%s5736_s9 + $0x2d] sm:$0xff] }
  0x45   : > { %v235_v41 = vpack.c.bf16 %v202_v37, %v201_v36  ;;  %v571_v20 = vld [vmem:[%s5736_s9 + $0x6f] sm:$0xff]  ;;  %v766_v36 = vpack.c.bf16 %v737_v33, %v736_v32  ;;  %v1177_v33 = vld [vmem:[%s5736_s9 + $0xba] sm:$0xff] }
  0x47   : > { %491 = vrot.lane.b32.xlu1 %v5774_v28, %s5640_s29  ;;  %v763_v28 = vpack.c.bf16 %v731_v24, %v730_v17  ;;  %1777 = vmatpush1.bf16.msra.mxu0 %v5361_v30  ;;  %254 = vst.msk [vmem:[#allocation2 + $0x30] sm:$0xff] %vm251_vm0, %v235_v41  ;;  %v1364_v17 = vpack.c.bf16 %v1334_v7, %v1333_v6  ;;  %v1026_v41 = vld [vmem:[%s5736_s9 + $0x89] sm:$0xff] }
  0x48   : > { %1090 = vrot.lane.b32.xlu0 %v5838_v5, %s5641_s30  ;;  %1778 = vmatprep.subr.bf16.mxu0 %v7888_v1  ;;  %v601_v24 = vpack.c.bf16 %v571_v20, %v570_v19  ;;  %v239_v30 = vpack.c.bf16 %v210_v27, %v209_v26  ;;  %v213_v7 = vld [vmem:[%s5736_s9 + $0x85] sm:$0xff] }
  0x49   : > { %v577_v19 = vld [vmem:[%s5736_s9 + $0x9f] sm:$0xff] }
  0x4a   : > { %258 = vst.msk [vmem:[#allocation2 + $0x90] sm:$0xff] %vm251_vm0, %v239_v30  ;;  %v1031_v30 = vld [vmem:[%s5736_s9 + $0xb1] sm:$0xff] }
  0x4b   : > { %1237 = vrot.lane.b32.xlu1 %v1198_v9, %s5642_s5  ;;  %1779 = vmatpush1.bf16.msra.mxu0 %v5362_v35  ;;  %v573_v35 = vld [vmem:[%s5736_s9 + $0x7f] sm:$0xff] }
  0x4c   : > { %1235 = vrot.lane.b32.xlu0 %v1197_v13, %s5642_s5  ;;  %1780 = vmatprep.subr.bf16.mxu0 %v7888_v1  ;;  %v1332_v13 = vld [vmem:[%s5736_s9 + $0x73] sm:$0xff] }
  0x4f   : > { %1401 = vrot.lane.b32.xlu1 %v1362_v18, %s5643_s11  ;;  %1781 = vmatpush1.bf16.msra.mxu0 %v5363_v42  ;;  %v1363_v18 = vpack.c.bf16 %v1332_v13, %v1331_v12  ;;  %v1027_v42 = vld [vmem:[%s5736_s9 + $0x91] sm:$0xff] }
  0x50   : > { %1399 = vrot.lane.b32.xlu0 %v1361_v23, %s5643_s11  ;;  %1782 = vmatprep.subr.bf16.mxu0 %v7888_v1  ;;  %v765_v23 = vpack.c.bf16 %v735_v16, %v734_v15  ;;  %v1056_v43 = vpack.c.bf16 %v1027_v42, %v1026_v41  ;;  %v740_v15 = vld [vmem:[%s5736_s9 + $0x98] sm:$0xff]  ;;  %v741_v16 = vld [vmem:[%s5736_s9 + $0xa0] sm:$0xff] }
  0x51   : > { %v768_v21 = vpack.c.bf16 %v741_v16, %v740_v15  ;;  %v1341_v42 = vld [vmem:[%s5736_s9 + $0xbb] sm:$0xff]  ;;  %v1059_v15 = vpack.c.bf16 %v1033_v11, %v1032_v10 }
  0x52   : > { %v744_v16 = vld [vmem:[%s5736_s9 + $0xb8] sm:$0xff]  ;;  %v1037_v11 = vld [vmem:[%s5736_s9 + $0xe1] sm:$0xff] }
  0x53   : > { %802 = vrot.lane.b32.xlu1 %v763_v28, %s5639_s28  ;;  %1783 = vmatpush1.bf16.msra.mxu0 %v5365_v53  ;;  %v1024_v28 = vld [vmem:[%s5736_s9 + $0x79] sm:$0xff] }
  0x54   : > { %638 = vrot.lane.b32.xlu0 %v5882_v31, %s5637_s20  ;;  %v212_v53 = vld [vmem:[%s5736_s9 + $0x7d] sm:$0xff] }
  0x55   : > { %v1036_v10 = vld [vmem:[%s5736_s9 + $0xd9] sm:$0xff] }
  0x57   : > { %348 = vrot.lane.b32.xlu1 %v309_v34, %s5638_s22  ;;  %v572_v34 = vld [vmem:[%s5736_s9 + $0x77] sm:$0xff] }
  0x58   : > { %947 = vrot.lane.b32.xlu0 %v5838_v5, %s5636_s12  ;;  %v1168_v5 = vld [vmem:[%s5736_s9 + $0x72] sm:$0xff]  ;;  %v5985_v37 = vpack.c.bf16 %v573_v35, %v572_v34  ;;  %v1178_v34 = vld [vmem:[%s5736_s9 + $0xc2] sm:$0xff] }
  0x59   : > { %v1199_v9 = vpack.c.bf16 %v1168_v5, %v1167_v4  ;;  %v1204_v41 = vpack.c.bf16 %v1178_v34, %v1177_v33  ;;  %v1181_v34 = vld [vmem:[%s5736_s9 + $0xda] sm:$0xff] }
  0x5b   : > { %493 = vrot.lane.b32.xlu1 %v5816_v56, %s5640_s29  ;;  %v205_v56 = vld [vmem:[%s5736_s9 + $0x45] sm:$0xff] }
  0x5c   : > { %1092 = vrot.lane.b32.xlu0 %v1053_v44, %s5641_s30  ;;  %v237_v61 = vpack.c.bf16 %v206_v59, %v205_v56  ;;  %v738_v59 = vld [vmem:[%s5736_s9 + $0x88] sm:$0xff] }
  0x5e   : > { %256 = vst.msk [vmem:[#allocation2 + $0x60] sm:$0xff] %vm251_vm0, %v237_v61  ;;  %v574_v61 = vld [vmem:[%s5736_s9 + $0x87] sm:$0xff] }
  0x5f   : > { %804 = vrot.lane.b32.xlu1 %v764_v52, %s5639_s28  ;;  %v211_v52 = vld [vmem:[%s5736_s9 + $0x75] sm:$0xff]  ;;  %v6017_v0 = vpack.c.bf16 %v575_v62, %v574_v61 }
  0x60   : > { %640 = vrot.lane.b32.xlu0 %v5927_v55, %s5637_s20  ;;  %v240_v57 = vpack.c.bf16 %v212_v53, %v211_v52  ;;  %v288_v62 = vld [vmem:[%s5736_s9 + $0x96] sm:$0xff] }
  0x62   : > { %259 = vst.msk [vmem:[#allocation2 + $0xa8] sm:$0xff] %vm251_vm0, %v240_v57 }
  0x63   : > { %350 = vrot.lane.b32.xlu1 %v310_v60, %s5638_s22  ;;  %v739_v60 = vld [vmem:[%s5736_s9 + $0x90] sm:$0xff] }
  0x64   : > { %949 = vrot.lane.b32.xlu0 %v1053_v44, %s5636_s12  ;;  %v1173_v44 = vld [vmem:[%s5736_s9 + $0x9a] sm:$0xff]  ;;  %v767_v63 = vpack.c.bf16 %v739_v60, %v738_v59 }
  0x65   : > { %v1202_v48 = vpack.c.bf16 %v1174_v45, %v1173_v44  ;;  %v1342_v44 = vld [vmem:[%s5736_s9 + $0xc3] sm:$0xff]  ;;  %v215_v45 = vld [vmem:[%s5736_s9 + $0x95] sm:$0xff] }
  0x66   : > { %v1368_v52 = vpack.c.bf16 %v1342_v44, %v1341_v42 }
  0x67   : > { %495 = vrot.lane.b32.xlu1 %v5882_v31, %s5640_s29  ;;  %v1055_v31 = vpack.c.bf16 %v1025_v29, %v1024_v28  ;;  %v1030_v29 = vld [vmem:[%s5736_s9 + $0xa9] sm:$0xff] }
  0x68   : > { %1094 = vrot.lane.b32.xlu0 %v1054_v3, %s5641_s30  ;;  %v6061_v32 = vpack.c.bf16 %v1031_v30, %v1030_v29  ;;  %v1034_v30 = vld [vmem:[%s5736_s9 + $0xc9] sm:$0xff] }
  0x6b   : > { %1241 = vrot.lane.b32.xlu1 %v1200_v8, %s5642_s5  ;;  %v214_v8 = vld [vmem:[%s5736_s9 + $0x8d] sm:$0xff] }
  0x6c   : > { %1239 = vrot.lane.b32.xlu0 %v1199_v9, %s5642_s5  ;;  %v241_v12 = vpack.c.bf16 %v214_v8, %v213_v7  ;;  %v218_v7 = vld [vmem:[%s5736_s9 + $0xad] sm:$0xff] }
  0x6e   : > { %260 = vst.msk [vmem:[#allocation2 + $0xc0] sm:$0xff] %vm251_vm0, %v241_v12 }
  0x6f   : > { %1405 = vrot.lane.b32.xlu1 %v1364_v17, %s5643_s11 }
  0x70   : > { %1403 = vrot.lane.b32.xlu0 %v1363_v18, %s5643_s11  ;;  %v576_v18 = vld [vmem:[%s5736_s9 + $0x97] sm:$0xff] }
  0x71   : > { %v6045_v22 = vpack.c.bf16 %v577_v19, %v576_v18  ;;  %v580_v19 = vld [vmem:[%s5736_s9 + $0xb7] sm:$0xff] }
  0x73   : > { %806 = vrot.lane.b32.xlu1 %v765_v23, %s5639_s28  ;;  %v286_v23 = vld [vmem:[%s5736_s9 + $0x86] sm:$0xff] }
  0x74   : > { %642 = vrot.lane.b32.xlu0 %v601_v24, %s5637_s20 }
  0x77   : > { %352 = vrot.lane.b32.xlu1 %v311_v25, %s5638_s22 }
  0x78   : > { %951 = vrot.lane.b32.xlu0 %v1054_v3, %s5636_s12  ;;  %v285_v3 = vld [vmem:[%s5736_s9 + $0x7e] sm:$0xff] }
  0x79   : > { %v313_v6 = vpack.c.bf16 %v285_v3, %v284_v2 }
  0x7b   : > { %497 = vrot.lane.b32.xlu1 %v5927_v55, %s5640_s29  ;;  %v1336_v55 = vld [vmem:[%s5736_s9 + $0x93] sm:$0xff] }
  0x7c   : > { %1096 = vrot.lane.b32.xlu0 %v1055_v31, %s5641_s30  ;;  %v1365_v56 = vpack.c.bf16 %v1336_v55, %v1335_v54  ;;  %v742_v54 = vld [vmem:[%s5736_s9 + $0xa8] sm:$0xff]  ;;  %v743_v55 = vld [vmem:[%s5736_s9 + $0xb0] sm:$0xff] }
  0x7d   : > { %v769_v60 = vpack.c.bf16 %v743_v55, %v742_v54 }
  0x7f   : > { %808 = vrot.lane.b32.xlu1 %v766_v36, %s5639_s28  ;;  %v1175_v36 = vld [vmem:[%s5736_s9 + $0xaa] sm:$0xff] }
  0x80   : > { %644 = vrot.lane.b32.xlu0 %v5985_v37, %s5637_s20 }
  0x83   : > { %354 = vrot.lane.b32.xlu1 %v312_v40, %s5638_s22 }
  0x84   : > { %953 = vrot.lane.b32.xlu0 %v1055_v31, %s5636_s12 }
  0x87   : > { %499 = vrot.lane.b32.xlu1 %v601_v24, %s5640_s29  ;;  %v287_v24 = vld [vmem:[%s5736_s9 + $0x8e] sm:$0xff] }
  0x88   : > { %1098 = vrot.lane.b32.xlu0 %v1056_v43, %s5641_s30  ;;  %v314_v27 = vpack.c.bf16 %v287_v24, %v286_v23 }
  0x8b   : > { %1245 = vrot.lane.b32.xlu1 %v1202_v48, %s5642_s5  ;;  %v1339_v48 = vld [vmem:[%s5736_s9 + $0xab] sm:$0xff] }
  0x8c   : > { %1243 = vrot.lane.b32.xlu0 %v1201_v50, %s5642_s5  ;;  %v242_v50 = vpack.c.bf16 %v216_v46, %v215_v45  ;;  %v1367_v53 = vpack.c.bf16 %v1340_v49, %v1339_v48  ;;  %v1346_v45 = vld [vmem:[%s5736_s9 + $0xe3] sm:$0xff]  ;;  %v219_v46 = vld [vmem:[%s5736_s9 + $0xb5] sm:$0xff] }
  0x8e   : > { %261 = vst.msk [vmem:[#allocation2 + $0xd8] sm:$0xff] %vm251_vm0, %v242_v50  ;;  %v1343_v50 = vld [vmem:[%s5736_s9 + $0xcb] sm:$0xff] }
  0x8f   : > { %1409 = vrot.lane.b32.xlu1 %v1366_v58, %s5643_s11  ;;  %v578_v58 = vld [vmem:[%s5736_s9 + $0xa7] sm:$0xff] }
  0x90   : > { %1407 = vrot.lane.b32.xlu0 %v1365_v56, %s5643_s11  ;;  %v579_v56 = vld [vmem:[%s5736_s9 + $0xaf] sm:$0xff] }
  0x91   : > { %v942_v4 = vpop.permute.xlu1 %941  ;;  %v6094_v61 = vpack.c.bf16 %v579_v56, %v578_v58  ;;  %v746_v58 = vld [vmem:[%s5736_s9 + $0xc8] sm:$0xff]  ;;  %v747_v56 = vld [vmem:[%s5736_s9 + $0xd0] sm:$0xff] }
  0x92   : > { %v633_v5 = vpop.permute.xlu0 %632 }
  0x93   : > { %689 = vst.msk [vmem:[#allocation2 + $0x8] sm:$0xff] %vm688_vm2, %v633_v5  ;;  %810 = vrot.lane.b32.xlu1 %v767_v63, %s5639_s28  ;;  %v289_v63 = vld [vmem:[%s5736_s9 + $0x9e] sm:$0xff] }
  0x94   : > { %646 = vrot.lane.b32.xlu0 %v6017_v0, %s5637_s20 }
  0x95   : > { %v343_v9 = vpop.permute.xlu1 %342 }
  0x96   : > { %v797_v13 = vpop.permute.xlu0 %796  ;;  %397 = vst.msk [vmem:[#allocation2] sm:$0xff] %vm396_vm3, %v343_v9 }
  0x97   : > { %851 = vst.msk [vmem:[#allocation2 + $0x8] sm:$0xff] %vm850_vm4, %v797_v13  ;;  %356 = vrot.lane.b32.xlu1 %v313_v6, %s5638_s22  ;;  %v217_v6 = vld [vmem:[%s5736_s9 + $0xa5] sm:$0xff] }
  0x98   : > { %955 = vrot.lane.b32.xlu0 %v1056_v43, %s5636_s12  ;;  %996 = vst.msk [vmem:[#allocation2 + $0x8] sm:$0xff] %vm995_vm5, %v942_v4  ;;  %v243_v12 = vpack.c.bf16 %v218_v7, %v217_v6  ;;  %v221_v7 = vld [vmem:[%s5736_s9 + $0xc5] sm:$0xff] }
  0x99   : > { %v488_v17 = vpop.permute.xlu1 %487 }
  0x9a   : > { %v1087_v20 = vpop.permute.xlu0 %1086  ;;  %542 = vst.msk [vmem:[#allocation2] sm:$0xff] %vm541_vm6, %v488_v17  ;;  %v745_v17 = vld [vmem:[%s5736_s9 + $0xc0] sm:$0xff] }
  0x9b   : > { %1141 = vst.msk [vmem:[#allocation2 + $0x8] sm:$0xff] %vm1140_vm7, %v1087_v20  ;;  %501 = vrot.lane.b32.xlu1 %v5985_v37, %s5640_s29  ;;  %v1176_v37 = vld [vmem:[%s5736_s9 + $0xb2] sm:$0xff]  ;;  %v581_v20 = vld [vmem:[%s5736_s9 + $0xbf] sm:$0xff]  ;;  %v770_v23 = vpack.c.bf16 %v745_v17, %v744_v16  ;;  %v1061_v16 = vpack.c.bf16 %v1037_v11, %v1036_v10 }
  0x9c   : > { %687 = vst.msk [vmem:[#allocation2] sm:$0xff] %vm686_vm8, %v633_v5  ;;  %1100 = vrot.lane.b32.xlu0 %v1057_v14, %s5641_s30  ;;  %v1203_v43 = vpack.c.bf16 %v1176_v37, %v1175_v36  ;;  %v315_v5 = vpack.c.bf16 %v289_v63, %v288_v62  ;;  %v6125_v24 = vpack.c.bf16 %v581_v20, %v580_v19  ;;  %v1179_v37 = vld [vmem:[%s5736_s9 + $0xca] sm:$0xff]  ;;  %v748_v17 = vld [vmem:[%s5736_s9 + $0xd8] sm:$0xff] }
  0x9d   : > { %v635_v25 = vpop.permute.xlu1 %634  ;;  %262 = vst.msk [vmem:[#allocation2 + $0xf0] sm:$0xff] %vm251_vm0, %v243_v12  ;;  %v771_v63 = vpack.c.bf16 %v747_v56, %v746_v58  ;;  %v584_v20 = vld [vmem:[%s5736_s9 + $0xd7] sm:$0xff]  ;;  %v750_v56 = vld [vmem:[%s5736_s9 + $0xe8] sm:$0xff] }
  0x9e   : > { %v1232_v26 = vpop.permute.xlu0 %1231  ;;  %691 = vst.msk [vmem:[#allocation2 + $0x20] sm:$0xff] %vm688_vm2, %v635_v25  ;;  %v1040_v11 = vld [vmem:[%s5736_s9 + $0xf9] sm:$0xff] }
  0x9f   : > { %1286 = vst.msk [vmem:[#allocation2 + $0x8] sm:$0xff] %vm1285_vm9, %v1232_v26  ;;  %812 = vrot.lane.b32.xlu1 %v768_v21, %s5639_s28 }
  0xa0   : > { %1288 = vst.msk [vmem:[#allocation2 + $0x10] sm:$0xff] %vm1287_vm10, %v1232_v26  ;;  %648 = vrot.lane.b32.xlu0 %v6045_v22, %s5637_s20  ;;  %v291_v26 = vld [vmem:[%s5736_s9 + $0xae] sm:$0xff] }
  0xa1   : > { %v944_v28 = vpop.permute.xlu1 %943 }
  0xa2   : > { %v799_v31 = vpop.permute.xlu0 %798 }
  0xa3   : > { %852 = vst.msk [vmem:[#allocation2 + $0x20] sm:$0xff] %vm850_vm4, %v799_v31  ;;  %358 = vrot.lane.b32.xlu1 %v314_v27, %s5638_s22  ;;  %v1468_v40 = vld [vmem:[#allocation2] sm:$0xff]  ;;  %v1035_v31 = vld [vmem:[%s5736_s9 + $0xd1] sm:$0xff] }
  0xa4   : > { %997 = vst.msk [vmem:[#allocation2 + $0x20] sm:$0xff] %vm995_vm5, %v944_v28  ;;  %957 = vrot.lane.b32.xlu0 %v1057_v14, %s5636_s12  ;;  %v6144_v33 = vpack.c.bf16 %v1035_v31, %v1034_v30  ;;  %v1038_v31 = vld [vmem:[%s5736_s9 + $0xe9] sm:$0xff] }
  0xa5   : > { %v1089_v35 = vpop.permute.xlu1 %1088 }
  0xa6   : > { %v345_v38 = vpop.permute.xlu0 %344  ;;  %1142 = vst.msk [vmem:[#allocation2 + $0x20] sm:$0xff] %vm1140_vm7, %v1089_v35  ;;  %v1469_v39 = vld [vmem:[#allocation2 + $0x8] sm:$0xff] }
  0xa7   : > { %398 = vst.msk [vmem:[#allocation2 + $0x18] sm:$0xff] %vm396_vm3, %v345_v38  ;;  %1784 = vmatprep.mubr.bf16.mxu0 %v1469_v39  ;;  %503 = vrot.lane.b32.xlu1 %v6017_v0, %s5640_s29  ;;  %v1182_v35 = vld [vmem:[%s5736_s9 + $0xe2] sm:$0xff]  ;;  %v1180_v38 = vld [vmem:[%s5736_s9 + $0xd2] sm:$0xff] }
  0xa8   : > { %1102 = vrot.lane.b32.xlu0 %v6061_v32, %s5641_s30  ;;  %1785 = vmatmul.mubr.bf16.vlgmr.msra.gmra.mrb[0].mxu0 %v1468_v40  ;;  %v1206_v42 = vpack.c.bf16 %v1182_v35, %v1181_v34  ;;  %v1205_v44 = vpack.c.bf16 %v1180_v38, %v1179_v37  ;;  %v1185_v35 = vld [vmem:[%s5736_s9 + $0xfa] sm:$0xff]  ;;  %v1183_v38 = vld [vmem:[%s5736_s9 + $0xea] sm:$0xff] }
  0xa9   : > { %v1234_v47 = vpop.permute.xlu1 %1233 }
  0xaa   : > { %v490_v51 = vpop.permute.xlu0 %489  ;;  %1289 = vst.msk [vmem:[#allocation2 + $0x20] sm:$0xff] %vm1285_vm9, %v1234_v47 }
  0xab   : > { %1290 = vst.msk [vmem:[#allocation2 + $0x28] sm:$0xff] %vm1287_vm10, %v1234_v47  ;;  %1249 = vrot.lane.b32.xlu1 %v1204_v41, %s5642_s5  ;;  %v220_v47 = vld [vmem:[%s5736_s9 + $0xbd] sm:$0xff] }
  0xac   : > { %543 = vst.msk [vmem:[#allocation2 + $0x18] sm:$0xff] %vm541_vm6, %v490_v51  ;;  %1247 = vrot.lane.b32.xlu0 %v1203_v43, %s5642_s5  ;;  %v1345_v43 = vld [vmem:[%s5736_s9 + $0xdb] sm:$0xff]  ;;  %v1344_v51 = vld [vmem:[%s5736_s9 + $0xd3] sm:$0xff] }
  0xad   : > { %690 = vst.msk [vmem:[#allocation2 + $0x18] sm:$0xff] %vm686_vm8, %v635_v25  ;;  %v1398_v57 = vpop.permute.xlu1 %1397  ;;  %v290_v25 = vld [vmem:[%s5736_s9 + $0xa6] sm:$0xff]  ;;  %v1370_v55 = vpack.c.bf16 %v1346_v45, %v1345_v43 }
  0xae   : > { %v1396_v59 = vpop.permute.xlu0 %1395  ;;  %1451 = vst.msk [vmem:[#allocation2 + $0x28] sm:$0xff] %vm1449_vm11, %v1398_v57  ;;  %v1369_v57 = vpack.c.bf16 %v1344_v51, %v1343_v50  ;;  %v1347_v51 = vld [vmem:[%s5736_s9 + $0xeb] sm:$0xff] }
  0xaf   : > { %1450 = vst.msk [vmem:[#allocation2 + $0x10] sm:$0xff] %vm1449_vm11, %v1396_v59  ;;  %1413 = vrot.lane.b32.xlu1 %v1368_v52, %s5643_s11  ;;  %v244_v52 = vpack.c.bf16 %v220_v47, %v219_v46  ;;  %v1350_v46 = vld [vmem:[%s5736_s9 + $0x103] sm:$0xff]  ;;  %v223_v47 = vld [vmem:[%s5736_s9 + $0xd5] sm:$0xff] }
  0xb0   : > { %1411 = vrot.lane.b32.xlu0 %v1367_v53, %s5643_s11 }
  0xb1   : > { %v801_v0 = vpop.permute.xlu1 %800  ;;  %v1472_v2 = vld [vmem:[#allocation2 + $0x20] sm:$0xff]  ;;  %263 = vst.msk [vmem:[#allocation2 + $0x108] sm:$0xff] %vm251_vm0, %v244_v52  ;;  %v1348_v52 = vld [vmem:[%s5736_s9 + $0xf3] sm:$0xff] }
  0xb2   : > { %v637_v3 = vpop.permute.xlu0 %636  ;;  %1792 = vmatprep.mubr.bf16.mxu0 %v1472_v2  ;;  %v292_v2 = vld [vmem:[%s5736_s9 + $0xb6] sm:$0xff]  ;;  %v1371_v58 = vpack.c.bf16 %v1348_v52, %v1347_v51  ;;  %v1351_v52 = vld [vmem:[%s5736_s9 + $0x10b] sm:$0xff] }
  0xb3   : > { %693 = vst.msk [vmem:[#allocation2 + $0x38] sm:$0xff] %vm688_vm2, %v637_v3  ;;  %814 = vrot.lane.b32.xlu1 %v769_v60, %s5639_s28  ;;  %v582_v60 = vld [vmem:[%s5736_s9 + $0xc7] sm:$0xff] }
  0xb4   : > { %v1471_v4 = vld [vmem:[#allocation2 + $0x18] sm:$0xff]  ;;  %853 = vst.msk [vmem:[#allocation2 + $0x38] sm:$0xff] %vm850_vm4, %v801_v0  ;;  %650 = vrot.lane.b32.xlu0 %v6094_v61, %s5637_s20 }
  0xb5   : > { %1793 = vmatmul.mubr.bf16.gmra.mrb[4].mxu0 %v1471_v4  ;;  %v347_v8 = vpop.permute.xlu1 %346  ;;  %v1473_v9 = vld [vmem:[#allocation2 + $0x28] sm:$0xff] }
  0xb6   : > { %v946_v13 = vpop.permute.xlu0 %945  ;;  %399 = vst.msk [vmem:[#allocation2 + $0x30] sm:$0xff] %vm396_vm3, %v347_v8  ;;  %v1470_v14 = vld [vmem:[#allocation2 + $0x10] sm:$0xff] }
  0xb7   : > { %998 = vst.msk [vmem:[#allocation2 + $0x38] sm:$0xff] %vm995_vm5, %v946_v13  ;;  %5214 = vmatprep.mubr.msk.bf16.mxu1 %vm1693_vm12, %v1470_v14  ;;  %360 = vrot.lane.b32.xlu1 %v315_v5, %s5638_s22  ;;  %v222_v8 = vld [vmem:[%s5736_s9 + $0xcd] sm:$0xff] }
  0xb8   : > { %959 = vrot.lane.b32.xlu0 %v6061_v32, %s5636_s12  ;;  %5215 = vmatmul.mubr.msk.bf16.vlgmr.msra.gmra.mrb[0].mxu1 %vm1693_vm12, %v1473_v9  ;;  %v245_v12 = vpack.c.bf16 %v222_v8, %v221_v7  ;;  %v225_v8 = vld [vmem:[%s5736_s9 + $0xe5] sm:$0xff] }
  0xb9   : > { %v492_v18 = vpop.permute.xlu1 %491 }
  0xba   : > { %v1091_v21 = vpop.permute.xlu0 %1090  ;;  %544 = vst.msk [vmem:[#allocation2 + $0x30] sm:$0xff] %vm541_vm6, %v492_v18  ;;  %v749_v18 = vld [vmem:[%s5736_s9 + $0xe0] sm:$0xff] }
  0xbb   : > { %1143 = vst.msk [vmem:[#allocation2 + $0x38] sm:$0xff] %vm1140_vm7, %v1091_v21  ;;  %505 = vrot.lane.b32.xlu1 %v6045_v22, %s5640_s29  ;;  %v316_v22 = vpack.c.bf16 %v291_v26, %v290_v25  ;;  %v585_v21 = vld [vmem:[%s5736_s9 + $0xdf] sm:$0xff]  ;;  %v772_v25 = vpack.c.bf16 %v749_v18, %v748_v17 }
  0xbc   : > { %692 = vst.msk [vmem:[#allocation2 + $0x30] sm:$0xff] %vm686_vm8, %v637_v3  ;;  %1104 = vrot.lane.b32.xlu0 %v1059_v15, %s5641_s30  ;;  %v293_v3 = vld [vmem:[%s5736_s9 + $0xbe] sm:$0xff]  ;;  %v6209_v26 = vpack.c.bf16 %v585_v21, %v584_v20 }
  0xbd   : > { %v6129_v27 = vpop.permute.xlu1 %1237  ;;  %v317_v6 = vpack.c.bf16 %v293_v3, %v292_v2  ;;  %264 = vst.msk [vmem:[#allocation2 + $0x120] sm:$0xff] %vm251_vm0, %v245_v12  ;;  %v296_v3 = vld [vmem:[%s5736_s9 + $0xd6] sm:$0xff]  ;;  %v1041_v12 = vld [vmem:[%s5736_s9 + $0x101] sm:$0xff] }
  0xbe   : > { %v1236_v28 = vpop.permute.xlu0 %1235  ;;  %1294 = vst.msk [vmem:[#allocation2 + $0x58] sm:$0xff] %vm1287_vm10, %v6129_v27  ;;  %v1063_v17 = vpack.c.bf16 %v1041_v12, %v1040_v11  ;;  %v752_v18 = vld [vmem:[%s5736_s9 + $0xf8] sm:$0xff]  ;;  %v230_v11 = vld [vmem:[%s5736_s9 + $0x10d] sm:$0xff] }
  0xbf   : > { %1291 = vst.msk [vmem:[#allocation2 + $0x38] sm:$0xff] %vm1285_vm9, %v1236_v28  ;;  %816 = vrot.lane.b32.xlu1 %v770_v23, %s5639_s28  ;;  %v588_v21 = vld [vmem:[%s5736_s9 + $0xf7] sm:$0xff] }
  0xc0   : > { %1292 = vst.msk [vmem:[#allocation2 + $0x40] sm:$0xff] %vm1287_vm10, %v1236_v28  ;;  %652 = vrot.lane.b32.xlu0 %v6125_v24, %s5637_s20  ;;  %v295_v28 = vld [vmem:[%s5736_s9 + $0xce] sm:$0xff] }
  0xc1   : > { %v1402_v29 = vpop.permute.xlu1 %1401 }
  0xc2   : > { %v1400_v32 = vpop.permute.xlu0 %1399  ;;  %1453 = vst.msk [vmem:[#allocation2 + $0x58] sm:$0xff] %vm1449_vm11, %v1402_v29 }
  0xc3   : > { %1452 = vst.msk [vmem:[#allocation2 + $0x40] sm:$0xff] %vm1449_vm11, %v1400_v32  ;;  %362 = vrot.lane.b32.xlu1 %v316_v22, %s5638_s22  ;;  %v1474_v41 = vld [vmem:[#allocation2 + $0x30] sm:$0xff] }
  0xc4   : > { %961 = vrot.lane.b32.xlu0 %v1059_v15, %s5636_s12  ;;  %v1039_v32 = vld [vmem:[%s5736_s9 + $0xf1] sm:$0xff] }
  0xc5   : > { %v803_v36 = vpop.permute.xlu1 %802  ;;  %v6228_v34 = vpack.c.bf16 %v1039_v32, %v1038_v31  ;;  %v1042_v32 = vld [vmem:[%s5736_s9 + $0x109] sm:$0xff] }
  0xc6   : > { %v639_v39 = vpop.permute.xlu0 %638  ;;  %v1475_v40 = vld [vmem:[#allocation2 + $0x38] sm:$0xff] }
  0xc7   : > { %695 = vst.msk [vmem:[#allocation2 + $0x50] sm:$0xff] %vm688_vm2, %v639_v39  ;;  %1800 = vmatprep.mubr.bf16.mxu0 %v1475_v40  ;;  %507 = vrot.lane.b32.xlu1 %v6094_v61, %s5640_s29  ;;  %v583_v61 = vld [vmem:[%s5736_s9 + $0xcf] sm:$0xff] }
  0xc8   : > { %854 = vst.msk [vmem:[#allocation2 + $0x50] sm:$0xff] %vm850_vm4, %v803_v36  ;;  %1106 = vrot.lane.b32.xlu0 %v6144_v33, %s5641_s30  ;;  %1801 = vmatmul.mubr.bf16.gmra.mrb[8].mxu0 %v1474_v41  ;;  %v6180_v0 = vpack.c.bf16 %v583_v61, %v582_v60  ;;  %v1186_v36 = vld [vmem:[%s5736_s9 + $0x102] sm:$0xff] }
  0xc9   : > { %v349_v48 = vpop.permute.xlu1 %348  ;;  %v1479_v49 = vld [vmem:[#allocation2 + $0x58] sm:$0xff]  ;;  %v1208_v43 = vpack.c.bf16 %v1186_v36, %v1185_v35  ;;  %v586_v61 = vld [vmem:[%s5736_s9 + $0xe7] sm:$0xff] }
  0xca   : > { %v948_v53 = vpop.permute.xlu0 %947  ;;  %400 = vst.msk [vmem:[#allocation2 + $0x48] sm:$0xff] %vm396_vm3, %v349_v48  ;;  %v1476_v54 = vld [vmem:[#allocation2 + $0x40] sm:$0xff] }
  0xcb   : > { %999 = vst.msk [vmem:[#allocation2 + $0x50] sm:$0xff] %vm995_vm5, %v948_v53  ;;  %5218 = vmatprep.mubr.msk.bf16.mxu1 %vm1693_vm12, %v1476_v54  ;;  %1253 = vrot.lane.b32.xlu1 %v1206_v42, %s5642_s5  ;;  %v224_v48 = vld [vmem:[%s5736_s9 + $0xdd] sm:$0xff] }
  0xcc   : > { %1251 = vrot.lane.b32.xlu0 %v1205_v44, %s5642_s5  ;;  %5219 = vmatmul.mubr.msk.bf16.gmra.mrb[4].mxu1 %vm1693_vm12, %v1479_v49  ;;  %v1349_v44 = vld [vmem:[%s5736_s9 + $0xfb] sm:$0xff]  ;;  %v246_v53 = vpack.c.bf16 %v224_v48, %v223_v47  ;;  %v1354_v47 = vld [vmem:[%s5736_s9 + $0x123] sm:$0xff] }
  0xcd   : > { %v494_v59 = vpop.permute.xlu1 %493  ;;  %v1189_v36 = vld [vmem:[%s5736_s9 + $0x11a] sm:$0xff] }
  0xce   : > { %v1093_v62 = vpop.permute.xlu0 %1092  ;;  %545 = vst.msk [vmem:[#allocation2 + $0x48] sm:$0xff] %vm541_vm6, %v494_v59  ;;  %v751_v59 = vld [vmem:[%s5736_s9 + $0xf0] sm:$0xff] }
  0xcf   : > { %1144 = vst.msk [vmem:[#allocation2 + $0x50] sm:$0xff] %vm1140_vm7, %v1093_v62  ;;  %1417 = vrot.lane.b32.xlu1 %v1370_v55, %s5643_s11  ;;  %v587_v62 = vld [vmem:[%s5736_s9 + $0xef] sm:$0xff] }
  0xd0   : > { %694 = vst.msk [vmem:[#allocation2 + $0x48] sm:$0xff] %vm686_vm8, %v639_v39  ;;  %1415 = vrot.lane.b32.xlu0 %v1369_v57, %s5643_s11  ;;  %v1184_v39 = vld [vmem:[%s5736_s9 + $0xf2] sm:$0xff]  ;;  %v1372_v57 = vpack.c.bf16 %v1350_v46, %v1349_v44  ;;  %v6264_v2 = vpack.c.bf16 %v587_v62, %v586_v61  ;;  %v590_v62 = vld [vmem:[%s5736_s9 + $0x107] sm:$0xff] }
  0xd1   : > { %1293 = vst.msk [vmem:[#allocation2 + $0x50] sm:$0xff] %vm1285_vm9, %v6129_v27  ;;  %v805_v4 = vpop.permute.xlu1 %804  ;;  %v294_v27 = vld [vmem:[%s5736_s9 + $0xc6] sm:$0xff]  ;;  %v1207_v45 = vpack.c.bf16 %v1184_v39, %v1183_v38  ;;  %v227_v48 = vld [vmem:[%s5736_s9 + $0xf5] sm:$0xff] }
  0xd2   : > { %v641_v5 = vpop.permute.xlu0 %640  ;;  %265 = vst.msk [vmem:[#allocation2 + $0x138] sm:$0xff] %vm251_vm0, %v246_v53  ;;  %v1187_v39 = vld [vmem:[%s5736_s9 + $0x10a] sm:$0xff]  ;;  %v1352_v53 = vld [vmem:[%s5736_s9 + $0x113] sm:$0xff] }
  0xd3   : > { %697 = vst.msk [vmem:[#allocation2 + $0x68] sm:$0xff] %vm688_vm2, %v641_v5  ;;  %818 = vrot.lane.b32.xlu1 %v771_v63, %s5639_s28 }
  0xd4   : > { %855 = vst.msk [vmem:[#allocation2 + $0x68] sm:$0xff] %vm850_vm4, %v805_v4  ;;  %654 = vrot.lane.b32.xlu0 %v6180_v0, %s5637_s20  ;;  %v297_v4 = vld [vmem:[%s5736_s9 + $0xde] sm:$0xff] }
  0xd5   : > { %v351_v9 = vpop.permute.xlu1 %350  ;;  %v319_v7 = vpack.c.bf16 %v297_v4, %v296_v3  ;;  %v300_v4 = vld [vmem:[%s5736_s9 + $0xf6] sm:$0xff] }
  0xd6   : > { %v950_v13 = vpop.permute.xlu0 %949  ;;  %401 = vst.msk [vmem:[#allocation2 + $0x60] sm:$0xff] %vm396_vm3, %v351_v9  ;;  %v226_v9 = vld [vmem:[%s5736_s9 + $0xed] sm:$0xff] }
  0xd7   : > { %v1477_v14 = vld [vmem:[#allocation2 + $0x48] sm:$0xff]  ;;  %1000 = vst.msk [vmem:[#allocation2 + $0x68] sm:$0xff] %vm995_vm5, %v950_v13  ;;  %364 = vrot.lane.b32.xlu1 %v317_v6, %s5638_s22  ;;  %v247_v13 = vpack.c.bf16 %v226_v9, %v225_v8  ;;  %v5644_v9 = vmov 0.0  }
  0xd8   : > { %v1478_v15 = vld [vmem:[#allocation2 + $0x50] sm:$0xff]  ;;  %963 = vrot.lane.b32.xlu0 %v6144_v33, %s5636_s12  ;;  %2358 = vst.msk [vmem:[#allocation3] sm:$0xff] %vm1287_vm10, %v5644_v9  ;;  %2359 = vst.msk [vmem:[#allocation3 + $0x8] sm:$0xff] %vm1287_vm10, %v5644_v9 }
  0xd9   : > { %1808 = vmatprep.mubr.bf16.mxu0 %v1478_v15  ;;  %v496_v19 = vpop.permute.xlu1 %495  ;;  %266 = vst.msk [vmem:[#allocation2 + $0x150] sm:$0xff] %vm251_vm0, %v247_v13  ;;  %v1044_v13 = vld [vmem:[%s5736_s9 + $0x119] sm:$0xff] }
  0xda   : > { %1809 = vmatmul.mubr.bf16.gmra.mrb[12].mxu0 %v1477_v14  ;;  %v1095_v23 = vpop.permute.xlu0 %1094  ;;  %546 = vst.msk [vmem:[#allocation2 + $0x60] sm:$0xff] %vm541_vm6, %v496_v19  ;;  %v753_v19 = vld [vmem:[%s5736_s9 + $0x100] sm:$0xff] }
  0xdb   : > { %1145 = vst.msk [vmem:[#allocation2 + $0x68] sm:$0xff] %vm1140_vm7, %v1095_v23  ;;  %509 = vrot.lane.b32.xlu1 %v6125_v24, %s5640_s29  ;;  %v318_v24 = vpack.c.bf16 %v295_v28, %v294_v27  ;;  %v589_v23 = vld [vmem:[%s5736_s9 + $0xff] sm:$0xff]  ;;  %v774_v27 = vpack.c.bf16 %v753_v19, %v752_v18 }
  0xdc   : > { %696 = vst.msk [vmem:[#allocation2 + $0x60] sm:$0xff] %vm686_vm8, %v641_v5  ;;  %1108 = vrot.lane.b32.xlu0 %v1061_v16, %s5641_s30  ;;  %v6293_v28 = vpack.c.bf16 %v589_v23, %v588_v21  ;;  %v757_v21 = vld [vmem:[%s5736_s9 + $0x120] sm:$0xff] }
  0xdd   : > { %v6213_v22 = vpop.permute.xlu1 %1241  ;;  %2360 = vst.msk [vmem:[#allocation3 + $0x10] sm:$0xff] %vm1287_vm10, %v5644_v9  ;;  %2361 = vst.msk [vmem:[#allocation3 + $0x138] sm:$0xff] %vm1287_vm10, %v5644_v9 }
  0xde   : > { %v1240_v29 = vpop.permute.xlu0 %1239  ;;  %1298 = vst.msk [vmem:[#allocation2 + $0x88] sm:$0xff] %vm1287_vm10, %v6213_v22  ;;  %2362 = vst.msk [vmem:[#allocation3 + $0x140] sm:$0xff] %vm1287_vm10, %v5644_v9 }
  0xdf   : > { %1295 = vst.msk [vmem:[#allocation2 + $0x68] sm:$0xff] %vm1285_vm9, %v1240_v29  ;;  %820 = vrot.lane.b32.xlu1 %v772_v25, %s5639_s28 }
  0xe0   : > { %1296 = vst.msk [vmem:[#allocation2 + $0x70] sm:$0xff] %vm1287_vm10, %v1240_v29  ;;  %656 = vrot.lane.b32.xlu0 %v6209_v26, %s5637_s20  ;;  %v299_v29 = vld [vmem:[%s5736_s9 + $0xee] sm:$0xff]  ;;  %2363 = vst.msk [vmem:[#allocation3 + $0x148] sm:$0xff] %vm1287_vm10, %v5644_v9 }
  0xe1   : > { %v1406_v30 = vpop.permute.xlu1 %1405 }
  0xe2   : > { %v1404_v33 = vpop.permute.xlu0 %1403  ;;  %1455 = vst.msk [vmem:[#allocation2 + $0x88] sm:$0xff] %vm1449_vm11, %v1406_v30 }
  0xe3   : > { %1454 = vst.msk [vmem:[#allocation2 + $0x70] sm:$0xff] %vm1449_vm11, %v1404_v33  ;;  %366 = vrot.lane.b32.xlu1 %v318_v24, %s5638_s22  ;;  %v1480_v42 = vld [vmem:[#allocation2 + $0x60] sm:$0xff]  ;;  %v1043_v33 = vld [vmem:[%s5736_s9 + $0x111] sm:$0xff] }
  0xe4   : > { %965 = vrot.lane.b32.xlu0 %v1061_v16, %s5636_s12  ;;  %v6312_v35 = vpack.c.bf16 %v1043_v33, %v1042_v32 }
  0xe5   : > { %v807_v37 = vpop.permute.xlu1 %806 }
  0xe6   : > { %v643_v40 = vpop.permute.xlu0 %642  ;;  %v1481_v41 = vld [vmem:[#allocation2 + $0x68] sm:$0xff] }
  0xe7   : > { %699 = vst.msk [vmem:[#allocation2 + $0x80] sm:$0xff] %vm688_vm2, %v643_v40  ;;  %1816 = vmatprep.mubr.bf16.mxu0 %v1481_v41  ;;  %511 = vrot.lane.b32.xlu1 %v6180_v0, %s5640_s29  ;;  %v773_v0 = vpack.c.bf16 %v751_v59, %v750_v56  ;;  %v1373_v56 = vpack.c.bf16 %v1352_v53, %v1351_v52  ;;  %v754_v59 = vld [vmem:[%s5736_s9 + $0x108] sm:$0xff] }
  0xe8   : > { %856 = vst.msk [vmem:[#allocation2 + $0x80] sm:$0xff] %vm850_vm4, %v807_v37  ;;  %1110 = vrot.lane.b32.xlu0 %v6228_v34, %s5641_s30  ;;  %1817 = vmatmul.mubr.bf16.gmra.mrb[16].mxu0 %v1480_v42  ;;  %v1190_v37 = vld [vmem:[%s5736_s9 + $0x122] sm:$0xff] }
  0xe9   : > { %v353_v49 = vpop.permute.xlu1 %352  ;;  %v1485_v50 = vld [vmem:[#allocation2 + $0x88] sm:$0xff]  ;;  %v1210_v44 = vpack.c.bf16 %v1190_v37, %v1189_v36 }
  0xea   : > { %v952_v54 = vpop.permute.xlu0 %951  ;;  %402 = vst.msk [vmem:[#allocation2 + $0x78] sm:$0xff] %vm396_vm3, %v353_v49  ;;  %v1482_v55 = vld [vmem:[#allocation2 + $0x70] sm:$0xff]  ;;  %v228_v49 = vld [vmem:[%s5736_s9 + $0xfd] sm:$0xff] }
  0xeb   : > { %1001 = vst.msk [vmem:[#allocation2 + $0x80] sm:$0xff] %vm995_vm5, %v952_v54  ;;  %5222 = vmatprep.mubr.msk.bf16.mxu1 %vm1693_vm12, %v1482_v55  ;;  %1257 = vrot.lane.b32.xlu1 %v1208_v43, %s5642_s5  ;;  %v248_v54 = vpack.c.bf16 %v228_v49, %v227_v48  ;;  %v1358_v49 = vld [vmem:[%s5736_s9 + $0x143] sm:$0xff] }
  0xec   : > { %1255 = vrot.lane.b32.xlu0 %v1207_v45, %s5642_s5  ;;  %5223 = vmatmul.mubr.msk.bf16.gmra.mrb[8].mxu1 %vm1693_vm12, %v1485_v50  ;;  %v1353_v45 = vld [vmem:[%s5736_s9 + $0x11b] sm:$0xff] }
  0xed   : > { %v498_v60 = vpop.permute.xlu1 %497  ;;  %267 = vst.msk [vmem:[#allocation2 + $0x168] sm:$0xff] %vm251_vm0, %v248_v54  ;;  %v1355_v54 = vld [vmem:[%s5736_s9 + $0x12b] sm:$0xff] }
  0xee   : > { %v1097_v63 = vpop.permute.xlu0 %1096  ;;  %547 = vst.msk [vmem:[#allocation2 + $0x78] sm:$0xff] %vm541_vm6, %v498_v60  ;;  %v755_v60 = vld [vmem:[%s5736_s9 + $0x110] sm:$0xff] }
  0xef   : > { %1146 = vst.msk [vmem:[#allocation2 + $0x80] sm:$0xff] %vm1140_vm7, %v1097_v63  ;;  %1421 = vrot.lane.b32.xlu1 %v1372_v57, %s5643_s11  ;;  %v591_v63 = vld [vmem:[%s5736_s9 + $0x10f] sm:$0xff] }
  0xf0   : > { %698 = vst.msk [vmem:[#allocation2 + $0x78] sm:$0xff] %vm686_vm8, %v643_v40  ;;  %1419 = vrot.lane.b32.xlu0 %v1371_v58, %s5643_s11  ;;  %v1188_v40 = vld [vmem:[%s5736_s9 + $0x112] sm:$0xff]  ;;  %v1374_v58 = vpack.c.bf16 %v1354_v47, %v1353_v45  ;;  %v6348_v3 = vpack.c.bf16 %v591_v63, %v590_v62  ;;  %v1357_v47 = vld [vmem:[%s5736_s9 + $0x13b] sm:$0xff] }
  0xf1   : > { %1297 = vst.msk [vmem:[#allocation2 + $0x80] sm:$0xff] %vm1285_vm9, %v6213_v22  ;;  %v809_v5 = vpop.permute.xlu1 %808  ;;  %v298_v22 = vld [vmem:[%s5736_s9 + $0xe6] sm:$0xff]  ;;  %v1209_v46 = vpack.c.bf16 %v1188_v40, %v1187_v39  ;;  %v759_v62 = vld [vmem:[%s5736_s9 + $0x130] sm:$0xff] }
  0xf2   : > { %v645_v6 = vpop.permute.xlu0 %644  ;;  %v1194_v39 = vld [vmem:[%s5736_s9 + $0x142] sm:$0xff] }
  0xf3   : > { %701 = vst.msk [vmem:[#allocation2 + $0x98] sm:$0xff] %vm688_vm2, %v645_v6  ;;  %822 = vrot.lane.b32.xlu1 %v773_v0, %s5639_s28 }
  0xf4   : > { %857 = vst.msk [vmem:[#allocation2 + $0x98] sm:$0xff] %vm850_vm4, %v809_v5  ;;  %658 = vrot.lane.b32.xlu0 %v6264_v2, %s5637_s20  ;;  %v301_v5 = vld [vmem:[%s5736_s9 + $0xfe] sm:$0xff] }
  0xf5   : > { %v355_v10 = vpop.permute.xlu1 %354  ;;  %v321_v8 = vpack.c.bf16 %v301_v5, %v300_v4 }
  0xf6   : > { %v954_v14 = vpop.permute.xlu0 %953  ;;  %403 = vst.msk [vmem:[#allocation2 + $0x90] sm:$0xff] %vm396_vm3, %v355_v10  ;;  %v229_v10 = vld [vmem:[%s5736_s9 + $0x105] sm:$0xff] }
  0xf7   : > { %v1483_v15 = vld [vmem:[#allocation2 + $0x78] sm:$0xff]  ;;  %1002 = vst.msk [vmem:[#allocation2 + $0x98] sm:$0xff] %vm995_vm5, %v954_v14  ;;  %368 = vrot.lane.b32.xlu1 %v319_v7, %s5638_s22  ;;  %v1045_v14 = vld [vmem:[%s5736_s9 + $0x121] sm:$0xff] }
  0xf8   : > { %v1484_v16 = vld [vmem:[#allocation2 + $0x80] sm:$0xff]  ;;  %967 = vrot.lane.b32.xlu0 %v6228_v34, %s5636_s12  ;;  %v1065_v19 = vpack.c.bf16 %v1045_v14, %v1044_v13 }
  0xf9   : > { %1824 = vmatprep.mubr.bf16.mxu0 %v1484_v16  ;;  %v500_v20 = vpop.permute.xlu1 %499  ;;  %v1049_v13 = vld [vmem:[%s5736_s9 + $0x141] sm:$0xff] }
  0xfa   : > { %1825 = vmatmul.mubr.bf16.gmra.mrb[20].mxu0 %v1483_v15  ;;  %v1099_v25 = vpop.permute.xlu0 %1098  ;;  %548 = vst.msk [vmem:[#allocation2 + $0x90] sm:$0xff] %vm541_vm6, %v500_v20  ;;  %v249_v15 = vpack.c.bf16 %v230_v11, %v229_v10  ;;  %v756_v20 = vld [vmem:[%s5736_s9 + $0x118] sm:$0xff] }
  0xfb   : > { %1147 = vst.msk [vmem:[#allocation2 + $0x98] sm:$0xff] %vm1140_vm7, %v1099_v25  ;;  %513 = vrot.lane.b32.xlu1 %v6209_v26, %s5640_s29  ;;  %v320_v26 = vpack.c.bf16 %v299_v29, %v298_v22  ;;  %v592_v25 = vld [vmem:[%s5736_s9 + $0x117] sm:$0xff]  ;;  %v776_v29 = vpack.c.bf16 %v757_v21, %v756_v20 }
  0xfc   : > { %700 = vst.msk [vmem:[#allocation2 + $0x90] sm:$0xff] %vm686_vm8, %v645_v6  ;;  %1112 = vrot.lane.b32.xlu0 %v1063_v17, %s5641_s30  ;;  %v2653_v20 = vld [vmem:[#allocation3 + $0xe] sm:$0xff] }
  0xfd   : > { %v6297_v24 = vpop.permute.xlu1 %1245  ;;  %268 = vst.msk [vmem:[#allocation2 + $0x180] sm:$0xff] %vm251_vm0, %v249_v15 }
  0xfe   : > { %v1244_v30 = vpop.permute.xlu0 %1243  ;;  %1302 = vst.msk [vmem:[#allocation2 + $0xb8] sm:$0xff] %vm1287_vm10, %v6297_v24 }
  0xff   : > { %1299 = vst.msk [vmem:[#allocation2 + $0x98] sm:$0xff] %vm1285_vm9, %v1244_v30  ;;  %824 = vrot.lane.b32.xlu1 %v774_v27, %s5639_s28  ;;  %v593_v27 = vld [vmem:[%s5736_s9 + $0x11f] sm:$0xff] }
 0x100   : > { %1300 = vst.msk [vmem:[#allocation2 + $0xa0] sm:$0xff] %vm1287_vm10, %v1244_v30  ;;  %660 = vrot.lane.b32.xlu0 %v6293_v28, %s5637_s20  ;;  %v302_v30 = vld [vmem:[%s5736_s9 + $0x106] sm:$0xff] }
 0x101   : > { %v1410_v31 = vpop.permute.xlu1 %1409 }
 0x102   : > { %v1408_v34 = vpop.permute.xlu0 %1407  ;;  %1457 = vst.msk [vmem:[#allocation2 + $0xb8] sm:$0xff] %vm1449_vm11, %v1410_v31 }
 0x103   : > { %1456 = vst.msk [vmem:[#allocation2 + $0xa0] sm:$0xff] %vm1449_vm11, %v1408_v34  ;;  %370 = vrot.lane.b32.xlu1 %v320_v26, %s5638_s22  ;;  %v1486_v43 = vld [vmem:[#allocation2 + $0x90] sm:$0xff] }
 0x104   : > { %969 = vrot.lane.b32.xlu0 %v1063_v17, %s5636_s12  ;;  %v303_v26 = vld [vmem:[%s5736_s9 + $0x10e] sm:$0xff] }
 0x105   : > { %v811_v38 = vpop.permute.xlu1 %810  ;;  %v1046_v34 = vld [vmem:[%s5736_s9 + $0x129] sm:$0xff] }
 0x106   : > { %v647_v41 = vpop.permute.xlu0 %646  ;;  %v1487_v42 = vld [vmem:[#allocation2 + $0x98] sm:$0xff] }
 0x107   : > { %703 = vst.msk [vmem:[#allocation2 + $0xb0] sm:$0xff] %vm688_vm2, %v647_v41  ;;  %1832 = vmatprep.mubr.bf16.mxu0 %v1487_v42  ;;  %515 = vrot.lane.b32.xlu1 %v6264_v2, %s5640_s29  ;;  %v775_v2 = vpack.c.bf16 %v755_v60, %v754_v59  ;;  %v1192_v42 = vld [vmem:[%s5736_s9 + $0x132] sm:$0xff]  ;;  %v1376_v59 = vpack.c.bf16 %v1358_v49, %v1357_v47 }
 0x108   : > { %858 = vst.msk [vmem:[#allocation2 + $0xb0] sm:$0xff] %vm850_vm4, %v811_v38  ;;  %1114 = vrot.lane.b32.xlu0 %v6312_v35, %s5641_s30  ;;  %1833 = vmatmul.mubr.bf16.gmra.mrb[24].mxu0 %v1486_v43  ;;  %v1193_v38 = vld [vmem:[%s5736_s9 + $0x13a] sm:$0xff] }
 0x109   : > { %v357_v50 = vpop.permute.xlu1 %356  ;;  %v1491_v51 = vld [vmem:[#allocation2 + $0xb8] sm:$0xff] }
 0x10a   : > { %v956_v55 = vpop.permute.xlu0 %955  ;;  %404 = vst.msk [vmem:[#allocation2 + $0xa8] sm:$0xff] %vm396_vm3, %v357_v50  ;;  %v1488_v57 = vld [vmem:[#allocation2 + $0xa0] sm:$0xff]  ;;  %v231_v50 = vld [vmem:[%s5736_s9 + $0x115] sm:$0xff] }
 0x10b   : > { %1003 = vst.msk [vmem:[#allocation2 + $0xb0] sm:$0xff] %vm995_vm5, %v956_v55  ;;  %5226 = vmatprep.mubr.msk.bf16.mxu1 %vm1693_vm12, %v1488_v57  ;;  %1261 = vrot.lane.b32.xlu1 %v1210_v44, %s5642_s5  ;;  %v1356_v55 = vld [vmem:[%s5736_s9 + $0x133] sm:$0xff] }
 0x10c   : > { %1259 = vrot.lane.b32.xlu0 %v1209_v46, %s5642_s5  ;;  %5227 = vmatmul.mubr.msk.bf16.gmra.mrb[12].mxu1 %vm1693_vm12, %v1491_v51  ;;  %v1212_v46 = vpack.c.bf16 %v1194_v39, %v1193_v38  ;;  %v232_v51 = vld [vmem:[%s5736_s9 + $0x11d] sm:$0xff]  ;;  %v1375_v60 = vpack.c.bf16 %v1356_v55, %v1355_v54 }
 0x10d   : > { %v502_v61 = vpop.permute.xlu1 %501  ;;  %v250_v57 = vpack.c.bf16 %v232_v51, %v231_v50 }
 0x10e   : > { %v1101_v0 = vpop.permute.xlu0 %1100  ;;  %549 = vst.msk [vmem:[#allocation2 + $0xa8] sm:$0xff] %vm541_vm6, %v502_v61  ;;  %v758_v61 = vld [vmem:[%s5736_s9 + $0x128] sm:$0xff] }
 0x10f   : > { %1148 = vst.msk [vmem:[#allocation2 + $0xb0] sm:$0xff] %vm1140_vm7, %v1101_v0  ;;  %1425 = vrot.lane.b32.xlu1 %v1374_v58, %s5643_s11  ;;  %v594_v0 = vld [vmem:[%s5736_s9 + $0x127] sm:$0xff]  ;;  %v777_v4 = vpack.c.bf16 %v759_v62, %v758_v61 }
 0x110   : > { %702 = vst.msk [vmem:[#allocation2 + $0xa8] sm:$0xff] %vm686_vm8, %v647_v41  ;;  %1423 = vrot.lane.b32.xlu0 %v1373_v56, %s5643_s11  ;;  %v1191_v41 = vld [vmem:[%s5736_s9 + $0x12a] sm:$0xff] }
 0x111   : > { %1301 = vst.msk [vmem:[#allocation2 + $0xb0] sm:$0xff] %vm1285_vm9, %v6297_v24  ;;  %v813_v6 = vpop.permute.xlu1 %812  ;;  %v6383_v24 = vpack.c.bf16 %v593_v27, %v592_v25  ;;  %v1211_v48 = vpack.c.bf16 %v1192_v42, %v1191_v41  ;;  %v2797_v27 = vld [vmem:[#allocation3 + $0x7] sm:$0xff] }
 0x112   : > { %v649_v7 = vpop.permute.xlu0 %648  ;;  %269 = vst.msk [vmem:[#allocation2 + $0x198] sm:$0xff] %vm251_vm0, %v250_v57  ;;  %vm4845_vm0 = vcmask 261121  }
 0x113   : > { %705 = vst.msk [vmem:[#allocation2 + $0xc8] sm:$0xff] %vm688_vm2, %v649_v7  ;;  %826 = vrot.lane.b32.xlu1 %v775_v2, %s5639_s28  ;;  %v595_v2 = vld [vmem:[%s5736_s9 + $0x12f] sm:$0xff] }
 0x114   : > { %859 = vst.msk [vmem:[#allocation2 + $0xc8] sm:$0xff] %vm850_vm4, %v813_v6  ;;  %662 = vrot.lane.b32.xlu0 %v6348_v3, %s5637_s20  ;;  %v613_v5 = vpack.c.bf16 %v595_v2, %v594_v0  ;;  %v304_v6 = vld [vmem:[%s5736_s9 + $0x116] sm:$0xff] }
 0x115   : > { %v359_v12 = vpop.permute.xlu1 %358 }
 0x116   : > { %v958_v16 = vpop.permute.xlu0 %957  ;;  %405 = vst.msk [vmem:[#allocation2 + $0xc0] sm:$0xff] %vm396_vm3, %v359_v12  ;;  %v1048_v12 = vld [vmem:[%s5736_s9 + $0x139] sm:$0xff] }
 0x117   : > { %v1489_v17 = vld [vmem:[#allocation2 + $0xa8] sm:$0xff]  ;;  %1004 = vst.msk [vmem:[#allocation2 + $0xc8] sm:$0xff] %vm995_vm5, %v958_v16  ;;  %372 = vrot.lane.b32.xlu1 %v321_v8, %s5638_s22 }
 0x118   : > { %v1490_v18 = vld [vmem:[#allocation2 + $0xb0] sm:$0xff]  ;;  %971 = vrot.lane.b32.xlu0 %v6312_v35, %s5636_s12 }
 0x119   : > { %1840 = vmatprep.mubr.bf16.mxu0 %v1490_v18  ;;  %v504_v23 = vpop.permute.xlu1 %503  ;;  %v1047_v35 = vld [vmem:[%s5736_s9 + $0x131] sm:$0xff] }
 0x11a   : > { %1841 = vmatmul.mubr.bf16.gmra.mrb[28].mxu0 %v1489_v17  ;;  %v1103_v22 = vpop.permute.xlu0 %1102  ;;  %550 = vst.msk [vmem:[#allocation2 + $0xc0] sm:$0xff] %vm541_vm6, %v504_v23  ;;  %v6402_v37 = vpack.c.bf16 %v1047_v35, %v1046_v34  ;;  %v1067_v17 = vpack.c.bf16 %v1049_v13, %v1048_v12 }
 0x11b   : > { %1149 = vst.msk [vmem:[#allocation2 + $0xc8] sm:$0xff] %vm1140_vm7, %v1103_v22  ;;  %517 = vrot.lane.b32.xlu1 %v6293_v28, %s5640_s29  ;;  %v322_v28 = vpack.c.bf16 %v303_v26, %v302_v30  ;;  %v2798_v22 = vld [vmem:[#allocation3 + $0xf] sm:$0xff] }
 0x11c   : > { %704 = vst.msk [vmem:[#allocation2 + $0xc0] sm:$0xff] %vm686_vm8, %v649_v7  ;;  %1116 = vrot.lane.b32.xlu0 %v1065_v19, %s5641_s30  ;;  %v305_v7 = vld [vmem:[%s5736_s9 + $0x11e] sm:$0xff]  ;;  %v2833_v30 = vpack.c.bf16 %v2798_v22, %v2797_v27 }
 0x11d   : > { %v6387_v31 = vpop.permute.xlu1 %1249  ;;  %v323_v10 = vpack.c.bf16 %v305_v7, %v304_v6 }
 0x11e   : > { %v1248_v32 = vpop.permute.xlu0 %1247  ;;  %1306 = vst.msk [vmem:[#allocation2 + $0xe8] sm:$0xff] %vm1287_vm10, %v6387_v31 }
 0x11f   : > { %1303 = vst.msk [vmem:[#allocation2 + $0xc8] sm:$0xff] %vm1285_vm9, %v1248_v32  ;;  %828 = vrot.lane.b32.xlu1 %v776_v29, %s5639_s28 }
 0x120   : > { %1304 = vst.msk [vmem:[#allocation2 + $0xd0] sm:$0xff] %vm1287_vm10, %v1248_v32  ;;  %664 = vrot.lane.b32.xlu0 %v6383_v24, %s5637_s20  ;;  %v3338_v32 = vld [vmem:[#allocation3 + $0x141] sm:$0xff] }
 0x121   : > { %v1414_v33 = vpop.permute.xlu1 %1413 }
 0x122   : > { %v1412_v36 = vpop.permute.xlu0 %1411  ;;  %1459 = vst.msk [vmem:[#allocation2 + $0xe8] sm:$0xff] %vm1449_vm11, %v1414_v33 }
 0x123   : > { %1458 = vst.msk [vmem:[#allocation2 + $0xd0] sm:$0xff] %vm1449_vm11, %v1412_v36  ;;  %374 = vrot.lane.b32.xlu1 %v322_v28, %s5638_s22  ;;  %v1492_v45 = vld [vmem:[#allocation2 + $0xc0] sm:$0xff] }
 0x124   : > { %973 = vrot.lane.b32.xlu0 %v1065_v19, %s5636_s12  ;;  %v2652_v19 = vld [vmem:[#allocation3 + $0x6] sm:$0xff] }
 0x125   : > { %v815_v40 = vpop.permute.xlu1 %814  ;;  %v2688_v23 = vpack.c.bf16 %v2653_v20, %v2652_v19 }
 0x126   : > { %v651_v43 = vpop.permute.xlu0 %650  ;;  %v1493_v44 = vld [vmem:[#allocation2 + $0xc8] sm:$0xff] }
 0x127   : > { %707 = vst.msk [vmem:[#allocation2 + $0xe0] sm:$0xff] %vm688_vm2, %v651_v43  ;;  %1848 = vmatprep.mubr.bf16.mxu0 %v1493_v44  ;;  %519 = vrot.lane.b32.xlu1 %v6348_v3, %s5640_s29 }
 0x128   : > { %860 = vst.msk [vmem:[#allocation2 + $0xe0] sm:$0xff] %vm850_vm4, %v815_v40  ;;  %1118 = vrot.lane.b32.xlu0 %v6402_v37, %s5641_s30  ;;  %1849 = vmatmul.mubr.bf16.gmra.mrb[32].mxu0 %v1492_v45 }
 0x129   : > { %v361_v52 = vpop.permute.xlu1 %360  ;;  %v1497_v53 = vld [vmem:[#allocation2 + $0xe8] sm:$0xff] }
 0x12a   : > { %v960_v58 = vpop.permute.xlu0 %959  ;;  %406 = vst.msk [vmem:[#allocation2 + $0xd8] sm:$0xff] %vm396_vm3, %v361_v52  ;;  %v1494_v56 = vld [vmem:[#allocation2 + $0xd0] sm:$0xff] }
 0x12b   : > { %1005 = vst.msk [vmem:[#allocation2 + $0xe0] sm:$0xff] %vm995_vm5, %v960_v58  ;;  %5230 = vmatprep.mubr.msk.bf16.mxu1 %vm1693_vm12, %v1494_v56  ;;  %1265 = vrot.lane.b32.xlu1 %v1212_v46, %s5642_s5 }
 0x12c   : > { %1263 = vrot.lane.b32.xlu0 %v1211_v48, %s5642_s5  ;;  %5231 = vmatmul.mubr.msk.bf16.gmra.mrb[16].mxu1 %vm1693_vm12, %v1497_v53 }
 0x12d   : > { %v506_v63 = vpop.permute.xlu1 %505 }
 0x12e   : > { %v1105_v3 = vpop.permute.xlu0 %1104  ;;  %551 = vst.msk [vmem:[#allocation2 + $0xd8] sm:$0xff] %vm541_vm6, %v506_v63 }
 0x12f   : > { %1150 = vst.msk [vmem:[#allocation2 + $0xe0] sm:$0xff] %vm1140_vm7, %v1105_v3  ;;  %1429 = vrot.lane.b32.xlu1 %v1376_v59, %s5643_s11 }
 0x130   : > { %706 = vst.msk [vmem:[#allocation2 + $0xd8] sm:$0xff] %vm686_vm8, %v651_v43  ;;  %1427 = vrot.lane.b32.xlu0 %v1375_v60, %s5643_s11 }
 0x131   : > { %1305 = vst.msk [vmem:[#allocation2 + $0xe0] sm:$0xff] %vm1285_vm9, %v6387_v31  ;;  %v817_v8 = vpop.permute.xlu1 %816  ;;  %v3337_v31 = vld [vmem:[#allocation3 + $0x139] sm:$0xff] }
 0x132   : > { %v653_v9 = vpop.permute.xlu0 %652  ;;  %v3356_v28 = vpack.c.bf16 %v3338_v32, %v3337_v31 }
 0x133   : > { %709 = vst.msk [vmem:[#allocation2 + $0xf8] sm:$0xff] %vm688_vm2, %v653_v9  ;;  %830 = vrot.lane.b32.xlu1 %v777_v4, %s5639_s28  ;;  %s5646_s28 = smov 96  }
 0x134   : > { %861 = vst.msk [vmem:[#allocation2 + $0xf8] sm:$0xff] %vm850_vm4, %v817_v8  ;;  %666 = vrot.lane.b32.xlu0 %v613_v5, %s5637_s20 }
 0x135   : > { %v363_v11 = vpop.permute.xlu1 %362 }
 0x136   : > { %v962_v14 = vpop.permute.xlu0 %961  ;;  %407 = vst.msk [vmem:[#allocation2 + $0xf0] sm:$0xff] %vm396_vm3, %v363_v11 }
 0x137   : > { %v1495_v15 = vld [vmem:[#allocation2 + $0xd8] sm:$0xff]  ;;  %1006 = vst.msk [vmem:[#allocation2 + $0xf8] sm:$0xff] %vm995_vm5, %v962_v14  ;;  %376 = vrot.lane.b32.xlu1 %v323_v10, %s5638_s22 }
 0x138   : > { %v1496_v16 = vld [vmem:[#allocation2 + $0xe0] sm:$0xff]  ;;  %975 = vrot.lane.b32.xlu0 %v6402_v37, %s5636_s12  ;;  %s5645_s12 = smov 64  }
 0x139   : > { %1856 = vmatprep.mubr.bf16.mxu0 %v1496_v16  ;;  %v508_v18 = vpop.permute.xlu1 %507 }
 0x13a   : > { %1857 = vmatmul.mubr.bf16.gmra.mrb[36].mxu0 %v1495_v15  ;;  %v1107_v21 = vpop.permute.xlu0 %1106  ;;  %552 = vst.msk [vmem:[#allocation2 + $0xf0] sm:$0xff] %vm541_vm6, %v508_v18 }
 0x13b   : > { %1151 = vst.msk [vmem:[#allocation2 + $0xf8] sm:$0xff] %vm1140_vm7, %v1107_v21  ;;  %521 = vrot.lane.b32.xlu1 %v6383_v24, %s5640_s29 }
 0x13c   : > { %708 = vst.msk [vmem:[#allocation2 + $0xf0] sm:$0xff] %vm686_vm8, %v653_v9  ;;  %1120 = vrot.lane.b32.xlu0 %v1067_v17, %s5641_s30 }
 0x13d   : > { %v1254_v25 = vpop.permute.xlu1 %1253 }
 0x13e   : > { %v1252_v29 = vpop.permute.xlu0 %1251  ;;  %1310 = vst.msk [vmem:[#allocation2 + $0x118] sm:$0xff] %vm1287_vm10, %v1254_v25 }
 0x13f   : > { %1307 = vst.msk [vmem:[#allocation2 + $0xf8] sm:$0xff] %vm1285_vm9, %v1252_v29 }
 0x140   : > { %1308 = vst.msk [vmem:[#allocation2 + $0x100] sm:$0xff] %vm1287_vm10, %v1252_v29  ;;  %2724 = vrot.lane.b32.xlu0 %v2688_v23, %s5643_s11 }
 0x141   : > { %v1418_v26 = vpop.permute.xlu1 %1417 }
 0x142   : > { %v1416_v24 = vpop.permute.xlu0 %1415  ;;  %1461 = vst.msk [vmem:[#allocation2 + $0x118] sm:$0xff] %vm1449_vm11, %v1418_v26 }
 0x143   : > { %1460 = vst.msk [vmem:[#allocation2 + $0x100] sm:$0xff] %vm1449_vm11, %v1416_v24  ;;  %v1498_v36 = vld [vmem:[#allocation2 + $0xf0] sm:$0xff] }
 0x144   : > { %2869 = vrot.lane.b32.xlu0 %v2833_v30, %s5645_s12 }
 0x145   : > { %v819_v33 = vpop.permute.xlu1 %818 }
 0x146   : > { %v655_v34 = vpop.permute.xlu0 %654  ;;  %v1499_v35 = vld [vmem:[#allocation2 + $0xf8] sm:$0xff] }
 0x147   : > { %711 = vst.msk [vmem:[#allocation2 + $0x110] sm:$0xff] %vm688_vm2, %v655_v34  ;;  %1864 = vmatprep.mubr.bf16.mxu0 %v1499_v35 }
 0x148   : > { %862 = vst.msk [vmem:[#allocation2 + $0x110] sm:$0xff] %vm850_vm4, %v819_v33  ;;  %1865 = vmatmul.mubr.bf16.gmra.mrb[40].mxu0 %v1498_v36  ;;  %3409 = vrot.lane.b32.xlu0 %v3356_v28, %s5645_s12 }
 0x149   : > { %v365_v37 = vpop.permute.xlu1 %364  ;;  %v1503_v38 = vld [vmem:[#allocation2 + $0x118] sm:$0xff] }
 0x14a   : > { %v964_v39 = vpop.permute.xlu0 %963  ;;  %408 = vst.msk [vmem:[#allocation2 + $0x108] sm:$0xff] %vm396_vm3, %v365_v37  ;;  %v1500_v40 = vld [vmem:[#allocation2 + $0x100] sm:$0xff] }
 0x14b   : > { %1007 = vst.msk [vmem:[#allocation2 + $0x110] sm:$0xff] %vm995_vm5, %v964_v39  ;;  %5234 = vmatprep.mubr.msk.bf16.mxu1 %vm1693_vm12, %v1500_v40 }
 0x14c   : > { %5235 = vmatmul.mubr.msk.bf16.gmra.mrb[20].mxu1 %vm1693_vm12, %v1503_v38 }
 0x14d   : > { %v510_v41 = vpop.permute.xlu1 %509 }
 0x14e   : > { %v1109_v42 = vpop.permute.xlu0 %1108  ;;  %553 = vst.msk [vmem:[#allocation2 + $0x108] sm:$0xff] %vm541_vm6, %v510_v41 }
 0x14f   : > { %1152 = vst.msk [vmem:[#allocation2 + $0x110] sm:$0xff] %vm1140_vm7, %v1109_v42 }
 0x150   : > { %710 = vst.msk [vmem:[#allocation2 + $0x108] sm:$0xff] %vm686_vm8, %v655_v34 }
 0x151   : > { %1309 = vst.msk [vmem:[#allocation2 + $0x110] sm:$0xff] %vm1285_vm9, %v1254_v25  ;;  %v821_v43 = vpop.permute.xlu1 %820  ;;  %v6513_v25 = vld [vmem:[%s7886_s3] ss:$0 sm:$0xff] }
 0x152   : > { %v657_v44 = vpop.permute.xlu0 %656 }
 0x153   : > { %713 = vst.msk [vmem:[#allocation2 + $0x128] sm:$0xff] %vm688_vm2, %v657_v44 }
 0x154   : > { %863 = vst.msk [vmem:[#allocation2 + $0x128] sm:$0xff] %vm850_vm4, %v821_v43 }
 0x155   : > { %v367_v45 = vpop.permute.xlu1 %366 }
 0x156   : > { %v966_v46 = vpop.permute.xlu0 %965  ;;  %409 = vst.msk [vmem:[#allocation2 + $0x120] sm:$0xff] %vm396_vm3, %v367_v45 }
 0x157   : > { %v1501_v47 = vld [vmem:[#allocation2 + $0x108] sm:$0xff]  ;;  %1008 = vst.msk [vmem:[#allocation2 + $0x128] sm:$0xff] %vm995_vm5, %v966_v46 }
 0x158   : > { %v1502_v48 = vld [vmem:[#allocation2 + $0x110] sm:$0xff] }
 0x159   : > { %1872 = vmatprep.mubr.bf16.mxu0 %v1502_v48  ;;  %v512_v49 = vpop.permute.xlu1 %511 }
 0x15a   : > { %1873 = vmatmul.mubr.bf16.gmra.mrb[44].mxu0 %v1501_v47  ;;  %v1111_v50 = vpop.permute.xlu0 %1110  ;;  %554 = vst.msk [vmem:[#allocation2 + $0x120] sm:$0xff] %vm541_vm6, %v512_v49 }
 0x15b   : > { %1153 = vst.msk [vmem:[#allocation2 + $0x128] sm:$0xff] %vm1140_vm7, %v1111_v50 }
 0x15c   : > { %712 = vst.msk [vmem:[#allocation2 + $0x120] sm:$0xff] %vm686_vm8, %v657_v44 }
 0x15d   : > { %v1258_v51 = vpop.permute.xlu1 %1257 }
 0x15e   : > { %v1256_v52 = vpop.permute.xlu0 %1255  ;;  %1314 = vst.msk [vmem:[#allocation2 + $0x148] sm:$0xff] %vm1287_vm10, %v1258_v51 }
 0x15f   : > { %1311 = vst.msk [vmem:[#allocation2 + $0x128] sm:$0xff] %vm1285_vm9, %v1256_v52 }
 0x160   : > { %1312 = vst.msk [vmem:[#allocation2 + $0x130] sm:$0xff] %vm1287_vm10, %v1256_v52 }
 0x161   : > { %v1422_v53 = vpop.permute.xlu1 %1421 }
 0x162   : > { %v1420_v54 = vpop.permute.xlu0 %1419  ;;  %1463 = vst.msk [vmem:[#allocation2 + $0x148] sm:$0xff] %vm1449_vm11, %v1422_v53 }
 0x163   : > { %1462 = vst.msk [vmem:[#allocation2 + $0x130] sm:$0xff] %vm1449_vm11, %v1420_v54  ;;  %v1504_v56 = vld [vmem:[#allocation2 + $0x120] sm:$0xff] }
 0x165   : > { %v823_v55 = vpop.permute.xlu1 %822 }
 0x166   : > { %v659_v57 = vpop.permute.xlu0 %658  ;;  %v1505_v58 = vld [vmem:[#allocation2 + $0x128] sm:$0xff] }
 0x167   : > { %715 = vst.msk [vmem:[#allocation2 + $0x140] sm:$0xff] %vm688_vm2, %v659_v57  ;;  %1880 = vmatprep.mubr.bf16.mxu0 %v1505_v58 }
 0x168   : > { %864 = vst.msk [vmem:[#allocation2 + $0x140] sm:$0xff] %vm850_vm4, %v823_v55  ;;  %1881 = vmatmul.mubr.bf16.gmra.mrb[48].mxu0 %v1504_v56 }
 0x169   : > { %v369_v59 = vpop.permute.xlu1 %368  ;;  %v1509_v60 = vld [vmem:[#allocation2 + $0x148] sm:$0xff] }
 0x16a   : > { %v968_v61 = vpop.permute.xlu0 %967  ;;  %410 = vst.msk [vmem:[#allocation2 + $0x138] sm:$0xff] %vm396_vm3, %v369_v59  ;;  %v1506_v62 = vld [vmem:[#allocation2 + $0x130] sm:$0xff] }
 0x16b   : > { %1009 = vst.msk [vmem:[#allocation2 + $0x140] sm:$0xff] %vm995_vm5, %v968_v61  ;;  %5238 = vmatprep.mubr.msk.bf16.mxu1 %vm1693_vm12, %v1506_v62 }
 0x16c   : > { %5239 = vmatmul.mubr.msk.bf16.gmra.mrb[24].mxu1 %vm1693_vm12, %v1509_v60 }
 0x16d   : > { %v514_v63 = vpop.permute.xlu1 %513 }
 0x16e   : > { %v1113_v0 = vpop.permute.xlu0 %1112  ;;  %555 = vst.msk [vmem:[#allocation2 + $0x138] sm:$0xff] %vm541_vm6, %v514_v63 }
 0x16f   : > { %1154 = vst.msk [vmem:[#allocation2 + $0x140] sm:$0xff] %vm1140_vm7, %v1113_v0 }
 0x170   : > { %714 = vst.msk [vmem:[#allocation2 + $0x138] sm:$0xff] %vm686_vm8, %v659_v57 }
 0x171   : > { %1313 = vst.msk [vmem:[#allocation2 + $0x140] sm:$0xff] %vm1285_vm9, %v1258_v51  ;;  %v825_v2 = vpop.permute.xlu1 %824 }
 0x172   : > { %v661_v3 = vpop.permute.xlu0 %660 }
 0x173   : > { %717 = vst.msk [vmem:[#allocation2 + $0x158] sm:$0xff] %vm688_vm2, %v661_v3 }
 0x174   : > { %865 = vst.msk [vmem:[#allocation2 + $0x158] sm:$0xff] %vm850_vm4, %v825_v2 }
 0x175   : > { %v371_v4 = vpop.permute.xlu1 %370 }
 0x176   : > { %v970_v5 = vpop.permute.xlu0 %969  ;;  %411 = vst.msk [vmem:[#allocation2 + $0x150] sm:$0xff] %vm396_vm3, %v371_v4 }
 0x177   : > { %v1507_v6 = vld [vmem:[#allocation2 + $0x138] sm:$0xff]  ;;  %1010 = vst.msk [vmem:[#allocation2 + $0x158] sm:$0xff] %vm995_vm5, %v970_v5 }
 0x178   : > { %v1508_v7 = vld [vmem:[#allocation2 + $0x140] sm:$0xff] }
 0x179   : > { %1888 = vmatprep.mubr.bf16.mxu0 %v1508_v7  ;;  %v516_v8 = vpop.permute.xlu1 %515 }
 0x17a   : > { %1889 = vmatmul.mubr.bf16.gmra.mrb[52].mxu0 %v1507_v6  ;;  %v1115_v9 = vpop.permute.xlu0 %1114  ;;  %556 = vst.msk [vmem:[#allocation2 + $0x150] sm:$0xff] %vm541_vm6, %v516_v8 }
 0x17b   : > { %1155 = vst.msk [vmem:[#allocation2 + $0x158] sm:$0xff] %vm1140_vm7, %v1115_v9  ;;  %v1786_v10 = vpop.f32.mrb[0].mxu0 }
 0x17c   : > { %716 = vst.msk [vmem:[#allocation2 + $0x150] sm:$0xff] %vm686_vm8, %v661_v3  ;;  %v1788_v11 = vpop.f32.mrb[1].mxu0  ;;  %v1787_v28 = vadd.f32 %v6513_v25, %v1786_v10 }
 0x17d   : > { %v1789_v12 = vpop.f32.mrb[2].mxu0  ;;  %v1262_v13 = vpop.permute.xlu1 %1261 }
 0x17e   : > { %v1260_v14 = vpop.permute.xlu0 %1259  ;;  %1318 = vst.msk [vmem:[#allocation2 + $0x178] sm:$0xff] %vm1287_vm10, %v1262_v13  ;;  %v1791_v15 = vpop.f32.mrb[3].mxu0  ;;  %v1790_v37 = vadd.f32 %v6513_v25, %v1789_v12 }
 0x17f   : > { %1315 = vst.msk [vmem:[#allocation2 + $0x158] sm:$0xff] %vm1285_vm9, %v1260_v14 }
 0x180   : > { %1316 = vst.msk [vmem:[#allocation2 + $0x160] sm:$0xff] %vm1287_vm10, %v1260_v14 }
 0x181   : > { %v1426_v16 = vpop.permute.xlu1 %1425 }
 0x182   : > { %v1424_v17 = vpop.permute.xlu0 %1423  ;;  %1465 = vst.msk [vmem:[#allocation2 + $0x178] sm:$0xff] %vm1449_vm11, %v1426_v16 }
 0x183   : > { %1464 = vst.msk [vmem:[#allocation2 + $0x160] sm:$0xff] %vm1449_vm11, %v1424_v17  ;;  %v1510_v23 = vld [vmem:[#allocation2 + $0x150] sm:$0xff] }
 0x184   : > { %v2580_v17 = vld [vmem:[#allocation3 + $0x5] sm:$0xff] }
 0x185   : > { %v827_v18 = vpop.permute.xlu1 %826 }
 0x186   : > { %v663_v19 = vpop.permute.xlu0 %662  ;;  %v1511_v20 = vld [vmem:[#allocation2 + $0x158] sm:$0xff] }
 0x187   : > { %719 = vst.msk [vmem:[#allocation2 + $0x170] sm:$0xff] %vm688_vm2, %v663_v19  ;;  %1896 = vmatprep.mubr.bf16.mxu0 %v1511_v20 }
 0x188   : > { %v1794_v21 = vpop.f32.mrb[4].mxu0  ;;  %866 = vst.msk [vmem:[#allocation2 + $0x170] sm:$0xff] %vm850_vm4, %v827_v18  ;;  %1897 = vmatmul.mubr.bf16.gmra.mrb[56].mxu0 %v1510_v23  ;;  %v2581_v18 = vld [vmem:[#allocation3 + $0xd] sm:$0xff] }
 0x189   : > { %v1796_v27 = vpop.f32.mrb[5].mxu0  ;;  %v373_v29 = vpop.permute.xlu1 %372  ;;  %v1515_v30 = vld [vmem:[#allocation2 + $0x178] sm:$0xff]  ;;  %v1795_v26 = vadd.f32 %v6513_v25, %v1794_v21  ;;  %v2616_v21 = vpack.c.bf16 %v2581_v18, %v2580_v17  ;;  %v5370_v18 = vld [vmem:[%s7885_s2 + $0x80] sm:$0xff]  }
 0x18a   : > { %v1797_v22 = vpop.f32.mrb[6].mxu0  ;;  %v972_v31 = vpop.permute.xlu0 %971  ;;  %412 = vst.msk [vmem:[#allocation2 + $0x168] sm:$0xff] %vm396_vm3, %v373_v29  ;;  %v1512_v24 = vld [vmem:[#allocation2 + $0x160] sm:$0xff]  ;;  %5250 = vmatprep.subr.bf16.mxu0 %v5370_v18 }
 0x18b   : > { %v1799_v32 = vpop.f32.mrb[7].mxu0  ;;  %1011 = vst.msk [vmem:[#allocation2 + $0x170] sm:$0xff] %vm995_vm5, %v972_v31  ;;  %v5216_v33 = vpop.f32.mrb[0].mxu1  ;;  %5242 = vmatprep.mubr.msk.bf16.mxu1 %vm1693_vm12, %v1512_v24  ;;  %v1798_v34 = vadd.f32 %v6513_v25, %v1797_v22  ;;  %5251 = vmatpush3.bf16.msra.mxu0 %v5370_v18 }
 0x18c   : > { %v6522_v35 = vadd.f32 %v5216_v33, %v1795_v26  ;;  %v1963_v36 = vpop.f32.mrb[1].mxu1  ;;  %5243 = vmatmul.mubr.msk.bf16.gmra.mrb[28].mxu1 %vm1693_vm12, %v1515_v30  ;;  %2634 = vst.msk [vmem:[#allocation4] sm:$0xff] %vm1287_vm10, %v2616_v21 }
 0x18d   : > { %v6526_v38 = vadd.f32 %v1963_v36, %v1787_v28  ;;  %v5217_v39 = vpop.f32.mrb[2].mxu1  ;;  %v518_v40 = vpop.permute.xlu1 %517 }
 0x18e   : > { %v5040_v41 = vmul.f32 -1.442695, %v6522_v35  ;;  %v6529_v42 = vadd.f32 %v5217_v39, %v1798_v34  ;;  %v1117_v43 = vpop.permute.xlu0 %1116  ;;  %v1966_v44 = vpop.f32.mrb[3].mxu1  ;;  %557 = vst.msk [vmem:[#allocation2 + $0x168] sm:$0xff] %vm541_vm6, %v518_v40 }
 0x18f   : > { %v5038_v45 = vmul.f32 -1.442695, %v6526_v38  ;;  %1156 = vst.msk [vmem:[#allocation2 + $0x170] sm:$0xff] %vm1140_vm7, %v1117_v43  ;;  %v6534_v46 = vadd.f32 %v1966_v44, %v1790_v37 }
 0x190   : > { %7952 = vst [vmem:[#allocation8_spill] sm:$0xff] %v6529_v42  ;;  %718 = vst.msk [vmem:[#allocation2 + $0x168] sm:$0xff] %vm686_vm8, %v663_v19  ;;  %5388 = vpow2.f32 %v5040_v41  ;;  %v5041_v47 = vmul.f32 -1.442695, %v6529_v42 }
 0x191   : > { %1317 = vst.msk [vmem:[#allocation2 + $0x170] sm:$0xff] %vm1285_vm9, %v1262_v13  ;;  %5390 = vpow2.f32 %v5038_v45  ;;  %v5039_v48 = vmul.f32 -1.442695, %v6534_v46  ;;  %v829_v49 = vpop.permute.xlu1 %828 }
 0x192   : > { %5392 = vpow2.f32 %v5041_v47  ;;  %v665_v50 = vpop.permute.xlu0 %664 }
 0x193   : > { %5394 = vpow2.f32 %v5039_v48  ;;  %721 = vst.msk [vmem:[#allocation2 + $0x188] sm:$0xff] %vm688_vm2, %v665_v50 }
 0x194   : > { %867 = vst.msk [vmem:[#allocation2 + $0x188] sm:$0xff] %vm850_vm4, %v829_v49 }
 0x195   : > { %v375_v51 = vpop.permute.xlu1 %374 }
 0x196   : > { %v974_v52 = vpop.permute.xlu0 %973  ;;  %413 = vst.msk [vmem:[#allocation2 + $0x180] sm:$0xff] %vm396_vm3, %v375_v51 }
 0x197   : > { %v1513_v53 = vld [vmem:[#allocation2 + $0x168] sm:$0xff]  ;;  %1012 = vst.msk [vmem:[#allocation2 + $0x188] sm:$0xff] %vm995_vm5, %v974_v52 }
 0x198   : > { %v1514_v54 = vld [vmem:[#allocation2 + $0x170] sm:$0xff] }
 0x199   : > { %1904 = vmatprep.mubr.bf16.mxu0 %v1514_v54  ;;  %v520_v55 = vpop.permute.xlu1 %519 }
 0x19a   : > { %1905 = vmatmul.mubr.bf16.gmra.mrb[60].mxu0 %v1513_v53  ;;  %v5389_v57 = vpop.eup %5388  ;;  %v1119_v58 = vpop.permute.xlu0 %1118  ;;  %558 = vst.msk [vmem:[#allocation2 + $0x180] sm:$0xff] %vm541_vm6, %v520_v55 }
 0x19b   : > { %v5391_v56 = vpop.eup %5390  ;;  %1157 = vst.msk [vmem:[#allocation2 + $0x188] sm:$0xff] %vm1140_vm7, %v1119_v58  ;;  %v1802_v59 = vpop.f32.mrb[8].mxu0  ;;  %v2216_v3 = vadd.f32 1.0, %v5389_v57 }
 0x19c   : > { %720 = vst.msk [vmem:[#allocation2 + $0x180] sm:$0xff] %vm686_vm8, %v665_v50  ;;  %v5393_v60 = vpop.eup %5392  ;;  %v2214_v61 = vadd.f32 1.0, %v5391_v56  ;;  %v1804_v62 = vpop.f32.mrb[9].mxu0  ;;  %v1803_v7 = vadd.f32 %v6513_v25, %v1802_v59 }
 0x19d   : > { %v5395_v63 = vpop.eup %5394  ;;  %v1805_v0 = vpop.f32.mrb[10].mxu0  ;;  %v2217_v9 = vadd.f32 1.0, %v5393_v60 }
 0x19e   : > { %v6547_v2 = vpop.permute.xlu1 %1265  ;;  %5396 = vrcp.f32 %v2214_v61  ;;  %v2215_v4 = vadd.f32 1.0, %v5395_v63  ;;  %v1264_v5 = vpop.permute.xlu0 %1263  ;;  %v1806_v11 = vadd.f32 %v6513_v25, %v1805_v0 }
 0x19f   : > { %1322 = vst.msk [vmem:[#allocation2 + $0x1a8] sm:$0xff] %vm1287_vm10, %v6547_v2  ;;  %v1807_v6 = vpop.f32.mrb[11].mxu0  ;;  %1320 = vst.msk [vmem:[#allocation2 + $0x190] sm:$0xff] %vm1287_vm10, %v1264_v5  ;;  %v5220_v8 = vpop.f32.mrb[4].mxu1 }
 0x1a0   : > { %1319 = vst.msk [vmem:[#allocation2 + $0x188] sm:$0xff] %vm1285_vm9, %v1264_v5  ;;  %5398 = vrcp.f32 %v2215_v4  ;;  %v1979_v10 = vpop.f32.mrb[5].mxu1 }
 0x1a1   : > { %v6555_v12 = vadd.f32 %v1979_v10, %v1803_v7  ;;  %v5221_v13 = vpop.f32.mrb[6].mxu1  ;;  %5400 = vrcp.f32 %v2216_v3 }
 0x1a2   : > { %v1430_v14 = vpop.permute.xlu1 %1429  ;;  %v1428_v15 = vpop.permute.xlu0 %1427  ;;  %5402 = vrcp.f32 %v2217_v9 }
 0x1a3   : > { %7953 = vst [vmem:[#allocation9_spill] sm:$0xff] %v6555_v12  ;;  %v1982_v16 = vpop.f32.mrb[7].mxu1  ;;  %1467 = vst.msk [vmem:[#allocation2 + $0x1a8] sm:$0xff] %vm1449_vm11, %v1430_v14  ;;  %v5042_v19 = vmul.f32 -1.442695, %v6555_v12  ;;  %v1516_v30 = vld [vmem:[#allocation2 + $0x180] sm:$0xff] }
 0x1a4   : > { %1466 = vst.msk [vmem:[#allocation2 + $0x190] sm:$0xff] %vm1449_vm11, %v1428_v15  ;;  %v6560_v20 = vadd.f32 %v1982_v16, %v1806_v11 }
 0x1a5   : > { %5404 = vpow2.f32 %v5042_v19 }
 0x1a6   : > { %7954 = vst [vmem:[#allocation10_spill] sm:$0xff] %v6560_v20  ;;  %v5043_v23 = vmul.f32 -1.442695, %v6560_v20  ;;  %v831_v27 = vpop.permute.xlu1 %830  ;;  %v667_v22 = vpop.permute.xlu0 %666 }
 0x1a7   : > { %v1517_v29 = vld [vmem:[#allocation2 + $0x188] sm:$0xff]  ;;  %723 = vst.msk [vmem:[#allocation2 + $0x1a0] sm:$0xff] %vm688_vm2, %v667_v22  ;;  %vm4851_vm2 = vcmask 261123  }
 0x1a8   : > { %5406 = vpow2.f32 %v5043_v23  ;;  %1912 = vmatprep.mubr.bf16.mxu0 %v1517_v29  ;;  %v6565_v26 = vpop.eup %5396  ;;  %868 = vst.msk [vmem:[#allocation2 + $0x1a0] sm:$0xff] %vm850_vm4, %v831_v27  ;;  %v5371_v27 = vld [vmem:[%s7885_s2 + $0x88] sm:$0xff]   ;;  %vm4857_vm4 = vcmask 261125  }
 0x1a9   : > { %1913 = vmatmul.mubr.bf16.gmra.mrb[64].mxu0 %v1516_v30  ;;  %2400 = vrot.lane.b32.xlu0 %v6565_v26, %s5646_s28 }
 0x1aa   : > { %v377_v31 = vpop.permute.xlu1 %376  ;;  %v1521_v32 = vld [vmem:[#allocation2 + $0x1a8] sm:$0xff]  ;;  %v6570_v24 = vpop.eup %5398  ;;  %5252 = vmatprep.subr.bf16.mxu0 %v5371_v27 }
 0x1ab   : > { %v976_v28 = vpop.permute.xlu0 %975  ;;  %414 = vst.msk [vmem:[#allocation2 + $0x198] sm:$0xff] %vm396_vm3, %v377_v31  ;;  %v1518_v33 = vld [vmem:[#allocation2 + $0x190] sm:$0xff]  ;;  %2402 = vrot.lane.b32.xlu1 %v6570_v24, %s5646_s28  ;;  %v6577_v34 = vpop.eup %5400  ;;  %5253 = vmatpush3.bf16.msra.mxu0 %v5371_v27  ;;  %vm4854_vm3 = vcmask 256000  }
 0x1ac   : > { %1013 = vst.msk [vmem:[#allocation2 + $0x1a0] sm:$0xff] %vm995_vm5, %v976_v28  ;;  %5246 = vmatprep.mubr.msk.bf16.mxu1 %vm1693_vm12, %v1518_v33  ;;  %v6583_v41 = vpop.eup %5402  ;;  %vm4860_vm5 = vcmask 258048  }
 0x1ad   : > { %v1810_v36 = vpop.f32.mrb[12].mxu0  ;;  %5247 = vmatmul.mubr.msk.bf16.gmra.mrb[32].mxu1 %vm1693_vm12, %v1521_v32  ;;  %2404 = vrot.lane.b32.xlu0 %v6577_v34, %s5646_s28 }
 0x1ae   : > { %v1811_v37 = vadd.f32 %v6513_v25, %v1810_v36  ;;  %v1812_v39 = vpop.f32.mrb[13].mxu0  ;;  %v522_v40 = vpop.permute.xlu1 %521 }
 0x1af   : > { %v1121_v43 = vpop.permute.xlu0 %1120  ;;  %559 = vst.msk [vmem:[#allocation2 + $0x198] sm:$0xff] %vm541_vm6, %v522_v40  ;;  %v1813_v44 = vpop.f32.mrb[14].mxu0  ;;  %2406 = vrot.lane.b32.xlu1 %v6583_v41, %s5646_s28  ;;  %vm4863_vm6 = vcmask 261127  }
 0x1b0   : > { %v5405_v45 = vpop.eup %5404  ;;  %v6586_v47 = vadd.f32 %v5220_v8, %v1811_v37  ;;  %1158 = vst.msk [vmem:[#allocation2 + $0x1a0] sm:$0xff] %vm1140_vm7, %v1121_v43  ;;  %v1814_v48 = vadd.f32 %v6513_v25, %v1813_v44  ;;  %v1815_v49 = vpop.f32.mrb[15].mxu0  ;;  %vm4866_vm7 = vcmask 260096  }
 0x1b1   : > { %722 = vst.msk [vmem:[#allocation2 + $0x198] sm:$0xff] %vm686_vm8, %v667_v22  ;;  %v2218_v50 = vadd.f32 1.0, %v5405_v45 }
 0x1b2   : > { %7955 = vst [vmem:[#allocation11_spill] sm:$0xff] %v6586_v47  ;;  %1321 = vst.msk [vmem:[#allocation2 + $0x1a0] sm:$0xff] %vm1285_vm9, %v6547_v2  ;;  %v5407_v51 = vpop.eup %5406  ;;  %v5044_v52 = vmul.f32 -1.442695, %v6586_v47  ;;  %v6596_v53 = vadd.f32 %v5221_v13, %v1814_v48 }
 0x1b3   : > { %5408 = vrcp.f32 %v2218_v50  ;;  %v2219_v54 = vadd.f32 1.0, %v5407_v51  ;;  %v2725_v55 = vpop.permute.xlu0 %2724 }
 0x1b4   : > { %7956 = vst [vmem:[#allocation12_spill] sm:$0xff] %v6596_v53  ;;  %5410 = vpow2.f32 %v5044_v52  ;;  %v5045_v57 = vmul.f32 -1.442695, %v6596_v53  ;;  %2779 = vst.msk [vmem:[#allocation4] sm:$0xff] %vm2778_vm13, %v2725_v55 }
 0x1b5   : > { %5412 = vrcp.f32 %v2219_v54 }
 0x1b6   : > { %5414 = vpow2.f32 %v5045_v57 }
 0x1b7   : > { %v2870_v56 = vpop.permute.xlu0 %2869 }
 0x1b8   : > { %v1519_v58 = vld [vmem:[#allocation2 + $0x198] sm:$0xff]  ;;  %2924 = vst.msk [vmem:[#allocation4] sm:$0xff] %vm2923_vm14, %v2870_v56 }
 0x1b9   : > { %v1520_v59 = vld [vmem:[#allocation2 + $0x1a0] sm:$0xff] }
 0x1ba   : > { %1920 = vmatprep.mubr.bf16.mxu0 %v1520_v59 }
 0x1bb   : > { %1921 = vmatmul.mubr.bf16.gmra.mrb[68].mxu0 %v1519_v58  ;;  %v1818_v60 = vpop.f32.mrb[16].mxu0 }
 0x1bc   : > { %v1820_v62 = vpop.f32.mrb[17].mxu0  ;;  %v1819_v6 = vadd.f32 %v6513_v25, %v1818_v60 }
 0x1bd   : > { %v6601_v61 = vpop.eup %5408  ;;  %v1821_v0 = vpop.f32.mrb[18].mxu0 }
 0x1be   : > { %v5411_v63 = vpop.eup %5410  ;;  %2408 = vrot.lane.b32.xlu0 %v6601_v61, %s5646_s28  ;;  %v1823_v4 = vpop.f32.mrb[19].mxu0  ;;  %v1822_v10 = vadd.f32 %v6513_v25, %v1821_v0 }
 0x1bf   : > { %v6605_v2 = vpop.eup %5412  ;;  %v2220_v3 = vadd.f32 1.0, %v5411_v63  ;;  %v5224_v7 = vpop.f32.mrb[8].mxu1 }
 0x1c0   : > { %v5415_v5 = vpop.eup %5414  ;;  %2410 = vrot.lane.b32.xlu1 %v6605_v2, %s5646_s28  ;;  %v1995_v9 = vpop.f32.mrb[9].mxu1 }
 0x1c1   : > { %5416 = vrcp.f32 %v2220_v3  ;;  %v2221_v8 = vadd.f32 1.0, %v5415_v5  ;;  %v6611_v11 = vadd.f32 %v1995_v9, %v1819_v6  ;;  %v5225_v13 = vpop.f32.mrb[10].mxu1 }
 0x1c2   : > { %v1998_v14 = vpop.f32.mrb[11].mxu1 }
 0x1c3   : > { %7957 = vst [vmem:[#allocation13_spill] sm:$0xff] %v6611_v11  ;;  %5418 = vrcp.f32 %v2221_v8  ;;  %v5046_v15 = vmul.f32 -1.442695, %v6611_v11  ;;  %v6614_v16 = vadd.f32 %v1998_v14, %v1822_v10  ;;  %v5384_v11 = vld [vmem:[%s7885_s2 + $0x60] sm:$0xff]  }
 0x1c5   : > { %7958 = vst [vmem:[#allocation14_spill] sm:$0xff] %v6614_v16  ;;  %5420 = vpow2.f32 %v5046_v15  ;;  %v5047_v17 = vmul.f32 -1.442695, %v6614_v16 }
 0x1c7   : > { %5422 = vpow2.f32 %v5047_v17 }
 0x1cb   : > { %v6620_v19 = vpop.eup %5416 }
 0x1cc   : > { %2412 = vrot.lane.b32.xlu0 %v6620_v19, %s5646_s28 }
 0x1cd   : > { %v6624_v21 = vpop.eup %5418  ;;  %v1826_v23 = vpop.f32.mrb[20].mxu0 }
 0x1ce   : > { %v1827_v22 = vadd.f32 %v6513_v25, %v1826_v23  ;;  %v1828_v29 = vpop.f32.mrb[21].mxu0  ;;  %2414 = vrot.lane.b32.xlu1 %v6624_v21, %s5646_s28 }
 0x1cf   : > { %v1829_v30 = vpop.f32.mrb[22].mxu0  ;;  %v5421_v31 = vpop.eup %5420 }
 0x1d0   : > { %v6632_v32 = vadd.f32 %v5224_v7, %v1827_v22  ;;  %v1830_v28 = vadd.f32 %v6513_v25, %v1829_v30  ;;  %v1831_v33 = vpop.f32.mrb[23].mxu0  ;;  %v2222_v36 = vadd.f32 1.0, %v5421_v31 }
 0x1d1   : > { %v5423_v37 = vpop.eup %5422 }
 0x1d2   : > { %7959 = vst [vmem:[#allocation15_spill] sm:$0xff] %v6632_v32  ;;  %v5048_v39 = vmul.f32 -1.442695, %v6632_v32  ;;  %v6636_v40 = vadd.f32 %v5225_v13, %v1830_v28  ;;  %5424 = vrcp.f32 %v2222_v36  ;;  %v2223_v43 = vadd.f32 1.0, %v5423_v37 }
 0x1d4   : > { %7960 = vst [vmem:[#allocation16_spill] sm:$0xff] %v6636_v40  ;;  %5426 = vpow2.f32 %v5048_v39  ;;  %v5049_v44 = vmul.f32 -1.442695, %v6636_v40 }
 0x1d5   : > { %5428 = vrcp.f32 %v2223_v43 }
 0x1d6   : > { %5430 = vpow2.f32 %v5049_v44 }
 0x1db   : > { %v1834_v45 = vpop.f32.mrb[24].mxu0 }
 0x1dc   : > { %v6639_v48 = vpop.eup %5424  ;;  %v1836_v49 = vpop.f32.mrb[25].mxu0  ;;  %v1835_v58 = vadd.f32 %v6513_v25, %v1834_v45 }
 0x1dd   : > { %v1837_v51 = vpop.f32.mrb[26].mxu0  ;;  %2416 = vrot.lane.b32.xlu0 %v6639_v48, %s5646_s28 }
 0x1de   : > { %v5427_v50 = vpop.eup %5426  ;;  %v1839_v55 = vpop.f32.mrb[27].mxu0  ;;  %v1838_v62 = vadd.f32 %v6513_v25, %v1837_v51 }
 0x1df   : > { %v6643_v52 = vpop.eup %5428  ;;  %v2224_v54 = vadd.f32 1.0, %v5427_v50  ;;  %v5228_v56 = vpop.f32.mrb[12].mxu1 }
 0x1e0   : > { %7961 = vst [vmem:[#allocation17_spill] sm:$0xff] %v6643_v52  ;;  %v5431_v57 = vpop.eup %5430  ;;  %2418 = vrot.lane.b32.xlu1 %v6643_v52, %s5646_s28  ;;  %v2011_v60 = vpop.f32.mrb[13].mxu1 }
 0x1e1   : > { %5432 = vrcp.f32 %v2224_v54  ;;  %v2225_v59 = vadd.f32 1.0, %v5431_v57  ;;  %v6649_v63 = vadd.f32 %v2011_v60, %v1835_v58  ;;  %v5229_v0 = vpop.f32.mrb[14].mxu1 }
 0x1e2   : > { %v2014_v3 = vpop.f32.mrb[15].mxu1 }
 0x1e3   : > { %7962 = vst [vmem:[#allocation18_spill] sm:$0xff] %v6649_v63  ;;  %5434 = vrcp.f32 %v2225_v59  ;;  %v5050_v4 = vmul.f32 -1.442695, %v6649_v63  ;;  %v6652_v5 = vadd.f32 %v2014_v3, %v1838_v62 }
 0x1e5   : > { %7963 = vst [vmem:[#allocation19_spill] sm:$0xff] %v6652_v5  ;;  %5436 = vpow2.f32 %v5050_v4  ;;  %v5051_v6 = vmul.f32 -1.442695, %v6652_v5  ;;  %v2337_v5 = vld [vmem:[%s5736_s9 + $0x90] sm:$0xff] }
 0x1e7   : > { %5438 = vpow2.f32 %v5051_v6 }
 0x1eb   : > { %v6655_v7 = vpop.eup %5432 }
 0x1ec   : > { %7964 = vst [vmem:[#allocation20_spill] sm:$0xff] %v6655_v7  ;;  %2420 = vrot.lane.b32.xlu0 %v6655_v7, %s5646_s28 }
 0x1ed   : > { %v6659_v8 = vpop.eup %5434  ;;  %v1842_v9 = vpop.f32.mrb[28].mxu0 }
 0x1ee   : > { %7965 = vst [vmem:[#allocation21_spill] sm:$0xff] %v6659_v8  ;;  %v1843_v10 = vadd.f32 %v6513_v25, %v1842_v9  ;;  %v1844_v13 = vpop.f32.mrb[29].mxu0  ;;  %2422 = vrot.lane.b32.xlu1 %v6659_v8, %s5646_s28 }
 0x1ef   : > { %v1845_v14 = vpop.f32.mrb[30].mxu0  ;;  %v5437_v15 = vpop.eup %5436 }
 0x1f0   : > { %v6664_v17 = vadd.f32 %v5228_v56, %v1843_v10  ;;  %v1846_v18 = vadd.f32 %v6513_v25, %v1845_v14  ;;  %v1847_v23 = vpop.f32.mrb[31].mxu0  ;;  %v2226_v27 = vadd.f32 1.0, %v5437_v15 }
 0x1f1   : > { %v5439_v22 = vpop.eup %5438 }
 0x1f2   : > { %7966 = vst [vmem:[#allocation22_spill] sm:$0xff] %v6664_v17  ;;  %v5052_v29 = vmul.f32 -1.442695, %v6664_v17  ;;  %v6668_v30 = vadd.f32 %v5229_v0, %v1846_v18  ;;  %5440 = vrcp.f32 %v2226_v27  ;;  %v2227_v31 = vadd.f32 1.0, %v5439_v22 }
 0x1f4   : > { %7967 = vst [vmem:[#allocation23_spill] sm:$0xff] %v6668_v30  ;;  %5442 = vpow2.f32 %v5052_v29  ;;  %v5053_v28 = vmul.f32 -1.442695, %v6668_v30 }
 0x1f5   : > { %5444 = vrcp.f32 %v2227_v31 }
 0x1f6   : > { %5446 = vpow2.f32 %v5053_v28 }
 0x1fb   : > { %v1850_v33 = vpop.f32.mrb[32].mxu0 }
 0x1fc   : > { %v6671_v36 = vpop.eup %5440  ;;  %v1852_v37 = vpop.f32.mrb[33].mxu0  ;;  %v1851_v51 = vadd.f32 %v6513_v25, %v1850_v33 }
 0x1fd   : > { %7968 = vst [vmem:[#allocation24_spill] sm:$0xff] %v6671_v36  ;;  %v1853_v43 = vpop.f32.mrb[34].mxu0  ;;  %2424 = vrot.lane.b32.xlu0 %v6671_v36, %s5646_s28 }
 0x1fe   : > { %v5443_v39 = vpop.eup %5442  ;;  %v1855_v49 = vpop.f32.mrb[35].mxu0  ;;  %v1854_v58 = vadd.f32 %v6513_v25, %v1853_v43 }
 0x1ff   : > { %v6675_v44 = vpop.eup %5444  ;;  %v2228_v45 = vadd.f32 1.0, %v5443_v39  ;;  %v5232_v54 = vpop.f32.mrb[16].mxu1 }
 0x200   : > { %7969 = vst [vmem:[#allocation25_spill] sm:$0xff] %v6675_v44  ;;  %v5447_v50 = vpop.eup %5446  ;;  %2426 = vrot.lane.b32.xlu1 %v6675_v44, %s5646_s28  ;;  %v2027_v57 = vpop.f32.mrb[17].mxu1 }
 0x201   : > { %5448 = vrcp.f32 %v2228_v45  ;;  %v2229_v55 = vadd.f32 1.0, %v5447_v50  ;;  %v6681_v56 = vadd.f32 %v2027_v57, %v1851_v51  ;;  %v5233_v59 = vpop.f32.mrb[18].mxu1  ;;  %v6703_v39 = vpop.permute.xlu0 %3409  ;;  %v2322_v45 = vld [vmem:[%s5736_s9 + $0x18] sm:$0xff] }
 0x202   : > { %v2030_v60 = vpop.f32.mrb[19].mxu1 }
 0x203   : > { %7970 = vst [vmem:[#allocation26_spill] sm:$0xff] %v6681_v56  ;;  %5450 = vrcp.f32 %v2229_v55  ;;  %v5054_v62 = vmul.f32 -1.442695, %v6681_v56  ;;  %v6684_v0 = vadd.f32 %v2030_v60, %v1854_v58  ;;  %v2323_v58 = vld [vmem:[%s5736_s9 + $0x20] sm:$0xff] }
 0x205   : > { %7971 = vst [vmem:[#allocation27_spill] sm:$0xff] %v6684_v0  ;;  %5452 = vpow2.f32 %v5054_v62  ;;  %v5055_v3 = vmul.f32 -1.442695, %v6684_v0 }
 0x207   : > { %5454 = vpow2.f32 %v5055_v3 }
 0x20b   : > { %v6687_v4 = vpop.eup %5448 }
 0x20c   : > { %7972 = vst [vmem:[#allocation28_spill] sm:$0xff] %v6687_v4  ;;  %2428 = vrot.lane.b32.xlu0 %v6687_v4, %s5646_s28 }
 0x20d   : > { %v6691_v6 = vpop.eup %5450  ;;  %v1858_v9 = vpop.f32.mrb[36].mxu0 }
 0x20e   : > { %7973 = vst [vmem:[#allocation29_spill] sm:$0xff] %v6691_v6  ;;  %v1859_v10 = vadd.f32 %v6513_v25, %v1858_v9  ;;  %v1860_v13 = vpop.f32.mrb[37].mxu0  ;;  %2430 = vrot.lane.b32.xlu1 %v6691_v6, %s5646_s28 }
 0x20f   : > { %v1861_v14 = vpop.f32.mrb[38].mxu0  ;;  %v5453_v15 = vpop.eup %5452 }
 0x210   : > { %v6696_v18 = vadd.f32 %v5232_v54, %v1859_v10  ;;  %v1862_v23 = vadd.f32 %v6513_v25, %v1861_v14  ;;  %v1863_v27 = vpop.f32.mrb[39].mxu0  ;;  %v2230_v22 = vadd.f32 1.0, %v5453_v15  ;;  %v2324_v15 = vld [vmem:[%s5736_s9 + $0x28] sm:$0xff] }
 0x211   : > { %v5455_v29 = vpop.eup %5454 }
 0x212   : > { %7974 = vst [vmem:[#allocation30_spill] sm:$0xff] %v6696_v18  ;;  %v5056_v31 = vmul.f32 -1.442695, %v6696_v18  ;;  %v6700_v28 = vadd.f32 %v5233_v59, %v1862_v23  ;;  %5456 = vrcp.f32 %v2230_v22  ;;  %v2231_v33 = vadd.f32 1.0, %v5455_v29  ;;  %v2333_v18 = vld [vmem:[%s5736_s9 + $0x70] sm:$0xff] }
 0x214   : > { %7975 = vst [vmem:[#allocation31_spill] sm:$0xff] %v6700_v28  ;;  %5458 = vpow2.f32 %v5056_v31  ;;  %v5057_v37 = vmul.f32 -1.442695, %v6700_v28 }
 0x215   : > { %5460 = vrcp.f32 %v2231_v33 }
 0x216   : > { %5462 = vpow2.f32 %v5057_v37 }
 0x21b   : > { %v1866_v43 = vpop.f32.mrb[40].mxu0  ;;  %v2401_v49 = vpop.permute.xlu0 %2400 }
 0x21c   : > { %v6706_v50 = vpop.eup %5456  ;;  %v2508_v51 = vmul.f32 %v2401_v49, %v2322_v45  ;;  %v1868_v54 = vpop.f32.mrb[41].mxu0  ;;  %v1867_v13 = vadd.f32 %v6513_v25, %v1866_v43  ;;  %v2325_v45 = vld [vmem:[%s5736_s9 + $0x30] sm:$0xff] }
 0x21d   : > { %7976 = vst [vmem:[#allocation32_spill] sm:$0xff] %v6706_v50  ;;  %v1869_v57 = vpop.f32.mrb[42].mxu0  ;;  %v2403_v59 = vpop.permute.xlu1 %2402  ;;  %2432 = vrot.lane.b32.xlu0 %v6706_v50, %s5646_s28 }
 0x21e   : > { %v5459_v55 = vpop.eup %5458  ;;  %2544 = vst.msk [vmem:[#allocation3 + $0x18] sm:$0xff] %vm1287_vm10, %v2508_v51  ;;  %v2509_v3 = vmul.f32 %v2403_v59, %v2323_v58  ;;  %v1871_v9 = vpop.f32.mrb[43].mxu0  ;;  %v1870_v31 = vadd.f32 %v6513_v25, %v1869_v57 }
 0x21f   : > { %v6711_v60 = vpop.eup %5460  ;;  %v2232_v62 = vadd.f32 1.0, %v5459_v55  ;;  %v5236_v14 = vpop.f32.mrb[20].mxu1 }
 0x220   : > { %7977 = vst [vmem:[#allocation33_spill] sm:$0xff] %v6711_v60  ;;  %v5463_v10 = vpop.eup %5462  ;;  %2434 = vrot.lane.b32.xlu1 %v6711_v60, %s5646_s28  ;;  %v2405_v23 = vpop.permute.xlu0 %2404  ;;  %2545 = vst.msk [vmem:[#allocation3 + $0x20] sm:$0xff] %vm1287_vm10, %v2509_v3 }
 0x221   : > { %5464 = vrcp.f32 %v2232_v62  ;;  %v2233_v27 = vadd.f32 1.0, %v5463_v10  ;;  %v2510_v22 = vmul.f32 %v2405_v23, %v2324_v15  ;;  %v2043_v29 = vpop.f32.mrb[21].mxu1  ;;  %v2407_v49 = vpop.permute.xlu1 %2406 }
 0x222   : > { %v6720_v33 = vadd.f32 %v2043_v29, %v1867_v13  ;;  %v5237_v37 = vpop.f32.mrb[22].mxu1  ;;  %v2511_v43 = vmul.f32 %v2407_v49, %v2325_v45 }
 0x223   : > { %5466 = vrcp.f32 %v2233_v27  ;;  %2546 = vst.msk [vmem:[#allocation3 + $0x28] sm:$0xff] %vm1287_vm10, %v2510_v22  ;;  %v2046_v51 = vpop.f32.mrb[23].mxu1 }
 0x224   : > { %7978 = vst [vmem:[#allocation34_spill] sm:$0xff] %v6720_v33  ;;  %v5058_v54 = vmul.f32 -1.442695, %v6720_v33  ;;  %v6725_v55 = vadd.f32 %v2046_v51, %v1870_v31  ;;  %2547 = vst.msk [vmem:[#allocation3 + $0x30] sm:$0xff] %vm1287_vm10, %v2511_v43 }
 0x225   : > { %v2582_v57 = vld [vmem:[#allocation3 + $0x15] sm:$0xff] }
 0x226   : > { %7979 = vst [vmem:[#allocation35_spill] sm:$0xff] %v6725_v55  ;;  %5468 = vpow2.f32 %v5058_v54  ;;  %v5059_v58 = vmul.f32 -1.442695, %v6725_v55  ;;  %v3087_v62 = vld [vmem:[#allocation3 + $0x18] sm:$0xff] }
 0x227   : > { %v2583_v59 = vld [vmem:[#allocation3 + $0x1d] sm:$0xff] }
 0x228   : > { %5470 = vpow2.f32 %v5059_v58  ;;  %v3088_v3 = vld [vmem:[#allocation3 + $0x20] sm:$0xff]  ;;  %v2617_v9 = vpack.c.bf16 %v2583_v59, %v2582_v57 }
 0x229   : > { %v3123_v10 = vpack.c.bf16 %v3088_v3, %v3087_v62  ;;  %v2326_v3 = vld [vmem:[%s5736_s9 + $0x38] sm:$0xff] }
 0x22a   : > { %2635 = vst.msk [vmem:[#allocation4 + $0x18] sm:$0xff] %vm1287_vm10, %v2617_v9  ;;  %v2584_v27 = vld [vmem:[#allocation3 + $0x25] sm:$0xff] }
 0x22b   : > { %v6729_v13 = vpop.eup %5464  ;;  %3141 = vst.msk [vmem:[#allocation4 + $0x8] sm:$0xff] %vm1287_vm10, %v3123_v10  ;;  %v2585_v22 = vld [vmem:[#allocation3 + $0x2d] sm:$0xff] }
 0x22c   : > { %7980 = vst [vmem:[#allocation36_spill] sm:$0xff] %v6729_v13  ;;  %2436 = vrot.lane.b32.xlu0 %v6729_v13, %s5646_s28  ;;  %v2618_v45 = vpack.c.bf16 %v2585_v22, %v2584_v27  ;;  %v3089_v49 = vld [vmem:[#allocation3 + $0x28] sm:$0xff]  ;;  %v3090_v43 = vld [vmem:[#allocation3 + $0x30] sm:$0xff] }
 0x22d   : > { %v6735_v15 = vpop.eup %5466  ;;  %v1874_v23 = vpop.f32.mrb[44].mxu0  ;;  %v3124_v54 = vpack.c.bf16 %v3090_v43, %v3089_v49  ;;  %v2327_v49 = vld [vmem:[%s5736_s9 + $0x40] sm:$0xff] }
 0x22e   : > { %7981 = vst [vmem:[#allocation37_spill] sm:$0xff] %v6735_v15  ;;  %v1875_v29 = vadd.f32 %v6513_v25, %v1874_v23  ;;  %v1876_v31 = vpop.f32.mrb[45].mxu0  ;;  %2438 = vrot.lane.b32.xlu1 %v6735_v15, %s5646_s28  ;;  %2636 = vst.msk [vmem:[#allocation4 + $0x30] sm:$0xff] %vm1287_vm10, %v2618_v45  ;;  %v3591_v45 = vld [vmem:[#allocation3 + $0x2b] sm:$0xff] }
 0x22f   : > { %v1877_v51 = vpop.f32.mrb[46].mxu0  ;;  %3142 = vst.msk [vmem:[#allocation4 + $0x20] sm:$0xff] %vm1287_vm10, %v3124_v54 }
 0x230   : > { %v5469_v58 = vpop.eup %5468  ;;  %v6740_v57 = vadd.f32 %v5236_v14, %v1875_v29  ;;  %v1878_v59 = vadd.f32 %v6513_v25, %v1877_v51  ;;  %v1879_v62 = vpop.f32.mrb[47].mxu0 }
 0x231   : > { %v2409_v9 = vpop.permute.xlu0 %2408  ;;  %v2234_v10 = vadd.f32 1.0, %v5469_v58 }
 0x232   : > { %7982 = vst [vmem:[#allocation38_spill] sm:$0xff] %v6740_v57  ;;  %v2512_v23 = vmul.f32 %v2409_v9, %v2326_v3  ;;  %v5471_v27 = vpop.eup %5470  ;;  %v5060_v22 = vmul.f32 -1.442695, %v6740_v57  ;;  %v6747_v31 = vadd.f32 %v5237_v37, %v1878_v59  ;;  %v2411_v43 = vpop.permute.xlu1 %2410 }
 0x233   : > { %5472 = vrcp.f32 %v2234_v10  ;;  %v2235_v14 = vadd.f32 1.0, %v5471_v27  ;;  %v2513_v29 = vmul.f32 %v2411_v43, %v2327_v49  ;;  %v2328_v27 = vld [vmem:[%s5736_s9 + $0x48] sm:$0xff] }
 0x234   : > { %7983 = vst [vmem:[#allocation39_spill] sm:$0xff] %v6747_v31  ;;  %2548 = vst.msk [vmem:[#allocation3 + $0x38] sm:$0xff] %vm1287_vm10, %v2512_v23  ;;  %5474 = vpow2.f32 %v5060_v22  ;;  %v5061_v51 = vmul.f32 -1.442695, %v6747_v31  ;;  %v2329_v31 = vld [vmem:[%s5736_s9 + $0x50] sm:$0xff] }
 0x235   : > { %2549 = vst.msk [vmem:[#allocation3 + $0x40] sm:$0xff] %vm1287_vm10, %v2513_v29 }
 0x236   : > { %5476 = vpow2.f32 %v5061_v51 }
 0x237   : > { %5478 = vrcp.f32 %v2235_v14 }
 0x23b   : > { %v3592_v54 = vld [vmem:[#allocation3 + $0x33] sm:$0xff]  ;;  %v1882_v37 = vpop.f32.mrb[48].mxu0 }
 0x23c   : > { %v3627_v58 = vpack.c.bf16 %v3592_v54, %v3591_v45  ;;  %v1884_v62 = vpop.f32.mrb[49].mxu0  ;;  %v2586_v3 = vld [vmem:[#allocation3 + $0x35] sm:$0xff]  ;;  %v2587_v9 = vld [vmem:[#allocation3 + $0x3d] sm:$0xff] }
 0x23d   : > { %v6753_v59 = vpop.eup %5472  ;;  %v1885_v23 = vpop.f32.mrb[50].mxu0  ;;  %v2619_v49 = vpack.c.bf16 %v2587_v9, %v2586_v3  ;;  %v3091_v43 = vld [vmem:[#allocation3 + $0x38] sm:$0xff]  ;;  %v3092_v14 = vld [vmem:[#allocation3 + $0x40] sm:$0xff] }
 0x23e   : > { %7984 = vst [vmem:[#allocation40_spill] sm:$0xff] %v6753_v59  ;;  %3645 = vst.msk [vmem:[#allocation4 + $0x10] sm:$0xff] %vm1287_vm10, %v3627_v58  ;;  %v5475_v10 = vpop.eup %5474  ;;  %2440 = vrot.lane.b32.xlu0 %v6753_v59, %s5646_s28  ;;  %v2413_v22 = vpop.permute.xlu0 %2412  ;;  %v3125_v54 = vpack.c.bf16 %v3092_v14, %v3091_v43  ;;  %v1883_v58 = vadd.f32 %v6513_v25, %v1882_v37 }
 0x23f   : > { %v2236_v29 = vadd.f32 1.0, %v5475_v10  ;;  %v2514_v51 = vmul.f32 %v2413_v22, %v2328_v27  ;;  %v1887_v45 = vpop.f32.mrb[51].mxu0  ;;  %v5240_v62 = vpop.f32.mrb[24].mxu1  ;;  %2637 = vst.msk [vmem:[#allocation4 + $0x48] sm:$0xff] %vm1287_vm10, %v2619_v49  ;;  %v1886_v10 = vadd.f32 %v6513_v25, %v1885_v23  ;;  %v3593_v23 = vld [vmem:[#allocation3 + $0x3b] sm:$0xff] }
 0x240   : > { %v5477_v1 = vpop.eup %5476  ;;  %v2415_v57 = vpop.permute.xlu1 %2414  ;;  %3143 = vst.msk [vmem:[#allocation4 + $0x38] sm:$0xff] %vm1287_vm10, %v3125_v54 }
 0x241   : > { %v6762_v55 = vpop.eup %5478  ;;  %5480 = vrcp.f32 %v2236_v29  ;;  %v2237_v33 = vadd.f32 1.0, %v5477_v1  ;;  %2550 = vst.msk [vmem:[#allocation3 + $0x48] sm:$0xff] %vm1287_vm10, %v2514_v51  ;;  %v2515_v3 = vmul.f32 %v2415_v57, %v2329_v31  ;;  %v2059_v9 = vpop.f32.mrb[25].mxu1 }
 0x242   : > { %7985 = vst [vmem:[#allocation41_spill] sm:$0xff] %v6762_v55  ;;  %v6767_v27 = vadd.f32 %v2059_v9, %v1883_v58  ;;  %v5241_v37 = vpop.f32.mrb[26].mxu1  ;;  %2442 = vrot.lane.b32.xlu0 %v6762_v55, %s5646_s28 }
 0x243   : > { %5482 = vrcp.f32 %v2237_v33  ;;  %2551 = vst.msk [vmem:[#allocation3 + $0x50] sm:$0xff] %vm1287_vm10, %v2515_v3  ;;  %v2062_v22 = vpop.f32.mrb[27].mxu1 }
 0x244   : > { %7986 = vst [vmem:[#allocation42_spill] sm:$0xff] %v6767_v27  ;;  %v5062_v1 = vmul.f32 -1.442695, %v6767_v27  ;;  %v6773_v49 = vadd.f32 %v2062_v22, %v1886_v10  ;;  %v2331_v27 = vld [vmem:[%s5736_s9 + $0x60] sm:$0xff] }
 0x245   : > { %v3665_v57 = vld [vmem:[#allocation4 + $0x10] sm:$0xff] }
 0x246   : > { %7987 = vst [vmem:[#allocation43_spill] sm:$0xff] %v6773_v49  ;;  %5254 = vmatprep.mubr.msk.bf16.mxu0 %vm1287_vm10, %v3665_v57  ;;  %5484 = vpow2.f32 %v5062_v1  ;;  %v5063_v31 = vmul.f32 -1.442695, %v6773_v49 }
 0x248   : > { %v3594_v43 = vld [vmem:[#allocation3 + $0x43] sm:$0xff]  ;;  %5486 = vpow2.f32 %v5063_v31 }
 0x249   : > { %v3628_v14 = vpack.c.bf16 %v3594_v43, %v3593_v23  ;;  %v2588_v33 = vld [vmem:[#allocation3 + $0x45] sm:$0xff] }
 0x24a   : > { %v2589_v51 = vld [vmem:[#allocation3 + $0x4d] sm:$0xff] }
 0x24b   : > { %v6777_v29 = vpop.eup %5480  ;;  %3646 = vst.msk [vmem:[#allocation4 + $0x28] sm:$0xff] %vm1287_vm10, %v3628_v14  ;;  %v2620_v45 = vpack.c.bf16 %v2589_v51, %v2588_v33  ;;  %v3093_v54 = vld [vmem:[#allocation3 + $0x48] sm:$0xff]  ;;  %v3094_v58 = vld [vmem:[#allocation3 + $0x50] sm:$0xff] }
 0x24c   : > { %7988 = vst [vmem:[#allocation44_spill] sm:$0xff] %v6777_v29  ;;  %2444 = vrot.lane.b32.xlu1 %v6777_v29, %s5646_s28  ;;  %v3126_v10 = vpack.c.bf16 %v3094_v58, %v3093_v54  ;;  %v2330_v33 = vld [vmem:[%s5736_s9 + $0x58] sm:$0xff] }
 0x24d   : > { %v6782_v3 = vpop.eup %5482  ;;  %v1890_v9 = vpop.f32.mrb[52].mxu0  ;;  %2638 = vst.msk [vmem:[#allocation4 + $0x60] sm:$0xff] %vm1287_vm10, %v2620_v45  ;;  %v2660_v47 = vld [vmem:[#allocation3 + $0x46] sm:$0xff] }
 0x24e   : > { %7989 = vst [vmem:[#allocation45_spill] sm:$0xff] %v6782_v3  ;;  %v1891_v22 = vadd.f32 %v6513_v25, %v1890_v9  ;;  %v1892_v1 = vpop.f32.mrb[53].mxu0  ;;  %2446 = vrot.lane.b32.xlu0 %v6782_v3, %s5646_s28  ;;  %3144 = vst.msk [vmem:[#allocation4 + $0x50] sm:$0xff] %vm1287_vm10, %v3126_v10 }
 0x24f   : > { %v1893_v57 = vpop.f32.mrb[54].mxu0  ;;  %v2417_v51 = vpop.permute.xlu0 %2416 }
 0x250   : > { %v5485_v31 = vpop.eup %5484  ;;  %v6789_v23 = vadd.f32 %v5240_v62, %v1891_v22  ;;  %v1894_v43 = vadd.f32 %v6513_v25, %v1893_v57  ;;  %v1895_v14 = vpop.f32.mrb[55].mxu0  ;;  %v2516_v58 = vmul.f32 %v2417_v51, %v2330_v33 }
 0x251   : > { %v2238_v54 = vadd.f32 1.0, %v5485_v31 }
 0x252   : > { %7990 = vst [vmem:[#allocation46_spill] sm:$0xff] %v6789_v23  ;;  %v5487_v9 = vpop.eup %5486  ;;  %v5064_v1 = vmul.f32 -1.442695, %v6789_v23  ;;  %v6794_v49 = vadd.f32 %v5241_v37, %v1894_v43  ;;  %v2419_v45 = vpop.permute.xlu1 %2418  ;;  %v3668_v28 = vld [vmem:[#allocation4 + $0x28] sm:$0xff]  ;;  %2552 = vst.msk [vmem:[#allocation3 + $0x58] sm:$0xff] %vm1287_vm10, %v2516_v58  ;;  %v3595_v37 = vld [vmem:[#allocation3 + $0x4b] sm:$0xff] }
 0x253   : > { %5488 = vrcp.f32 %v2238_v54  ;;  %v2239_v10 = vadd.f32 1.0, %v5487_v9  ;;  %v2517_v62 = vmul.f32 %v2419_v45, %v2331_v27  ;;  %5255 = vmatmul.mubr.msk.bf16.vlgmr.msra.gmra.mrb[72].mxu0 %vm1287_vm10, %v3668_v28  ;;  %v2332_v58 = vld [vmem:[%s5736_s9 + $0x68] sm:$0xff] }
 0x254   : > { %7991 = vst [vmem:[#allocation47_spill] sm:$0xff] %v6794_v49  ;;  %5490 = vpow2.f32 %v5064_v1  ;;  %v5065_v22 = vmul.f32 -1.442695, %v6794_v49 }
 0x255   : > { %5492 = vrcp.f32 %v2239_v10  ;;  %2553 = vst.msk [vmem:[#allocation3 + $0x60] sm:$0xff] %vm1287_vm10, %v2517_v62 }
 0x256   : > { %5494 = vpow2.f32 %v5065_v22 }
 0x259   : > { %v3596_v57 = vld [vmem:[#allocation3 + $0x53] sm:$0xff] }
 0x25a   : > { %v3629_v31 = vpack.c.bf16 %v3596_v57, %v3595_v37  ;;  %v2590_v27 = vld [vmem:[#allocation3 + $0x55] sm:$0xff] }
 0x25b   : > { %v1898_v43 = vpop.f32.mrb[56].mxu0  ;;  %v3095_v45 = vld [vmem:[#allocation3 + $0x58] sm:$0xff] }
 0x25c   : > { %3647 = vst.msk [vmem:[#allocation4 + $0x40] sm:$0xff] %vm1287_vm10, %v3629_v31  ;;  %v1900_v33 = vpop.f32.mrb[57].mxu0  ;;  %v2591_v51 = vld [vmem:[#allocation3 + $0x5d] sm:$0xff]  ;;  %v1899_v49 = vadd.f32 %v6513_v25, %v1898_v43  ;;  %v6819_v25 = vld [vmem:[%s7886_s3] ss:$0 sm:$0xff] }
 0x25d   : > { %v6801_v14 = vpop.eup %5488  ;;  %v1901_v54 = vpop.f32.mrb[58].mxu0  ;;  %v2621_v1 = vpack.c.bf16 %v2591_v51, %v2590_v27  ;;  %v3096_v10 = vld [vmem:[#allocation3 + $0x60] sm:$0xff] }
 0x25e   : > { %7992 = vst [vmem:[#allocation48_spill] sm:$0xff] %v6801_v14  ;;  %v5491_v28 = vpop.eup %5490  ;;  %2448 = vrot.lane.b32.xlu1 %v6801_v14, %s5646_s28  ;;  %v2421_v9 = vpop.permute.xlu0 %2420  ;;  %v3127_v31 = vpack.c.bf16 %v3096_v10, %v3095_v45  ;;  %v1902_v43 = vadd.f32 %v6819_v25, %v1901_v54 }
 0x25f   : > { %v6807_v62 = vpop.eup %5492  ;;  %v2240_v22 = vadd.f32 1.0, %v5491_v28  ;;  %v2518_v37 = vmul.f32 %v2421_v9, %v2332_v58  ;;  %v1903_v57 = vpop.f32.mrb[59].mxu0  ;;  %2639 = vst.msk [vmem:[#allocation4 + $0x78] sm:$0xff] %vm1287_vm10, %v2621_v1 }
 0x260   : > { %7993 = vst [vmem:[#allocation49_spill] sm:$0xff] %v6807_v62  ;;  %v5495_v33 = vpop.eup %5494  ;;  %v5244_v23 = vpop.f32.mrb[28].mxu1  ;;  %2450 = vrot.lane.b32.xlu0 %v6807_v62, %s5646_s28  ;;  %3145 = vst.msk [vmem:[#allocation4 + $0x68] sm:$0xff] %vm1287_vm10, %v3127_v31 }
 0x261   : > { %v2423_v0 = vpop.permute.xlu1 %2422  ;;  %5496 = vrcp.f32 %v2240_v22  ;;  %v2241_v27 = vadd.f32 1.0, %v5495_v33  ;;  %2554 = vst.msk [vmem:[#allocation3 + $0x68] sm:$0xff] %vm1287_vm10, %v2518_v37  ;;  %v2075_v28 = vpop.f32.mrb[29].mxu1  ;;  %v3597_v22 = vld [vmem:[#allocation3 + $0x5b] sm:$0xff] }
 0x262   : > { %v2519_v51 = vmul.f32 %v2423_v0, %v2333_v18  ;;  %v6822_v58 = vadd.f32 %v2075_v28, %v1899_v49  ;;  %v5245_v9 = vpop.f32.mrb[30].mxu1 }
 0x263   : > { %5498 = vrcp.f32 %v2241_v27  ;;  %v2078_v1 = vpop.f32.mrb[31].mxu1  ;;  %v3671_v18 = vld [vmem:[#allocation4 + $0x40] sm:$0xff] }
 0x264   : > { %7994 = vst [vmem:[#allocation50_spill] sm:$0xff] %v6822_v58  ;;  %2555 = vst.msk [vmem:[#allocation3 + $0x70] sm:$0xff] %vm1287_vm10, %v2519_v51  ;;  %v5066_v45 = vmul.f32 -1.442695, %v6822_v58  ;;  %v6826_v0 = vadd.f32 %v2078_v1, %v1902_v43  ;;  %5258 = vmatprep.mubr.msk.bf16.mxu0 %vm1287_vm10, %v3671_v18 }
 0x266   : > { %7995 = vst [vmem:[#allocation51_spill] sm:$0xff] %v6826_v0  ;;  %5500 = vpow2.f32 %v5066_v45  ;;  %v5067_v10 = vmul.f32 -1.442695, %v6826_v0 }
 0x268   : > { %v3598_v37 = vld [vmem:[#allocation3 + $0x63] sm:$0xff]  ;;  %5502 = vpow2.f32 %v5067_v10 }
 0x269   : > { %v3630_v49 = vpack.c.bf16 %v3598_v37, %v3597_v22  ;;  %v2592_v57 = vld [vmem:[#allocation3 + $0x65] sm:$0xff] }
 0x26a   : > { %v3097_v27 = vld [vmem:[#allocation3 + $0x68] sm:$0xff] }
 0x26b   : > { %v6830_v54 = vpop.eup %5496  ;;  %3648 = vst.msk [vmem:[#allocation4 + $0x58] sm:$0xff] %vm1287_vm10, %v3630_v49  ;;  %v2593_v31 = vld [vmem:[#allocation3 + $0x6d] sm:$0xff] }
 0x26c   : > { %7996 = vst [vmem:[#allocation52_spill] sm:$0xff] %v6830_v54  ;;  %2452 = vrot.lane.b32.xlu1 %v6830_v54, %s5646_s28  ;;  %v2622_v33 = vpack.c.bf16 %v2593_v31, %v2592_v57  ;;  %v3098_v51 = vld [vmem:[#allocation3 + $0x70] sm:$0xff]  ;;  %v2334_v31 = vld [vmem:[%s5736_s9 + $0x78] sm:$0xff] }
 0x26d   : > { %v6835_v28 = vpop.eup %5498  ;;  %v1906_v43 = vpop.f32.mrb[60].mxu0  ;;  %v3128_v1 = vpack.c.bf16 %v3098_v51, %v3097_v27  ;;  %v5372_v51 = vld [vmem:[%s7885_s2] sm:$0xff]  }
 0x26e   : > { %7997 = vst [vmem:[#allocation53_spill] sm:$0xff] %v6835_v28  ;;  %v1907_v45 = vadd.f32 %v6819_v25, %v1906_v43  ;;  %v1908_v18 = vpop.f32.mrb[61].mxu0  ;;  %2454 = vrot.lane.b32.xlu0 %v6835_v28, %s5646_s28  ;;  %2640 = vst.msk [vmem:[#allocation4 + $0x90] sm:$0xff] %vm1287_vm10, %v2622_v33  ;;  %3916 = vmatpush1.bf16.msra.mxu1 %v5372_v51 }
 0x26f   : > { %v1909_v10 = vpop.f32.mrb[62].mxu0  ;;  %3146 = vst.msk [vmem:[#allocation4 + $0x80] sm:$0xff] %vm1287_vm10, %v3128_v1  ;;  %v2425_v27 = vpop.permute.xlu0 %2424  ;;  %v2335_v1 = vld [vmem:[%s5736_s9 + $0x80] sm:$0xff] }
 0x270   : > { %v5501_v22 = vpop.eup %5500  ;;  %v6842_v37 = vadd.f32 %v5244_v23, %v1907_v45  ;;  %v1910_v49 = vadd.f32 %v6819_v25, %v1909_v10  ;;  %v1911_v57 = vpop.f32.mrb[63].mxu0  ;;  %v2520_v18 = vmul.f32 %v2425_v27, %v2334_v31 }
 0x271   : > { %v2242_v43 = vadd.f32 1.0, %v5501_v22  ;;  %v8000_v57 = vmov 0  }
 0x272   : > { %7998 = vst [vmem:[#allocation54_spill] sm:$0xff] %v6842_v37  ;;  %v5503_v0 = vpop.eup %5502  ;;  %v5068_v33 = vmul.f32 -1.442695, %v6842_v37  ;;  %v6850_v58 = vadd.f32 %v5245_v9, %v1910_v49  ;;  %v2427_v56 = vpop.permute.xlu1 %2426  ;;  %v3674_v23 = vld [vmem:[#allocation4 + $0x58] sm:$0xff]  ;;  %2556 = vst.msk [vmem:[#allocation3 + $0x78] sm:$0xff] %vm1287_vm10, %v2520_v18  ;;  %3917 = vmatprep.subr.bf16.mxu1 %v8000_v57  ;;  %v5373_v9 = vld [vmem:[%s7885_s2 + $0x8] sm:$0xff]  }
 0x273   : > { %5504 = vrcp.f32 %v2242_v43  ;;  %v2243_v45 = vadd.f32 1.0, %v5503_v0  ;;  %v2521_v10 = vmul.f32 %v2427_v56, %v2335_v1  ;;  %5259 = vmatmul.mubr.msk.bf16.gmra.mrb[76].mxu0 %vm1287_vm10, %v3674_v23  ;;  %3918 = vmatpush1.bf16.msra.mxu1 %v5373_v9  ;;  %v5374_v56 = vld [vmem:[%s7885_s2 + $0x10] sm:$0xff]   ;;  %v3599_v0 = vld [vmem:[#allocation3 + $0x6b] sm:$0xff]  ;;  %v2336_v18 = vld [vmem:[%s5736_s9 + $0x88] sm:$0xff] }
 0x274   : > { %7999 = vst [vmem:[#allocation55_spill] sm:$0xff] %v6850_v58  ;;  %5506 = vpow2.f32 %v5068_v33  ;;  %v5069_v22 = vmul.f32 -1.442695, %v6850_v58  ;;  %3919 = vmatprep.subr.bf16.mxu1 %v8000_v57  ;;  %v5375_v33 = vld [vmem:[%s7885_s2 + $0x18] sm:$0xff]  }
 0x275   : > { %5508 = vrcp.f32 %v2243_v45  ;;  %2557 = vst.msk [vmem:[#allocation3 + $0x80] sm:$0xff] %vm1287_vm10, %v2521_v10 }
 0x276   : > { %5510 = vpow2.f32 %v5069_v22 }
 0x277   : > { %3920 = vmatpush1.bf16.msra.mxu1 %v5374_v56 }
 0x278   : > { %3921 = vmatprep.subr.bf16.mxu1 %v8000_v57 }
 0x279   : > { %v3600_v49 = vld [vmem:[#allocation3 + $0x73] sm:$0xff] }
 0x27a   : > { %v3631_v31 = vpack.c.bf16 %v3600_v49, %v3599_v0  ;;  %v2594_v10 = vld [vmem:[#allocation3 + $0x75] sm:$0xff] }
 0x27b   : > { %3922 = vmatpush1.bf16.msra.mxu1 %v5375_v33  ;;  %v3099_v58 = vld [vmem:[#allocation3 + $0x78] sm:$0xff] }
 0x27c   : > { %v1914_v27 = vpop.f32.mrb[64].mxu0  ;;  %3649 = vst.msk [vmem:[#allocation4 + $0x70] sm:$0xff] %vm1287_vm10, %v3631_v31  ;;  %v2595_v22 = vld [vmem:[#allocation3 + $0x7d] sm:$0xff]  ;;  %3923 = vmatprep.subr.bf16.mxu1 %v8000_v57 }
 0x27d   : > { %v6866_v51 = vpop.eup %5504  ;;  %v1916_v43 = vpop.f32.mrb[65].mxu0  ;;  %v3100_v9 = vld [vmem:[#allocation3 + $0x80] sm:$0xff]  ;;  %v1915_v30 = vadd.f32 %v6819_v25, %v1914_v27 }
 0x27e   : > { %8001 = vst [vmem:[#allocation56_spill] sm:$0xff] %v6866_v51  ;;  %v5507_v1 = vpop.eup %5506  ;;  %v1917_v23 = vpop.f32.mrb[66].mxu0  ;;  %2456 = vrot.lane.b32.xlu1 %v6866_v51, %s5646_s28  ;;  %v2623_v43 = vpack.c.bf16 %v2595_v22, %v2594_v10 }
 0x27f   : > { %v2429_v45 = vpop.permute.xlu0 %2428  ;;  %v6875_v56 = vpop.eup %5508  ;;  %v2244_v0 = vadd.f32 1.0, %v5507_v1  ;;  %v5376_v1 = vld [vmem:[%s7885_s2 + $0x20] sm:$0xff]   ;;  %v1918_v27 = vadd.f32 %v6819_v25, %v1917_v23  ;;  %v3601_v23 = vld [vmem:[#allocation3 + $0x7b] sm:$0xff] }
 0x280   : > { %8002 = vst [vmem:[#allocation57_spill] sm:$0xff] %v6875_v56  ;;  %v2522_v49 = vmul.f32 %v2429_v45, %v2336_v18  ;;  %v1919_v31 = vpop.f32.mrb[67].mxu0  ;;  %v5511_v37 = vpop.eup %5510  ;;  %2458 = vrot.lane.b32.xlu0 %v6875_v56, %s5646_s28  ;;  %v3129_v18 = vpack.c.bf16 %v3100_v9, %v3099_v58  ;;  %2641 = vst.msk [vmem:[#allocation4 + $0xa8] sm:$0xff] %vm1287_vm10, %v2623_v43  ;;  %3924 = vmatpush1.bf16.msra.mxu1 %v5376_v1  ;;  %v5379_v43 = vld [vmem:[%s7885_s2 + $0x38] sm:$0xff]  }
 0x281   : > { %v5248_v17 = vpop.f32.mrb[32].mxu1  ;;  %v2431_v63 = vpop.permute.xlu1 %2430  ;;  %5512 = vrcp.f32 %v2244_v0  ;;  %v2245_v33 = vadd.f32 1.0, %v5511_v37  ;;  %3925 = vmatprep.subr.bf16.mxu1 %v8000_v57  ;;  %v5378_v0 = vld [vmem:[%s7885_s2 + $0x30] sm:$0xff]  }
 0x282   : > { %2558 = vst.msk [vmem:[#allocation3 + $0x88] sm:$0xff] %vm1287_vm10, %v2522_v49  ;;  %v2523_v45 = vmul.f32 %v2431_v63, %v2337_v5  ;;  %v2091_v10 = vpop.f32.mrb[33].mxu1  ;;  %3147 = vst.msk [vmem:[#allocation4 + $0x98] sm:$0xff] %vm1287_vm10, %v3129_v18  ;;  %v5377_v5 = vld [vmem:[%s7885_s2 + $0x28] sm:$0xff]  }
 0x283   : > { %v6888_v22 = vadd.f32 %v2091_v10, %v1915_v30  ;;  %v5249_v31 = vpop.f32.mrb[34].mxu1  ;;  %5514 = vrcp.f32 %v2245_v33  ;;  %v3677_v63 = vld [vmem:[#allocation4 + $0x70] sm:$0xff] }
 0x284   : > { %2559 = vst.msk [vmem:[#allocation3 + $0x90] sm:$0xff] %vm1287_vm10, %v2523_v45  ;;  %v2094_v40 = vpop.f32.mrb[35].mxu1  ;;  %5262 = vmatprep.mubr.msk.bf16.mxu0 %vm1287_vm10, %v3677_v63  ;;  %3926 = vmatpush1.bf16.msra.mxu1 %v5377_v5  ;;  %v2943_v10 = vld [vmem:[#allocation3 + $0x1f] sm:$0xff] }
 0x285   : > { %8003 = vst [vmem:[#allocation58_spill] sm:$0xff] %v6888_v22  ;;  %v5070_v58 = vmul.f32 -1.442695, %v6888_v22  ;;  %v6893_v37 = vadd.f32 %v2094_v40, %v1918_v27  ;;  %3927 = vmatprep.subr.bf16.mxu1 %v8000_v57  ;;  %v2338_v22 = vld [vmem:[%s5736_s9 + $0x98] sm:$0xff] }
 0x287   : > { %8004 = vst [vmem:[#allocation59_spill] sm:$0xff] %v6893_v37  ;;  %5516 = vpow2.f32 %v5070_v58  ;;  %v5071_v30 = vmul.f32 -1.442695, %v6893_v37 }
 0x288   : > { %3928 = vmatpush1.bf16.msra.mxu1 %v5378_v0 }
 0x289   : > { %v3602_v9 = vld [vmem:[#allocation3 + $0x83] sm:$0xff]  ;;  %5518 = vpow2.f32 %v5071_v30  ;;  %3929 = vmatprep.subr.bf16.mxu1 %v8000_v57 }
 0x28a   : > { %v3632_v40 = vpack.c.bf16 %v3602_v9, %v3601_v23  ;;  %v2596_v1 = vld [vmem:[#allocation3 + $0x85] sm:$0xff] }
 0x28b   : > { %v6905_v49 = vpop.eup %5512  ;;  %v2597_v18 = vld [vmem:[#allocation3 + $0x8d] sm:$0xff] }
 0x28c   : > { %8005 = vst [vmem:[#allocation60_spill] sm:$0xff] %v6905_v49  ;;  %3650 = vst.msk [vmem:[#allocation4 + $0x88] sm:$0xff] %vm1287_vm10, %v3632_v40  ;;  %2460 = vrot.lane.b32.xlu1 %v6905_v49, %s5646_s28  ;;  %v2624_v27 = vpack.c.bf16 %v2597_v18, %v2596_v1  ;;  %v3101_v58 = vld [vmem:[#allocation3 + $0x88] sm:$0xff]  ;;  %v3102_v63 = vld [vmem:[#allocation3 + $0x90] sm:$0xff]  ;;  %3930 = vmatpush1.bf16.msra.mxu1 %v5379_v43 }
 0x28d   : > { %v6914_v33 = vpop.eup %5514  ;;  %v3130_v23 = vpack.c.bf16 %v3102_v63, %v3101_v58  ;;  %v2942_v40 = vld [vmem:[#allocation3 + $0x17] sm:$0xff]  ;;  %3931 = vmatprep.subr.bf16.mxu1 %v8000_v57 }
 0x28e   : > { %8006 = vst [vmem:[#allocation61_spill] sm:$0xff] %v6914_v33  ;;  %v1922_v45 = vpop.f32.mrb[68].mxu0  ;;  %2462 = vrot.lane.b32.xlu0 %v6914_v33, %s5646_s28  ;;  %2642 = vst.msk [vmem:[#allocation4 + $0xc0] sm:$0xff] %vm1287_vm10, %v2624_v27  ;;  %v5380_v58 = vld [vmem:[%s7885_s2 + $0x40] sm:$0xff]   ;;  %v2655_v63 = vld [vmem:[#allocation3 + $0x1e] sm:$0xff] }
 0x28f   : > { %v1923_v5 = vadd.f32 %v6819_v25, %v1922_v45  ;;  %v1924_v30 = vpop.f32.mrb[69].mxu0  ;;  %v2433_v32 = vpop.permute.xlu0 %2432  ;;  %v2978_v45 = vpack.c.bf16 %v2943_v10, %v2942_v40  ;;  %3148 = vst.msk [vmem:[#allocation4 + $0xb0] sm:$0xff] %vm1287_vm10, %v3130_v23  ;;  %v2654_v23 = vld [vmem:[#allocation3 + $0x16] sm:$0xff] }
 0x290   : > { %v1925_v9 = vpop.f32.mrb[70].mxu0  ;;  %v2524_v27 = vmul.f32 %v2433_v32, %v2338_v22  ;;  %3932 = vmatpush1.bf16.msra.mxu1 %v5380_v58  ;;  %v2689_v22 = vpack.c.bf16 %v2655_v63, %v2654_v23 }
 0x291   : > { %v5517_v0 = vpop.eup %5516  ;;  %v6920_v37 = vadd.f32 %v5248_v17, %v1923_v5  ;;  %v1926_v1 = vadd.f32 %v6819_v25, %v1925_v9  ;;  %v1927_v18 = vpop.f32.mrb[71].mxu0  ;;  %v2339_v25 = vld [vmem:[%s5736_s9 + $0xa0] sm:$0xff]  ;;  %3933 = vmatprep.subr.bf16.mxu1 %v8000_v57 }
 0x292   : > { %v2246_v43 = vadd.f32 1.0, %v5517_v0  ;;  %v2435_v9 = vpop.permute.xlu1 %2434  ;;  %3014 = vrot.lane.b32.xlu0 %v2978_v45, %s5646_s28  ;;  %2560 = vst.msk [vmem:[#allocation3 + $0x98] sm:$0xff] %vm1287_vm10, %v2524_v27  ;;  %v5382_v0 = vld [vmem:[%s7885_s2 + $0x50] sm:$0xff]   ;;  %v2340_v27 = vld [vmem:[%s5736_s9 + $0xa8] sm:$0xff] }
 0x293   : > { %8007 = vst [vmem:[#allocation62_spill] sm:$0xff] %v6920_v37  ;;  %v5519_v30 = vpop.eup %5518  ;;  %v5072_v17 = vmul.f32 -1.442695, %v6920_v37  ;;  %v6930_v5 = vadd.f32 %v5249_v31, %v1926_v1  ;;  %v3680_v10 = vld [vmem:[#allocation4 + $0x88] sm:$0xff]  ;;  %v2525_v18 = vmul.f32 %v2435_v9, %v2339_v25  ;;  %v3603_v1 = vld [vmem:[#allocation3 + $0x8b] sm:$0xff] }
 0x294   : > { %5520 = vrcp.f32 %v2246_v43  ;;  %v2247_v40 = vadd.f32 1.0, %v5519_v30  ;;  %5263 = vmatmul.mubr.msk.bf16.gmra.mrb[80].mxu0 %vm1287_vm10, %v3680_v10  ;;  %v5381_v31 = vld [vmem:[%s7885_s2 + $0x48] sm:$0xff]   ;;  %v3160_v30 = vld [vmem:[#allocation3 + $0x21] sm:$0xff] }
 0x295   : > { %8008 = vst [vmem:[#allocation63_spill] sm:$0xff] %v6930_v5  ;;  %5522 = vpow2.f32 %v5072_v17  ;;  %v5073_v32 = vmul.f32 -1.442695, %v6930_v5  ;;  %2561 = vst.msk [vmem:[#allocation3 + $0xa0] sm:$0xff] %vm1287_vm10, %v2525_v18  ;;  %3934 = vmatpush1.bf16.msra.mxu1 %v5381_v31  ;;  %v5383_v17 = vld [vmem:[%s7885_s2 + $0x58] sm:$0xff]   ;;  %v3159_v31 = vld [vmem:[#allocation3 + $0x19] sm:$0xff] }
 0x296   : > { %5524 = vrcp.f32 %v2247_v40  ;;  %2726 = vrot.lane.b32.xlu0 %v2689_v22, %s5643_s11  ;;  %3935 = vmatprep.subr.bf16.mxu1 %v8000_v57  ;;  %v2341_v5 = vld [vmem:[%s5736_s9 + $0xb0] sm:$0xff]  ;;  %v3195_v16 = vpack.c.bf16 %v3160_v30, %v3159_v31  ;;  %v2657_v30 = vld [vmem:[#allocation3 + $0x2e] sm:$0xff] }
 0x297   : > { %5526 = vpow2.f32 %v5073_v32 }
 0x299   : > { %v3604_v58 = vld [vmem:[#allocation3 + $0x93] sm:$0xff]  ;;  %3936 = vmatpush1.bf16.msra.mxu1 %v5382_v0 }
 0x29a   : > { %2871 = vrot.lane.b32.xlu0 %v2978_v45, %s5645_s12  ;;  %v3633_v43 = vpack.c.bf16 %v3604_v58, %v3603_v1  ;;  %3937 = vmatprep.subr.bf16.mxu1 %v8000_v57  ;;  %v3103_v25 = vld [vmem:[#allocation3 + $0x98] sm:$0xff]  ;;  %v2945_v0 = vld [vmem:[#allocation3 + $0x2f] sm:$0xff] }
 0x29b   : > { %v2598_v40 = vld [vmem:[#allocation3 + $0x95] sm:$0xff] }
 0x29c   : > { %3651 = vst.msk [vmem:[#allocation4 + $0xa0] sm:$0xff] %vm1287_vm10, %v3633_v43  ;;  %v3104_v10 = vld [vmem:[#allocation3 + $0xa0] sm:$0xff] }
 0x29d   : > { %v2599_v18 = vld [vmem:[#allocation3 + $0x9d] sm:$0xff]  ;;  %3938 = vmatpush1.bf16.msra.mxu1 %v5383_v17  ;;  %v3131_v1 = vpack.c.bf16 %v3104_v10, %v3103_v25  ;;  %v2944_v25 = vld [vmem:[#allocation3 + $0x27] sm:$0xff] }
 0x29e   : > { %v6950_v63 = vpop.eup %5520  ;;  %v2437_v45 = vpop.permute.xlu0 %2436  ;;  %v2625_v58 = vpack.c.bf16 %v2599_v18, %v2598_v40  ;;  %3939 = vmatprep.subr.bf16.mxu1 %v8000_v57  ;;  %v5386_v18 = vld [vmem:[%s7885_s2 + $0x70] sm:$0xff]  }
 0x29f   : > { %8009 = vst [vmem:[#allocation64_spill] sm:$0xff] %v6950_v63  ;;  %v5523_v9 = vpop.eup %5522  ;;  %2464 = vrot.lane.b32.xlu1 %v6950_v63, %s5646_s28  ;;  %v2526_v22 = vmul.f32 %v2437_v45, %v2340_v27  ;;  %3149 = vst.msk [vmem:[#allocation4 + $0xc8] sm:$0xff] %vm1287_vm10, %v3131_v1 }
 0x2a0   : > { %v6958_v23 = vpop.eup %5524  ;;  %v2248_v32 = vadd.f32 1.0, %v5523_v9  ;;  %v2439_v37 = vpop.permute.xlu1 %2438  ;;  %2643 = vst.msk [vmem:[#allocation4 + $0xd8] sm:$0xff] %vm1287_vm10, %v2625_v58  ;;  %v2979_v9 = vpack.c.bf16 %v2945_v0, %v2944_v25 }
 0x2a1   : > { %8010 = vst [vmem:[#allocation65_spill] sm:$0xff] %v6958_v23  ;;  %v5527_v43 = vpop.eup %5526  ;;  %2466 = vrot.lane.b32.xlu0 %v6958_v23, %s5646_s28  ;;  %2562 = vst.msk [vmem:[#allocation3 + $0xa8] sm:$0xff] %vm1287_vm10, %v2526_v22  ;;  %v2527_v17 = vmul.f32 %v2439_v37, %v2341_v5  ;;  %3940 = vmatpush1.bf16.msra.mxu1 %v5384_v11  ;;  %v5385_v37 = vld [vmem:[%s7885_s2 + $0x68] sm:$0xff]   ;;  %v2656_v5 = vld [vmem:[#allocation3 + $0x26] sm:$0xff] }
 0x2a2   : > { %5528 = vrcp.f32 %v2248_v32  ;;  %v2249_v27 = vadd.f32 1.0, %v5527_v43  ;;  %3941 = vmatprep.subr.bf16.mxu1 %v8000_v57  ;;  %v2690_v10 = vpack.c.bf16 %v2657_v30, %v2656_v5  ;;  %v3304_v22 = vld [vmem:[#allocation3 + $0x31] sm:$0xff]  ;;  %v3303_v43 = vld [vmem:[#allocation3 + $0x29] sm:$0xff]  ;;  %v2947_v5 = vld [vmem:[#allocation3 + $0x3f] sm:$0xff] }
 0x2a3   : > { %3231 = vrot.lane.b32.xlu1 %v3195_v16, %s5643_s11  ;;  %2563 = vst.msk [vmem:[#allocation3 + $0xb0] sm:$0xff] %vm1287_vm10, %v2527_v17  ;;  %v3683_v45 = vld [vmem:[#allocation4 + $0xa0] sm:$0xff]  ;;  %v3605_v16 = vld [vmem:[#allocation3 + $0x9b] sm:$0xff]  ;;  %v3339_v30 = vpack.c.bf16 %v3304_v22, %v3303_v43 }
 0x2a4   : > { %5530 = vrcp.f32 %v2249_v27  ;;  %5266 = vmatprep.mubr.msk.bf16.mxu0 %vm1287_vm10, %v3683_v45  ;;  %v5387_v27 = vld [vmem:[%s7885_s2 + $0x78] sm:$0xff]  }
 0x2a5   : > { %3016 = vrot.lane.b32.xlu0 %v2979_v9, %s5646_s28  ;;  %3942 = vmatpush1.bf16.msra.mxu1 %v5385_v37  ;;  %v3448_v37 = vld [vmem:[#allocation3 + $0x32] sm:$0xff] }
 0x2a6   : > { %3943 = vmatprep.subr.bf16.mxu1 %v8000_v57 }
 0x2a8   : > { %v3606_v40 = vld [vmem:[#allocation3 + $0xa3] sm:$0xff] }
 0x2a9   : > { %2728 = vrot.lane.b32.xlu0 %v2690_v10, %s5643_s11  ;;  %v3634_v11 = vpack.c.bf16 %v3606_v40, %v3605_v16  ;;  %3944 = vmatpush1.bf16.msra.mxu1 %v5386_v18  ;;  %v3105_v31 = vld [vmem:[#allocation3 + $0xa8] sm:$0xff]  ;;  %v2946_v40 = vld [vmem:[#allocation3 + $0x37] sm:$0xff] }
 0x2aa   : > { %v3106_v0 = vld [vmem:[#allocation3 + $0xb0] sm:$0xff]  ;;  %v2600_v1 = vld [vmem:[#allocation3 + $0xa5] sm:$0xff]  ;;  %3945 = vmatprep.subr.bf16.mxu1 %v8000_v57 }
 0x2ab   : > { %3652 = vst.msk [vmem:[#allocation4 + $0xb8] sm:$0xff] %vm1287_vm10, %v3634_v11  ;;  %v2601_v58 = vld [vmem:[#allocation3 + $0xad] sm:$0xff]  ;;  %v3132_v17 = vpack.c.bf16 %v3106_v0, %v3105_v31  ;;  %v2980_v31 = vpack.c.bf16 %v2947_v5, %v2946_v40  ;;  %v2659_v0 = vld [vmem:[#allocation3 + $0x3e] sm:$0xff] }
 0x2ac   : > { %v6983_v32 = vpop.eup %5528  ;;  %v2626_v25 = vpack.c.bf16 %v2601_v58, %v2600_v1  ;;  %v2342_v57 = vld [vmem:[%s5736_s9 + $0xb8] sm:$0xff]  ;;  %v7004_v11 = vld [vmem:[%s7885_s2 + $0x80] sm:$0xff]  }
 0x2ad   : > { %8011 = vst [vmem:[#allocation66_spill] sm:$0xff] %v6983_v32  ;;  %2468 = vrot.lane.b32.xlu1 %v6983_v32, %s5646_s28  ;;  %2873 = vrot.lane.b32.xlu0 %v2979_v9, %s5645_s12  ;;  %3150 = vst.msk [vmem:[#allocation4 + $0xe0] sm:$0xff] %vm1287_vm10, %v3132_v17  ;;  %v3447_v16 = vld [vmem:[#allocation3 + $0x2a] sm:$0xff] }
 0x2ae   : > { %v6993_v45 = vpop.eup %5530  ;;  %3946 = vmatpush1.bf16.msra.mxu1 %v5387_v27  ;;  %2644 = vst.msk [vmem:[#allocation4 + $0xf0] sm:$0xff] %vm1287_vm10, %v2626_v25  ;;  %v3483_v22 = vpack.c.bf16 %v3448_v37, %v3447_v16  ;;  %v2343_v1 = vld [vmem:[%s5736_s9 + $0xc0] sm:$0xff]  ;;  %v3306_v25 = vld [vmem:[#allocation3 + $0x41] sm:$0xff]  ;;  %v3305_v37 = vld [vmem:[#allocation3 + $0x39] sm:$0xff] }
 0x2af   : > { %8012 = vst [vmem:[#allocation67_spill] sm:$0xff] %v6993_v45  ;;  %5290 = vmatprep.subr.bf16.mxu1 %v7004_v11  ;;  %v2658_v27 = vld [vmem:[#allocation3 + $0x36] sm:$0xff]  ;;  %v3607_v5 = vld [vmem:[#allocation3 + $0xab] sm:$0xff]  ;;  %v3450_v16 = vld [vmem:[#allocation3 + $0x42] sm:$0xff] }
 0x2b0   : > { %v2441_v9 = vpop.permute.xlu0 %2440  ;;  %v2691_v17 = vpack.c.bf16 %v2659_v0, %v2658_v27  ;;  %v2949_v40 = vld [vmem:[#allocation3 + $0x4f] sm:$0xff]  ;;  %v2344_v0 = vld [vmem:[%s5736_s9 + $0xc8] sm:$0xff] }
 0x2b1   : > { %2470 = vrot.lane.b32.xlu0 %v6993_v45, %s5646_s28  ;;  %3375 = vrot.lane.b32.xlu1 %v3339_v30, %s5645_s12  ;;  %v2528_v10 = vmul.f32 %v2441_v9, %v2342_v57  ;;  %v3340_v9 = vpack.c.bf16 %v3306_v25, %v3305_v37  ;;  %v2661_v27 = vld [vmem:[#allocation3 + $0x4e] sm:$0xff]  ;;  %v2345_v37 = vld [vmem:[%s5736_s9 + $0xd0] sm:$0xff] }
 0x2b2   : > { %v3686_v18 = vld [vmem:[#allocation4 + $0xb8] sm:$0xff] }
 0x2b3   : > { %2564 = vst.msk [vmem:[#allocation3 + $0xb8] sm:$0xff] %vm1287_vm10, %v2528_v10  ;;  %5267 = vmatmul.mubr.msk.bf16.gmra.mrb[84].mxu0 %vm1287_vm10, %v3686_v18  ;;  %v3449_v18 = vld [vmem:[#allocation3 + $0x3a] sm:$0xff] }
 0x2b4   : > { %v2443_v58 = vpop.permute.xlu0 %2442 }
 0x2b5   : > { %3519 = vrot.lane.b32.xlu1 %v3483_v22, %s5646_s28  ;;  %3018 = vrot.lane.b32.xlu0 %v2980_v31, %s5646_s28  ;;  %v2529_v43 = vmul.f32 %v2443_v58, %v2343_v1  ;;  %v2948_v22 = vld [vmem:[#allocation3 + $0x47] sm:$0xff]  ;;  %v3484_v1 = vpack.c.bf16 %v3450_v16, %v3449_v18  ;;  %v2692_v16 = vpack.c.bf16 %v2661_v27, %v2660_v47 }
 0x2b6   : > { %v2981_v58 = vpack.c.bf16 %v2949_v40, %v2948_v22  ;;  %v3308_v40 = vld [vmem:[#allocation3 + $0x51] sm:$0xff]  ;;  %v3307_v22 = vld [vmem:[#allocation3 + $0x49] sm:$0xff] }
 0x2b7   : > { %2565 = vst.msk [vmem:[#allocation3 + $0xc0] sm:$0xff] %vm1287_vm10, %v2529_v43  ;;  %v3451_v27 = vld [vmem:[#allocation3 + $0x4a] sm:$0xff] }
 0x2b9   : > { %3233 = vrot.lane.b32.xlu1 %v3339_v30, %s5643_s11  ;;  %2730 = vrot.lane.b32.xlu0 %v2691_v17, %s5643_s11 }
 0x2ba   : > { %v3608_v57 = vld [vmem:[#allocation3 + $0xb3] sm:$0xff] }
 0x2bb   : > { %v3635_v10 = vpack.c.bf16 %v3608_v57, %v3607_v5  ;;  %v3107_v17 = vld [vmem:[#allocation3 + $0xb8] sm:$0xff] }
 0x2bc   : > { %v2602_v57 = vld [vmem:[#allocation3 + $0xb5] sm:$0xff] }
 0x2bd   : > { %2875 = vrot.lane.b32.xlu0 %v2980_v31, %s5645_s12  ;;  %3377 = vrot.lane.b32.xlu1 %v3340_v9, %s5645_s12  ;;  %3653 = vst.msk [vmem:[#allocation4 + $0xd0] sm:$0xff] %vm1287_vm10, %v3635_v10 }
 0x2be   : > { %v2445_v30 = vpop.permute.xlu1 %2444  ;;  %v3108_v25 = vld [vmem:[#allocation3 + $0xc0] sm:$0xff] }
 0x2bf   : > { %v2530_v43 = vmul.f32 %v2445_v30, %v2344_v0  ;;  %v3133_v5 = vpack.c.bf16 %v3108_v25, %v3107_v17  ;;  %v2603_v53 = vld [vmem:[#allocation3 + $0xbd] sm:$0xff]  ;;  %v3341_v0 = vpack.c.bf16 %v3308_v40, %v3307_v22  ;;  %v3452_v30 = vld [vmem:[#allocation3 + $0x52] sm:$0xff]  ;;  %v2346_v22 = vld [vmem:[%s5736_s9 + $0xd8] sm:$0xff] }
 0x2c0   : > { %v2447_v31 = vpop.permute.xlu0 %2446  ;;  %v2627_v20 = vpack.c.bf16 %v2603_v53, %v2602_v57  ;;  %v3609_v53 = vld [vmem:[#allocation3 + $0xbb] sm:$0xff]  ;;  %v3485_v17 = vpack.c.bf16 %v3452_v30, %v3451_v27 }
 0x2c1   : > { %3521 = vrot.lane.b32.xlu1 %v3484_v1, %s5646_s28  ;;  %3020 = vrot.lane.b32.xlu0 %v2981_v58, %s5646_s28  ;;  %2566 = vst.msk [vmem:[#allocation3 + $0xc8] sm:$0xff] %vm1287_vm10, %v2530_v43  ;;  %v2531_v10 = vmul.f32 %v2447_v31, %v2345_v37  ;;  %3151 = vst.msk [vmem:[#allocation4 + $0xf8] sm:$0xff] %vm1287_vm10, %v3133_v5  ;;  %v2951_v1 = vld [vmem:[#allocation3 + $0x5f] sm:$0xff] }
 0x2c2   : > { %2645 = vst.msk [vmem:[#allocation4 + $0x108] sm:$0xff] %vm1287_vm10, %v2627_v20  ;;  %v2950_v20 = vld [vmem:[#allocation3 + $0x57] sm:$0xff] }
 0x2c3   : > { %2567 = vst.msk [vmem:[#allocation3 + $0xd0] sm:$0xff] %vm1287_vm10, %v2531_v10  ;;  %v2663_v25 = vld [vmem:[#allocation3 + $0x5e] sm:$0xff]  ;;  %v2662_v10 = vld [vmem:[#allocation3 + $0x56] sm:$0xff] }
 0x2c4   : > { %v3689_v18 = vld [vmem:[#allocation4 + $0xd0] sm:$0xff]  ;;  %v2693_v40 = vpack.c.bf16 %v2663_v25, %v2662_v10 }
 0x2c5   : > { %3235 = vrot.lane.b32.xlu1 %v3340_v9, %s5643_s11  ;;  %2732 = vrot.lane.b32.xlu0 %v2692_v16, %s5643_s11  ;;  %v2982_v9 = vpack.c.bf16 %v2951_v1, %v2950_v20  ;;  %v3454_v25 = vld [vmem:[#allocation3 + $0x62] sm:$0xff] }
 0x2c6   : > { %5270 = vmatprep.mubr.msk.bf16.mxu0 %vm1287_vm10, %v3689_v18  ;;  %v3310_v18 = vld [vmem:[#allocation3 + $0x61] sm:$0xff] }
 0x2c7   : > { %v2664_v10 = vld [vmem:[#allocation3 + $0x66] sm:$0xff] }
 0x2c8   : > { %v3610_v47 = vld [vmem:[#allocation3 + $0xc3] sm:$0xff] }
 0x2c9   : > { %2877 = vrot.lane.b32.xlu0 %v2981_v58, %s5645_s12  ;;  %3379 = vrot.lane.b32.xlu1 %v3341_v0, %s5645_s12  ;;  %v3636_v43 = vpack.c.bf16 %v3610_v47, %v3609_v53  ;;  %v3109_v37 = vld [vmem:[#allocation3 + $0xc8] sm:$0xff]  ;;  %v3309_v53 = vld [vmem:[#allocation3 + $0x59] sm:$0xff]  ;;  %v2347_v47 = vld [vmem:[%s5736_s9 + $0xe0] sm:$0xff] }
 0x2ca   : > { %v3110_v31 = vld [vmem:[#allocation3 + $0xd0] sm:$0xff]  ;;  %v2604_v58 = vld [vmem:[#allocation3 + $0xc5] sm:$0xff]  ;;  %v3342_v20 = vpack.c.bf16 %v3310_v18, %v3309_v53 }
 0x2cb   : > { %3654 = vst.msk [vmem:[#allocation4 + $0xe8] sm:$0xff] %vm1287_vm10, %v3636_v43  ;;  %v3134_v5 = vpack.c.bf16 %v3110_v31, %v3109_v37  ;;  %v2605_v57 = vld [vmem:[#allocation3 + $0xcd] sm:$0xff] }
 0x2cc   : > { %v2628_v16 = vpack.c.bf16 %v2605_v57, %v2604_v58  ;;  %v2953_v37 = vld [vmem:[#allocation3 + $0x6f] sm:$0xff]  ;;  %v2952_v31 = vld [vmem:[#allocation3 + $0x67] sm:$0xff] }
 0x2cd   : > { %3523 = vrot.lane.b32.xlu1 %v3485_v17, %s5646_s28  ;;  %3022 = vrot.lane.b32.xlu0 %v2982_v9, %s5646_s28  ;;  %3152 = vst.msk [vmem:[#allocation4 + $0x110] sm:$0xff] %vm1287_vm10, %v3134_v5  ;;  %v2983_v58 = vpack.c.bf16 %v2953_v37, %v2952_v31  ;;  %v2665_v57 = vld [vmem:[#allocation3 + $0x6e] sm:$0xff] }
 0x2ce   : > { %2646 = vst.msk [vmem:[#allocation4 + $0x120] sm:$0xff] %vm1287_vm10, %v2628_v16  ;;  %v3611_v16 = vld [vmem:[#allocation3 + $0xcb] sm:$0xff]  ;;  %v2694_v18 = vpack.c.bf16 %v2665_v57, %v2664_v10 }
 0x2cf   : > { %v3456_v31 = vld [vmem:[#allocation3 + $0x72] sm:$0xff] }
 0x2d0   : > { %v2449_v30 = vpop.permute.xlu1 %2448 }
 0x2d1   : > { %3237 = vrot.lane.b32.xlu1 %v3341_v0, %s5643_s11  ;;  %2734 = vrot.lane.b32.xlu0 %v2693_v40, %s5643_s11  ;;  %v2532_v1 = vmul.f32 %v2449_v30, %v2346_v22  ;;  %v3453_v0 = vld [vmem:[#allocation3 + $0x5a] sm:$0xff]  ;;  %v3311_v30 = vld [vmem:[#allocation3 + $0x69] sm:$0xff] }
 0x2d2   : > { %v2451_v43 = vpop.permute.xlu0 %2450  ;;  %v3692_v27 = vld [vmem:[#allocation4 + $0xe8] sm:$0xff]  ;;  %v3486_v5 = vpack.c.bf16 %v3454_v25, %v3453_v0 }
 0x2d3   : > { %2568 = vst.msk [vmem:[#allocation3 + $0xd8] sm:$0xff] %vm1287_vm10, %v2532_v1  ;;  %v2533_v17 = vmul.f32 %v2451_v43, %v2347_v47  ;;  %5271 = vmatmul.mubr.msk.bf16.gmra.mrb[88].mxu0 %vm1287_vm10, %v3692_v27  ;;  %v2348_v47 = vld [vmem:[%s5736_s9 + $0xe8] sm:$0xff] }
 0x2d5   : > { %2879 = vrot.lane.b32.xlu0 %v2982_v9, %s5645_s12  ;;  %3381 = vrot.lane.b32.xlu1 %v3342_v20, %s5645_s12  ;;  %2569 = vst.msk [vmem:[#allocation3 + $0xe0] sm:$0xff] %vm1287_vm10, %v2533_v17  ;;  %v3312_v9 = vld [vmem:[#allocation3 + $0x71] sm:$0xff] }
 0x2d6   : > { %v3343_v27 = vpack.c.bf16 %v3312_v9, %v3311_v30  ;;  %v2667_v30 = vld [vmem:[#allocation3 + $0x7e] sm:$0xff] }
 0x2d9   : > { %3525 = vrot.lane.b32.xlu1 %v3486_v5, %s5646_s28  ;;  %3024 = vrot.lane.b32.xlu0 %v2983_v58, %s5646_s28  ;;  %v2955_v5 = vld [vmem:[#allocation3 + $0x7f] sm:$0xff] }
 0x2da   : > { %v3612_v40 = vld [vmem:[#allocation3 + $0xd3] sm:$0xff] }
 0x2db   : > { %v3637_v22 = vpack.c.bf16 %v3612_v40, %v3611_v16  ;;  %v3111_v1 = vld [vmem:[#allocation3 + $0xd8] sm:$0xff]  ;;  %v3455_v40 = vld [vmem:[#allocation3 + $0x6a] sm:$0xff] }
 0x2dc   : > { %v3112_v53 = vld [vmem:[#allocation3 + $0xe0] sm:$0xff]  ;;  %v2606_v25 = vld [vmem:[#allocation3 + $0xd5] sm:$0xff] }
 0x2dd   : > { %3239 = vrot.lane.b32.xlu1 %v3342_v20, %s5643_s11  ;;  %2736 = vrot.lane.b32.xlu0 %v2694_v18, %s5643_s11  ;;  %3655 = vst.msk [vmem:[#allocation4 + $0x100] sm:$0xff] %vm1287_vm10, %v3637_v22  ;;  %v3135_v17 = vpack.c.bf16 %v3112_v53, %v3111_v1  ;;  %v2607_v37 = vld [vmem:[#allocation3 + $0xdd] sm:$0xff]  ;;  %v3487_v22 = vpack.c.bf16 %v3456_v31, %v3455_v40 }
 0x2de   : > { %v2453_v43 = vpop.permute.xlu1 %2452  ;;  %v2629_v57 = vpack.c.bf16 %v2607_v37, %v2606_v25  ;;  %v2349_v20 = vld [vmem:[%s5736_s9 + $0xf0] sm:$0xff]  ;;  %v2954_v18 = vld [vmem:[#allocation3 + $0x77] sm:$0xff] }
 0x2df   : > { %v2534_v0 = vmul.f32 %v2453_v43, %v2348_v47  ;;  %3153 = vst.msk [vmem:[#allocation4 + $0x128] sm:$0xff] %vm1287_vm10, %v3135_v17  ;;  %v2984_v9 = vpack.c.bf16 %v2955_v5, %v2954_v18  ;;  %v2666_v1 = vld [vmem:[#allocation3 + $0x76] sm:$0xff]  ;;  %v3314_v47 = vld [vmem:[#allocation3 + $0x81] sm:$0xff] }
 0x2e0   : > { %v2455_v10 = vpop.permute.xlu0 %2454  ;;  %2647 = vst.msk [vmem:[#allocation4 + $0x138] sm:$0xff] %vm1287_vm10, %v2629_v57  ;;  %v2695_v53 = vpack.c.bf16 %v2667_v30, %v2666_v1  ;;  %v3613_v43 = vld [vmem:[#allocation3 + $0xdb] sm:$0xff]  ;;  %v3320_v1 = vld [vmem:[#allocation3 + $0xb1] sm:$0xff] }
 0x2e1   : > { %2881 = vrot.lane.b32.xlu0 %v2983_v58, %s5645_s12  ;;  %3383 = vrot.lane.b32.xlu1 %v3343_v27, %s5645_s12  ;;  %2570 = vst.msk [vmem:[#allocation3 + $0xe8] sm:$0xff] %vm1287_vm10, %v2534_v0  ;;  %v2535_v16 = vmul.f32 %v2455_v10, %v2349_v20  ;;  %v3313_v37 = vld [vmem:[#allocation3 + $0x79] sm:$0xff]  ;;  %v3458_v31 = vld [vmem:[#allocation3 + $0x82] sm:$0xff] }
 0x2e2   : > { %v3344_v0 = vpack.c.bf16 %v3314_v47, %v3313_v37  ;;  %v3176_v5 = vld [vmem:[#allocation3 + $0xa1] sm:$0xff]  ;;  %v3175_v18 = vld [vmem:[#allocation3 + $0x99] sm:$0xff] }
 0x2e3   : > { %2571 = vst.msk [vmem:[#allocation3 + $0xf0] sm:$0xff] %vm1287_vm10, %v2535_v16  ;;  %v3457_v40 = vld [vmem:[#allocation3 + $0x7a] sm:$0xff] }
 0x2e4   : > { %v3695_v58 = vld [vmem:[#allocation4 + $0x100] sm:$0xff]  ;;  %v3488_v30 = vpack.c.bf16 %v3458_v31, %v3457_v40 }
 0x2e5   : > { %3527 = vrot.lane.b32.xlu1 %v3487_v22, %s5646_s28  ;;  %3026 = vrot.lane.b32.xlu0 %v2984_v9, %s5646_s28 }
 0x2e6   : > { %5274 = vmatprep.mubr.msk.bf16.mxu0 %vm1287_vm10, %v3695_v58  ;;  %v7066_v58 = vpack.c.bf16 %v3176_v5, %v3175_v18  ;;  %v2669_v18 = vld [vmem:[#allocation3 + $0x8e] sm:$0xff] }
 0x2e8   : > { %v3614_v17 = vld [vmem:[#allocation3 + $0xe3] sm:$0xff] }
 0x2e9   : > { %3241 = vrot.lane.b32.xlu1 %v3343_v27, %s5643_s11  ;;  %2738 = vrot.lane.b32.xlu0 %v2695_v53, %s5643_s11  ;;  %v3638_v25 = vpack.c.bf16 %v3614_v17, %v3613_v43  ;;  %v3113_v57 = vld [vmem:[#allocation3 + $0xe8] sm:$0xff]  ;;  %v2351_v17 = vld [vmem:[%s5736_s9 + $0x100] sm:$0xff] }
 0x2ea   : > { %v3114_v20 = vld [vmem:[#allocation3 + $0xf0] sm:$0xff]  ;;  %v2608_v16 = vld [vmem:[#allocation3 + $0xe5] sm:$0xff] }
 0x2eb   : > { %3656 = vst.msk [vmem:[#allocation4 + $0x118] sm:$0xff] %vm1287_vm10, %v3638_v25  ;;  %v3136_v10 = vpack.c.bf16 %v3114_v20, %v3113_v57  ;;  %v2609_v27 = vld [vmem:[#allocation3 + $0xed] sm:$0xff] }
 0x2ec   : > { %v2630_v22 = vpack.c.bf16 %v2609_v27, %v2608_v16  ;;  %v2350_v53 = vld [vmem:[%s5736_s9 + $0xf8] sm:$0xff]  ;;  %v3464_v20 = vld [vmem:[#allocation3 + $0xb2] sm:$0xff] }
 0x2ed   : > { %2883 = vrot.lane.b32.xlu0 %v2984_v9, %s5645_s12  ;;  %3385 = vrot.lane.b32.xlu1 %v3344_v0, %s5645_s12  ;;  %3154 = vst.msk [vmem:[#allocation4 + $0x140] sm:$0xff] %vm1287_vm10, %v3136_v10  ;;  %v3319_v43 = vld [vmem:[#allocation3 + $0xa9] sm:$0xff] }
 0x2ee   : > { %2648 = vst.msk [vmem:[#allocation4 + $0x150] sm:$0xff] %vm1287_vm10, %v2630_v22  ;;  %v3347_v31 = vpack.c.bf16 %v3320_v1, %v3319_v43  ;;  %v2957_v57 = vld [vmem:[#allocation3 + $0x8f] sm:$0xff]  ;;  %v2956_v10 = vld [vmem:[#allocation3 + $0x87] sm:$0xff] }
 0x2ef   : > { %v3463_v16 = vld [vmem:[#allocation3 + $0xaa] sm:$0xff]  ;;  %v2985_v27 = vpack.c.bf16 %v2957_v57, %v2956_v10 }
 0x2f0   : > { %v2457_v47 = vpop.permute.xlu1 %2456  ;;  %v3491_v40 = vpack.c.bf16 %v3464_v20, %v3463_v16  ;;  %v2668_v22 = vld [vmem:[#allocation3 + $0x86] sm:$0xff] }
 0x2f1   : > { %3529 = vrot.lane.b32.xlu1 %v3488_v30, %s5646_s28  ;;  %3247 = vrot.lane.b32.xlu0 %v7066_v58, %s5643_s11  ;;  %v2536_v9 = vmul.f32 %v2457_v47, %v2350_v53  ;;  %v3615_v30 = vld [vmem:[#allocation3 + $0xeb] sm:$0xff]  ;;  %v2696_v53 = vpack.c.bf16 %v2669_v18, %v2668_v22  ;;  %v3466_v18 = vld [vmem:[#allocation3 + $0xc2] sm:$0xff] }
 0x2f2   : > { %v2459_v25 = vpop.permute.xlu0 %2458  ;;  %v3698_v37 = vld [vmem:[#allocation4 + $0x118] sm:$0xff] }
 0x2f3   : > { %2572 = vst.msk [vmem:[#allocation3 + $0xf8] sm:$0xff] %vm1287_vm10, %v2536_v9  ;;  %v2537_v5 = vmul.f32 %v2459_v25, %v2351_v17  ;;  %5275 = vmatmul.mubr.msk.bf16.gmra.mrb[92].mxu0 %vm1287_vm10, %v3698_v37  ;;  %v3321_v9 = vld [vmem:[#allocation3 + $0xb9] sm:$0xff] }
 0x2f4   : > { %v2352_v25 = vld [vmem:[%s5736_s9 + $0x108] sm:$0xff] }
 0x2f5   : > { %3243 = vrot.lane.b32.xlu1 %v3344_v0, %s5643_s11  ;;  %3391 = vrot.lane.b32.xlu0 %v3347_v31, %s5645_s12  ;;  %2573 = vst.msk [vmem:[#allocation3 + $0x100] sm:$0xff] %vm1287_vm10, %v2537_v5  ;;  %v3322_v0 = vld [vmem:[#allocation3 + $0xc1] sm:$0xff] }
 0x2f6   : > { %v3348_v5 = vpack.c.bf16 %v3322_v0, %v3321_v9 }
 0x2f9   : > { %3028 = vrot.lane.b32.xlu1 %v2985_v27, %s5646_s28  ;;  %3535 = vrot.lane.b32.xlu0 %v3491_v40, %s5646_s28  ;;  %v3316_v40 = vld [vmem:[#allocation3 + $0x91] sm:$0xff] }
 0x2fa   : > { %v3616_v1 = vld [vmem:[#allocation3 + $0xf3] sm:$0xff] }
 0x2fb   : > { %v3639_v47 = vpack.c.bf16 %v3616_v1, %v3615_v30  ;;  %v3115_v43 = vld [vmem:[#allocation3 + $0xf8] sm:$0xff] }
 0x2fc   : > { %v3116_v17 = vld [vmem:[#allocation3 + $0x100] sm:$0xff]  ;;  %v2610_v20 = vld [vmem:[#allocation3 + $0xf5] sm:$0xff] }
 0x2fd   : > { %2740 = vrot.lane.b32.xlu1 %v2696_v53, %s5643_s11  ;;  %3249 = vrot.lane.b32.xlu0 %v3347_v31, %s5643_s11  ;;  %3657 = vst.msk [vmem:[#allocation4 + $0x130] sm:$0xff] %vm1287_vm10, %v3639_v47  ;;  %v3137_v57 = vpack.c.bf16 %v3116_v17, %v3115_v43  ;;  %v2611_v10 = vld [vmem:[#allocation3 + $0xfd] sm:$0xff]  ;;  %v3315_v53 = vld [vmem:[#allocation3 + $0x89] sm:$0xff]  ;;  %v3460_v43 = vld [vmem:[#allocation3 + $0x92] sm:$0xff] }
 0x2fe   : > { %v2461_v37 = vpop.permute.xlu1 %2460  ;;  %v2631_v22 = vpack.c.bf16 %v2611_v10, %v2610_v20  ;;  %v2353_v31 = vld [vmem:[%s5736_s9 + $0x110] sm:$0xff]  ;;  %v3345_v0 = vpack.c.bf16 %v3316_v40, %v3315_v53 }
 0x2ff   : > { %v2538_v16 = vmul.f32 %v2461_v37, %v2352_v25  ;;  %3155 = vst.msk [vmem:[#allocation4 + $0x158] sm:$0xff] %vm1287_vm10, %v3137_v57  ;;  %v3465_v47 = vld [vmem:[#allocation3 + $0xba] sm:$0xff]  ;;  %v3459_v25 = vld [vmem:[#allocation3 + $0x8a] sm:$0xff] }
 0x300   : > { %v2463_v30 = vpop.permute.xlu0 %2462  ;;  %2649 = vst.msk [vmem:[#allocation4 + $0x168] sm:$0xff] %vm1287_vm10, %v2631_v22  ;;  %v3492_v9 = vpack.c.bf16 %v3466_v18, %v3465_v47  ;;  %v3489_v37 = vpack.c.bf16 %v3460_v43, %v3459_v25  ;;  %v3324_v57 = vld [vmem:[#allocation3 + $0xd1] sm:$0xff]  ;;  %v3617_v20 = vld [vmem:[#allocation3 + $0xfb] sm:$0xff]  ;;  %v3323_v18 = vld [vmem:[#allocation3 + $0xc9] sm:$0xff] }
 0x301   : > { %2885 = vrot.lane.b32.xlu1 %v2985_v27, %s5645_s12  ;;  %3393 = vrot.lane.b32.xlu0 %v3348_v5, %s5645_s12  ;;  %2574 = vst.msk [vmem:[#allocation3 + $0x108] sm:$0xff] %vm1287_vm10, %v2538_v16  ;;  %v2539_v1 = vmul.f32 %v2463_v30, %v2353_v31  ;;  %v3349_v22 = vpack.c.bf16 %v3324_v57, %v3323_v18  ;;  %v2959_v31 = vld [vmem:[#allocation3 + $0x9f] sm:$0xff]  ;;  %v3468_v30 = vld [vmem:[#allocation3 + $0xd2] sm:$0xff] }
 0x302   : > { %v2355_v18 = vld [vmem:[%s5736_s9 + $0x120] sm:$0xff] }
 0x303   : > { %2575 = vst.msk [vmem:[#allocation3 + $0x110] sm:$0xff] %vm1287_vm10, %v2539_v1 }
 0x304   : > { %v3015_v27 = vpop.permute.xlu0 %3014  ;;  %v3701_v17 = vld [vmem:[#allocation4 + $0x130] sm:$0xff] }
 0x305   : > { %3387 = vrot.lane.b32.xlu1 %v3345_v0, %s5645_s12  ;;  %3537 = vrot.lane.b32.xlu0 %v3492_v9, %s5646_s28  ;;  %3069 = vst.msk [vmem:[#allocation4] sm:$0xff] %vm3068_vm15, %v3015_v27  ;;  %v2958_v27 = vld [vmem:[#allocation3 + $0x97] sm:$0xff] }
 0x306   : > { %5278 = vmatprep.mubr.msk.bf16.mxu0 %vm1287_vm10, %v3701_v17  ;;  %v3467_v17 = vld [vmem:[#allocation3 + $0xca] sm:$0xff] }
 0x307   : > { %v3493_v57 = vpack.c.bf16 %v3468_v30, %v3467_v17  ;;  %v3326_v30 = vld [vmem:[#allocation3 + $0xe1] sm:$0xff] }
 0x308   : > { %v3618_v10 = vld [vmem:[#allocation3 + $0x103] sm:$0xff]  ;;  %v2727_v16 = vpop.permute.xlu0 %2726 }
 0x309   : > { %3531 = vrot.lane.b32.xlu1 %v3489_v37, %s5646_s28  ;;  %3251 = vrot.lane.b32.xlu0 %v3348_v5, %s5643_s11  ;;  %v3640_v40 = vpack.c.bf16 %v3618_v10, %v3617_v20  ;;  %2780 = vst.msk [vmem:[#allocation4 + $0x18] sm:$0xff] %vm2778_vm13, %v2727_v16  ;;  %v3117_v1 = vld [vmem:[#allocation3 + $0x108] sm:$0xff]  ;;  %v2986_v37 = vpack.c.bf16 %v2959_v31, %v2958_v27  ;;  %v2671_v20 = vld [vmem:[#allocation3 + $0x9e] sm:$0xff] }
 0x30a   : > { %v3118_v53 = vld [vmem:[#allocation3 + $0x110] sm:$0xff]  ;;  %v2612_v5 = vld [vmem:[#allocation3 + $0x105] sm:$0xff] }
 0x30b   : > { %3658 = vst.msk [vmem:[#allocation4 + $0x148] sm:$0xff] %vm1287_vm10, %v3640_v40  ;;  %v3138_v9 = vpack.c.bf16 %v3118_v53, %v3117_v1  ;;  %v2613_v43 = vld [vmem:[#allocation3 + $0x10d] sm:$0xff]  ;;  %v2670_v40 = vld [vmem:[#allocation3 + $0x96] sm:$0xff]  ;;  %v3470_v17 = vld [vmem:[#allocation3 + $0xe2] sm:$0xff] }
 0x30c   : > { %v2872_v47 = vpop.permute.xlu0 %2871  ;;  %v2632_v25 = vpack.c.bf16 %v2613_v43, %v2612_v5  ;;  %v3325_v5 = vld [vmem:[#allocation3 + $0xd9] sm:$0xff]  ;;  %v3474_v12 = vld [vmem:[#allocation3 + $0x102] sm:$0xff] }
 0x30d   : > { %3245 = vrot.lane.b32.xlu1 %v3345_v0, %s5643_s11  ;;  %3395 = vrot.lane.b32.xlu0 %v3349_v22, %s5645_s12  ;;  %2925 = vst.msk [vmem:[#allocation4 + $0x18] sm:$0xff] %vm2923_vm14, %v2872_v47  ;;  %v2354_v0 = vld [vmem:[%s5736_s9 + $0x118] sm:$0xff]  ;;  %v2697_v47 = vpack.c.bf16 %v2671_v20, %v2670_v40  ;;  %v3350_v27 = vpack.c.bf16 %v3326_v30, %v3325_v5 }
 0x30e   : > { %3156 = vst.msk [vmem:[#allocation4 + $0x170] sm:$0xff] %vm1287_vm10, %v3138_v9  ;;  %2650 = vst.msk [vmem:[#allocation4 + $0x180] sm:$0xff] %vm1287_vm10, %v2632_v25  ;;  %v3469_v25 = vld [vmem:[#allocation3 + $0xda] sm:$0xff] }
 0x311   : > { %v2465_v10 = vpop.permute.xlu1 %2464  ;;  %3030 = vrot.lane.b32.xlu1 %v2986_v37, %s5646_s28  ;;  %3539 = vrot.lane.b32.xlu0 %v3493_v57, %s5646_s28  ;;  %v3619_v57 = vld [vmem:[#allocation3 + $0x10b] sm:$0xff] }
 0x312   : > { %v2540_v16 = vmul.f32 %v2465_v10, %v2354_v0  ;;  %v3704_v53 = vld [vmem:[#allocation4 + $0x148] sm:$0xff] }
 0x313   : > { %v2467_v1 = vpop.permute.xlu0 %2466  ;;  %5279 = vmatmul.mubr.msk.bf16.gmra.mrb[96].mxu0 %vm1287_vm10, %v3704_v53 }
 0x314   : > { %2576 = vst.msk [vmem:[#allocation3 + $0x118] sm:$0xff] %vm1287_vm10, %v2540_v16  ;;  %v2541_v31 = vmul.f32 %v2467_v1, %v2355_v18  ;;  %v3462_v16 = vld [vmem:[#allocation3 + $0xa2] sm:$0xff]  ;;  %v2356_v1 = vld [vmem:[%s5736_s9 + $0x128] sm:$0xff] }
 0x315   : > { %v3232_v9 = vpop.permute.xlu1 %3231  ;;  %2742 = vrot.lane.b32.xlu1 %v2697_v47, %s5643_s11  ;;  %3253 = vrot.lane.b32.xlu0 %v3349_v22, %s5643_s11  ;;  %v3494_v22 = vpack.c.bf16 %v3470_v17, %v3469_v25  ;;  %v2961_v17 = vld [vmem:[#allocation3 + $0xaf] sm:$0xff] }
 0x316   : > { %2577 = vst.msk [vmem:[#allocation3 + $0x120] sm:$0xff] %vm1287_vm10, %v2541_v31 }
 0x317   : > { %3285 = vst.msk [vmem:[#allocation4 + $0x8] sm:$0xff] %vm2778_vm13, %v3232_v9  ;;  %v3017_v43 = vpop.permute.xlu0 %3016 }
 0x318   : > { %3070 = vst.msk [vmem:[#allocation4 + $0x18] sm:$0xff] %vm3068_vm15, %v3017_v43 }
 0x319   : > { %2887 = vrot.lane.b32.xlu1 %v2986_v37, %s5645_s12  ;;  %3397 = vrot.lane.b32.xlu0 %v3350_v27, %s5645_s12  ;;  %v3461_v37 = vld [vmem:[#allocation3 + $0x9a] sm:$0xff] }
 0x31a   : > { %v3490_v31 = vpack.c.bf16 %v3462_v16, %v3461_v37 }
 0x31b   : > { %v3620_v20 = vld [vmem:[#allocation3 + $0x113] sm:$0xff]  ;;  %v2729_v0 = vpop.permute.xlu0 %2728 }
 0x31c   : > { %v3641_v10 = vpack.c.bf16 %v3620_v20, %v3619_v57  ;;  %2781 = vst.msk [vmem:[#allocation4 + $0x30] sm:$0xff] %vm2778_vm13, %v2729_v0  ;;  %v3119_v40 = vld [vmem:[#allocation3 + $0x118] sm:$0xff]  ;;  %v2960_v57 = vld [vmem:[#allocation3 + $0xa7] sm:$0xff] }
 0x31d   : > { %3389 = vrot.lane.b32.xlu1 %v7066_v58, %s5645_s12  ;;  %3541 = vrot.lane.b32.xlu0 %v3494_v22, %s5646_s28  ;;  %v3120_v18 = vld [vmem:[#allocation3 + $0x120] sm:$0xff]  ;;  %v2614_v9 = vld [vmem:[#allocation3 + $0x115] sm:$0xff]  ;;  %v3327_v20 = vld [vmem:[#allocation3 + $0xe9] sm:$0xff]  ;;  %v2987_v16 = vpack.c.bf16 %v2961_v17, %v2960_v57 }
 0x31e   : > { %3659 = vst.msk [vmem:[#allocation4 + $0x160] sm:$0xff] %vm1287_vm10, %v3641_v10  ;;  %v3139_v30 = vpack.c.bf16 %v3120_v18, %v3119_v40  ;;  %v2615_v5 = vld [vmem:[#allocation3 + $0x11d] sm:$0xff]  ;;  %v3328_v58 = vld [vmem:[#allocation3 + $0xf1] sm:$0xff] }
 0x31f   : > { %v2469_v53 = vpop.permute.xlu1 %2468  ;;  %v2874_v47 = vpop.permute.xlu0 %2873  ;;  %v2633_v25 = vpack.c.bf16 %v2615_v5, %v2614_v9  ;;  %v2357_v22 = vld [vmem:[%s5736_s9 + $0x130] sm:$0xff]  ;;  %v3351_v37 = vpack.c.bf16 %v3328_v58, %v3327_v20  ;;  %v2673_v18 = vld [vmem:[#allocation3 + $0xae] sm:$0xff] }
 0x320   : > { %v2542_v43 = vmul.f32 %v2469_v53, %v2356_v1  ;;  %2926 = vst.msk [vmem:[#allocation4 + $0x30] sm:$0xff] %vm2923_vm14, %v2874_v47  ;;  %v3472_v1 = vld [vmem:[#allocation3 + $0xf2] sm:$0xff]  ;;  %v3471_v53 = vld [vmem:[#allocation3 + $0xea] sm:$0xff]  ;;  %v3621_v17 = vld [vmem:[#allocation3 + $0x11b] sm:$0xff] }
 0x321   : > { %3533 = vrot.lane.b32.xlu1 %v3490_v31, %s5646_s28  ;;  %3255 = vrot.lane.b32.xlu0 %v3350_v27, %s5643_s11  ;;  %3157 = vst.msk [vmem:[#allocation4 + $0x188] sm:$0xff] %vm1287_vm10, %v3139_v30  ;;  %2651 = vst.msk [vmem:[#allocation4 + $0x198] sm:$0xff] %vm1287_vm10, %v2633_v25  ;;  %v2672_v27 = vld [vmem:[#allocation3 + $0xa6] sm:$0xff]  ;;  %v3495_v9 = vpack.c.bf16 %v3472_v1, %v3471_v53  ;;  %v2962_v53 = vld [vmem:[#allocation3 + $0xb7] sm:$0xff] }
 0x322   : > { %2578 = vst.msk [vmem:[#allocation3 + $0x128] sm:$0xff] %vm1287_vm10, %v2542_v43  ;;  %v2698_v30 = vpack.c.bf16 %v2673_v18, %v2672_v27 }
 0x323   : > { %v3376_v0 = vpop.permute.xlu1 %3375  ;;  %v2471_v10 = vpop.permute.xlu0 %2470 }
 0x324   : > { %3429 = vst.msk [vmem:[#allocation4 + $0x8] sm:$0xff] %vm2923_vm14, %v3376_v0  ;;  %v2543_v40 = vmul.f32 %v2471_v10, %v2357_v22  ;;  %v2963_v10 = vld [vmem:[#allocation3 + $0xbf] sm:$0xff] }
 0x325   : > { %3032 = vrot.lane.b32.xlu1 %v2987_v16, %s5646_s28  ;;  %3399 = vrot.lane.b32.xlu0 %v3351_v37, %s5645_s12 }
 0x326   : > { %2579 = vst.msk [vmem:[#allocation3 + $0x130] sm:$0xff] %vm1287_vm10, %v2543_v40  ;;  %v7136_v31 = vpop.f32.mrb[72].mxu0  ;;  %v3330_v40 = vld [vmem:[#allocation3 + $0x101] sm:$0xff] }
 0x327   : > { %v3520_v47 = vpop.permute.xlu1 %3519  ;;  %v3019_v5 = vpop.permute.xlu0 %3018 }
 0x328   : > { %3573 = vst.msk [vmem:[#allocation4 + $0x8] sm:$0xff] %vm3068_vm15, %v3520_v47  ;;  %v7139_v43 = vpop.f32.mrb[73].mxu0  ;;  %3071 = vst.msk [vmem:[#allocation4 + $0x30] sm:$0xff] %vm3068_vm15, %v3019_v5  ;;  %v3329_v47 = vld [vmem:[#allocation3 + $0xf9] sm:$0xff]  ;;  %v2988_v5 = vpack.c.bf16 %v2963_v10, %v2962_v53 }
 0x329   : > { %v3622_v58 = vld [vmem:[#allocation3 + $0x123] sm:$0xff]  ;;  %v7142_v25 = vpop.f32.mrb[74].mxu0  ;;  %2744 = vrot.lane.b32.xlu1 %v2698_v30, %s5643_s11  ;;  %3543 = vrot.lane.b32.xlu0 %v3495_v9, %s5646_s28  ;;  %v2674_v10 = vld [vmem:[#allocation3 + $0xb6] sm:$0xff] }
 0x32a   : > { %v3642_v57 = vpack.c.bf16 %v3622_v58, %v3621_v17  ;;  %v7146_v20 = vpop.f32.mrb[75].mxu0  ;;  %v3352_v17 = vpack.c.bf16 %v3330_v40, %v3329_v47  ;;  %v3121_v58 = vld [vmem:[#allocation3 + $0x128] sm:$0xff]  ;;  %v3473_v40 = vld [vmem:[#allocation3 + $0xfa] sm:$0xff] }
 0x32b   : > { %v3234_v0 = vpop.permute.xlu1 %3233  ;;  %v2731_v22 = vpop.permute.xlu0 %2730  ;;  %v5534_v47 = vld [vmem:[%s7885_s2 + $0x88] sm:$0xff]  }
 0x32c   : > { %3660 = vst.msk [vmem:[#allocation4 + $0x178] sm:$0xff] %vm1287_vm10, %v3642_v57 }
 0x32d   : > { %3286 = vst.msk [vmem:[#allocation4 + $0x20] sm:$0xff] %vm2778_vm13, %v3234_v0  ;;  %v3623_v18 = vld [vmem:[#allocation3 + $0x12b] sm:$0xff]  ;;  %v3624_v1 = vld [vmem:[#allocation3 + $0x133] sm:$0xff]  ;;  %2782 = vst.msk [vmem:[#allocation4 + $0x48] sm:$0xff] %vm2778_vm13, %v2731_v22  ;;  %2889 = vrot.lane.b32.xlu1 %v2987_v16, %s5645_s12  ;;  %3257 = vrot.lane.b32.xlu0 %v3351_v37, %s5643_s11 }
 0x32e   : > { %v3643_v27 = vpack.c.bf16 %v3624_v1, %v3623_v18  ;;  %v3122_v57 = vld [vmem:[#allocation3 + $0x130] sm:$0xff]  ;;  %v2675_v22 = vld [vmem:[#allocation3 + $0xbe] sm:$0xff] }
 0x32f   : > { %v3378_v30 = vpop.permute.xlu1 %3377  ;;  %v3664_v9 = vld [vmem:[#allocation4 + $0x8] sm:$0xff]  ;;  %v2876_v0 = vpop.permute.xlu0 %2875  ;;  %v3140_v16 = vpack.c.bf16 %v3122_v57, %v3121_v58  ;;  %v3663_v37 = vld [vmem:[#allocation4] sm:$0xff]  ;;  %v2699_v1 = vpack.c.bf16 %v2675_v22, %v2674_v10  ;;  %v2964_v58 = vld [vmem:[#allocation3 + $0xc7] sm:$0xff] }
 0x330   : > { %3661 = vst.msk [vmem:[#allocation4 + $0x190] sm:$0xff] %vm1287_vm10, %v3643_v27  ;;  %3947 = vmatprep.mubr.bf16.mxu1 %v3664_v9  ;;  %v3496_v27 = vpack.c.bf16 %v3474_v12, %v3473_v40  ;;  %v3332_v9 = vld [vmem:[#allocation3 + $0x111] sm:$0xff]  ;;  %v3331_v57 = vld [vmem:[#allocation3 + $0x109] sm:$0xff] }
 0x331   : > { %3430 = vst.msk [vmem:[#allocation4 + $0x20] sm:$0xff] %vm2923_vm14, %v3378_v30  ;;  %2927 = vst.msk [vmem:[#allocation4 + $0x48] sm:$0xff] %vm2923_vm14, %v2876_v0  ;;  %3034 = vrot.lane.b32.xlu1 %v2988_v5, %s5646_s28  ;;  %3401 = vrot.lane.b32.xlu0 %v3352_v17, %s5645_s12  ;;  %v2677_v40 = vld [vmem:[#allocation3 + $0xce] sm:$0xff] }
 0x332   : > { %3948 = vmatmul.mubr.bf16.vlgmr.msra.gmra.mrb[36].mxu1 %v3663_v37  ;;  %3158 = vst.msk [vmem:[#allocation4 + $0x1a0] sm:$0xff] %vm1287_vm10, %v3140_v16  ;;  %v3353_v37 = vpack.c.bf16 %v3332_v9, %v3331_v57  ;;  %v2967_v9 = vld [vmem:[#allocation3 + $0xdf] sm:$0xff]  ;;  %v2966_v57 = vld [vmem:[#allocation3 + $0xd7] sm:$0xff] }
 0x333   : > { %v3522_v18 = vpop.permute.xlu1 %3521  ;;  %5292 = vmatpush3.bf16.msra.mxu1 %v7004_v11  ;;  %v3021_v53 = vpop.permute.xlu0 %3020  ;;  %v2965_v11 = vld [vmem:[#allocation3 + $0xcf] sm:$0xff] }
 0x334   : > { %3574 = vst.msk [vmem:[#allocation4 + $0x20] sm:$0xff] %vm3068_vm15, %v3522_v18  ;;  %5291 = vmatprep.subr.bf16.mxu1 %v5534_v47  ;;  %3072 = vst.msk [vmem:[#allocation4 + $0x48] sm:$0xff] %vm3068_vm15, %v3021_v53  ;;  %v2989_v16 = vpack.c.bf16 %v2965_v11, %v2964_v58  ;;  %v3476_v18 = vld [vmem:[#allocation3 + $0x112] sm:$0xff]  ;;  %v3334_v58 = vld [vmem:[#allocation3 + $0x121] sm:$0xff] }
 0x335   : > { %2746 = vrot.lane.b32.xlu1 %v2699_v1, %s5643_s11  ;;  %3545 = vrot.lane.b32.xlu0 %v3496_v27, %s5646_s28  ;;  %v3475_v1 = vld [vmem:[#allocation3 + $0x10a] sm:$0xff] }
 0x337   : > { %v3236_v30 = vpop.permute.xlu1 %3235  ;;  %5293 = vmatpush3.bf16.msra.mxu1 %v5534_v47  ;;  %v2733_v12 = vpop.permute.xlu0 %2732  ;;  %v3497_v47 = vpack.c.bf16 %v3476_v18, %v3475_v1  ;;  %v2990_v18 = vpack.c.bf16 %v2967_v9, %v2966_v57 }
 0x338   : > { %3287 = vst.msk [vmem:[#allocation4 + $0x38] sm:$0xff] %vm2778_vm13, %v3236_v30  ;;  %2783 = vst.msk [vmem:[#allocation4 + $0x60] sm:$0xff] %vm2778_vm13, %v2733_v12 }
 0x339   : > { %2891 = vrot.lane.b32.xlu1 %v2988_v5, %s5645_s12  ;;  %3259 = vrot.lane.b32.xlu0 %v3352_v17, %s5643_s11  ;;  %v3666_v5 = vld [vmem:[#allocation4 + $0x18] sm:$0xff] }
 0x33a   : > { %v2676_v17 = vld [vmem:[#allocation3 + $0xc6] sm:$0xff] }
 0x33b   : > { %v3380_v0 = vpop.permute.xlu1 %3379  ;;  %v3667_v22 = vld [vmem:[#allocation4 + $0x20] sm:$0xff]  ;;  %v2878_v10 = vpop.permute.xlu0 %2877  ;;  %v2700_v53 = vpack.c.bf16 %v2677_v40, %v2676_v17 }
 0x33c   : > { %3431 = vst.msk [vmem:[#allocation4 + $0x38] sm:$0xff] %vm2923_vm14, %v3380_v0  ;;  %3955 = vmatprep.mubr.bf16.mxu1 %v3667_v22  ;;  %2928 = vst.msk [vmem:[#allocation4 + $0x60] sm:$0xff] %vm2923_vm14, %v2878_v10  ;;  %v3333_v0 = vld [vmem:[#allocation3 + $0x119] sm:$0xff] }
 0x33d   : > { %3036 = vrot.lane.b32.xlu1 %v2989_v16, %s5646_s28  ;;  %3403 = vrot.lane.b32.xlu0 %v3353_v37, %s5645_s12 }
 0x33e   : > { %3956 = vmatmul.mubr.bf16.gmra.mrb[40].mxu1 %v3666_v5  ;;  %v3354_v5 = vpack.c.bf16 %v3334_v58, %v3333_v0 }
 0x33f   : > { %v3524_v27 = vpop.permute.xlu1 %3523  ;;  %v3023_v30 = vpop.permute.xlu0 %3022 }
 0x340   : > { %3575 = vst.msk [vmem:[#allocation4 + $0x38] sm:$0xff] %vm3068_vm15, %v3524_v27  ;;  %3073 = vst.msk [vmem:[#allocation4 + $0x60] sm:$0xff] %vm3068_vm15, %v3023_v30  ;;  %v2679_v27 = vld [vmem:[#allocation3 + $0xde] sm:$0xff]  ;;  %v2678_v30 = vld [vmem:[#allocation3 + $0xd6] sm:$0xff] }
 0x341   : > { %2748 = vrot.lane.b32.xlu1 %v2700_v53, %s5643_s11  ;;  %3547 = vrot.lane.b32.xlu0 %v3497_v47, %s5646_s28  ;;  %v3478_v53 = vld [vmem:[#allocation3 + $0x122] sm:$0xff]  ;;  %v2701_v9 = vpack.c.bf16 %v2679_v27, %v2678_v30 }
 0x342   : > { %v2968_v27 = vld [vmem:[#allocation3 + $0xe7] sm:$0xff] }
 0x343   : > { %v3238_v12 = vpop.permute.xlu1 %3237  ;;  %v2735_v11 = vpop.permute.xlu0 %2734 }
 0x344   : > { %3288 = vst.msk [vmem:[#allocation4 + $0x50] sm:$0xff] %vm2778_vm13, %v3238_v12  ;;  %2784 = vst.msk [vmem:[#allocation4 + $0x78] sm:$0xff] %vm2778_vm13, %v2735_v11  ;;  %v3477_v12 = vld [vmem:[#allocation3 + $0x11a] sm:$0xff] }
 0x345   : > { %2893 = vrot.lane.b32.xlu1 %v2989_v16, %s5645_s12  ;;  %3261 = vrot.lane.b32.xlu0 %v3353_v37, %s5643_s11  ;;  %v3669_v37 = vld [vmem:[#allocation4 + $0x30] sm:$0xff]  ;;  %v3498_v58 = vpack.c.bf16 %v3478_v53, %v3477_v12 }
 0x346   : > { %v7183_v22 = vpop.f32.mrb[76].mxu0 }
 0x347   : > { %v3382_v10 = vpop.permute.xlu1 %3381  ;;  %v3670_v40 = vld [vmem:[#allocation4 + $0x38] sm:$0xff]  ;;  %v2880_v17 = vpop.permute.xlu0 %2879 }
 0x348   : > { %3432 = vst.msk [vmem:[#allocation4 + $0x50] sm:$0xff] %vm2923_vm14, %v3382_v10  ;;  %3963 = vmatprep.mubr.bf16.mxu1 %v3670_v40  ;;  %v7186_v1 = vpop.f32.mrb[77].mxu0  ;;  %2929 = vst.msk [vmem:[#allocation4 + $0x78] sm:$0xff] %vm2923_vm14, %v2880_v17  ;;  %v2969_v40 = vld [vmem:[#allocation3 + $0xef] sm:$0xff] }
 0x349   : > { %v7189_v16 = vpop.f32.mrb[78].mxu0  ;;  %3038 = vrot.lane.b32.xlu1 %v2990_v18, %s5646_s28  ;;  %3405 = vrot.lane.b32.xlu0 %v3354_v5, %s5645_s12  ;;  %v3335_v17 = vld [vmem:[#allocation3 + $0x129] sm:$0xff]  ;;  %v2991_v12 = vpack.c.bf16 %v2969_v40, %v2968_v27 }
 0x34a   : > { %3964 = vmatmul.mubr.bf16.gmra.mrb[44].mxu1 %v3669_v37  ;;  %v7193_v47 = vpop.f32.mrb[79].mxu0  ;;  %v3336_v37 = vld [vmem:[#allocation3 + $0x131] sm:$0xff]  ;;  %v3482_v27 = vld [vmem:[#allocation3 + $0x142] sm:$0xff] }
 0x34b   : > { %v3526_v11 = vpop.permute.xlu1 %3525  ;;  %v3025_v57 = vpop.permute.xlu0 %3024 }
 0x34c   : > { %3576 = vst.msk [vmem:[#allocation4 + $0x50] sm:$0xff] %vm3068_vm15, %v3526_v11  ;;  %3074 = vst.msk [vmem:[#allocation4 + $0x78] sm:$0xff] %vm3068_vm15, %v3025_v57  ;;  %v3355_v11 = vpack.c.bf16 %v3336_v37, %v3335_v17  ;;  %v3479_v57 = vld [vmem:[#allocation3 + $0x12a] sm:$0xff]  ;;  %v3481_v37 = vld [vmem:[#allocation3 + $0x13a] sm:$0xff] }
 0x34d   : > { %2750 = vrot.lane.b32.xlu1 %v2701_v9, %s5643_s11  ;;  %3549 = vrot.lane.b32.xlu0 %v3498_v58, %s5646_s28  ;;  %v2681_v58 = vld [vmem:[#allocation3 + $0xee] sm:$0xff] }
 0x34f   : > { %v3240_v0 = vpop.permute.xlu1 %3239  ;;  %v2737_v10 = vpop.permute.xlu0 %2736 }
 0x350   : > { %3289 = vst.msk [vmem:[#allocation4 + $0x68] sm:$0xff] %vm2778_vm13, %v3240_v0  ;;  %2785 = vst.msk [vmem:[#allocation4 + $0x90] sm:$0xff] %vm2778_vm13, %v2737_v10  ;;  %v3480_v0 = vld [vmem:[#allocation3 + $0x132] sm:$0xff] }
 0x351   : > { %2895 = vrot.lane.b32.xlu1 %v2990_v18, %s5645_s12  ;;  %3263 = vrot.lane.b32.xlu0 %v3354_v5, %s5643_s11  ;;  %v3672_v18 = vld [vmem:[#allocation4 + $0x48] sm:$0xff]  ;;  %v2680_v5 = vld [vmem:[#allocation3 + $0xe6] sm:$0xff]  ;;  %v3499_v40 = vpack.c.bf16 %v3480_v0, %v3479_v57 }
 0x352   : > { %v2702_v42 = vpack.c.bf16 %v2681_v58, %v2680_v5  ;;  %v3500_v58 = vpack.c.bf16 %v3482_v27, %v3481_v37  ;;  %v2970_v57 = vld [vmem:[#allocation3 + $0xf7] sm:$0xff] }
 0x353   : > { %v3384_v53 = vpop.permute.xlu1 %3383  ;;  %v3673_v30 = vld [vmem:[#allocation4 + $0x50] sm:$0xff]  ;;  %v2882_v9 = vpop.permute.xlu0 %2881 }
 0x354   : > { %3433 = vst.msk [vmem:[#allocation4 + $0x68] sm:$0xff] %vm2923_vm14, %v3384_v53  ;;  %3971 = vmatprep.mubr.bf16.mxu1 %v3673_v30  ;;  %2930 = vst.msk [vmem:[#allocation4 + $0x90] sm:$0xff] %vm2923_vm14, %v2882_v9  ;;  %v2971_v9 = vld [vmem:[#allocation3 + $0xff] sm:$0xff] }
 0x355   : > { %3040 = vrot.lane.b32.xlu1 %v2991_v12, %s5646_s28  ;;  %3407 = vrot.lane.b32.xlu0 %v3355_v11, %s5645_s12 }
 0x356   : > { %3972 = vmatmul.mubr.bf16.gmra.mrb[48].mxu1 %v3672_v18 }
 0x357   : > { %v3528_v10 = vpop.permute.xlu1 %3527  ;;  %v3027_v17 = vpop.permute.xlu0 %3026 }
 0x358   : > { %3577 = vst.msk [vmem:[#allocation4 + $0x68] sm:$0xff] %vm3068_vm15, %v3528_v10  ;;  %3075 = vst.msk [vmem:[#allocation4 + $0x90] sm:$0xff] %vm3068_vm15, %v3027_v17  ;;  %v2683_v10 = vld [vmem:[#allocation3 + $0xfe] sm:$0xff] }
 0x359   : > { %2752 = vrot.lane.b32.xlu1 %v2702_v42, %s5643_s11  ;;  %3551 = vrot.lane.b32.xlu0 %v3499_v40, %s5646_s28  ;;  %v2992_v42 = vpack.c.bf16 %v2971_v9, %v2970_v57  ;;  %v3675_v40 = vld [vmem:[#allocation4 + $0x60] sm:$0xff] }
 0x35b   : > { %v3242_v53 = vpop.permute.xlu1 %3241  ;;  %v2739_v30 = vpop.permute.xlu0 %2738 }
 0x35c   : > { %3290 = vst.msk [vmem:[#allocation4 + $0x80] sm:$0xff] %vm2778_vm13, %v3242_v53  ;;  %2786 = vst.msk [vmem:[#allocation4 + $0xa8] sm:$0xff] %vm2778_vm13, %v2739_v30 }
 0x35d   : > { %2897 = vrot.lane.b32.xlu1 %v2991_v12, %s5645_s12  ;;  %3265 = vrot.lane.b32.xlu0 %v3355_v11, %s5643_s11  ;;  %v2682_v12 = vld [vmem:[#allocation3 + $0xf6] sm:$0xff] }
 0x35e   : > { %v2703_v17 = vpack.c.bf16 %v2683_v10, %v2682_v12 }
 0x35f   : > { %v3386_v0 = vpop.permute.xlu1 %3385  ;;  %v3676_v18 = vld [vmem:[#allocation4 + $0x68] sm:$0xff]  ;;  %v2884_v5 = vpop.permute.xlu0 %2883 }
 0x360   : > { %3434 = vst.msk [vmem:[#allocation4 + $0x80] sm:$0xff] %vm2923_vm14, %v3386_v0  ;;  %3979 = vmatprep.mubr.bf16.mxu1 %v3676_v18  ;;  %2931 = vst.msk [vmem:[#allocation4 + $0xa8] sm:$0xff] %vm2923_vm14, %v2884_v5  ;;  %v2972_v18 = vld [vmem:[#allocation3 + $0x107] sm:$0xff] }
 0x361   : > { %3042 = vrot.lane.b32.xlu1 %v2992_v42, %s5646_s28  ;;  %3553 = vrot.lane.b32.xlu0 %v3500_v58, %s5646_s28  ;;  %v2973_v58 = vld [vmem:[#allocation3 + $0x10f] sm:$0xff] }
 0x362   : > { %3980 = vmatmul.mubr.bf16.gmra.mrb[52].mxu1 %v3675_v40  ;;  %v2993_v40 = vpack.c.bf16 %v2973_v58, %v2972_v18 }
 0x363   : > { %v3530_v11 = vpop.permute.xlu1 %3529  ;;  %v3248_v37 = vpop.permute.xlu0 %3247 }
 0x364   : > { %3578 = vst.msk [vmem:[#allocation4 + $0x80] sm:$0xff] %vm3068_vm15, %v3530_v11  ;;  %v2685_v11 = vld [vmem:[#allocation3 + $0x10e] sm:$0xff] }
 0x365   : > { %3293 = vst.msk [vmem:[#allocation4 + $0xc8] sm:$0xff] %vm2778_vm13, %v3248_v37  ;;  %2754 = vrot.lane.b32.xlu1 %v2703_v17, %s5643_s11  ;;  %4521 = vrot.lane.b32.xlu0 %v6565_v26, %s5645_s12  ;;  %v2684_v17 = vld [vmem:[#allocation3 + $0x106] sm:$0xff] }
 0x367   : > { %v7224_v27 = vpop.f32.mrb[80].mxu0  ;;  %v3244_v53 = vpop.permute.xlu1 %3243 }
 0x368   : > { %3291 = vst.msk [vmem:[#allocation4 + $0x98] sm:$0xff] %vm2778_vm13, %v3244_v53  ;;  %v3392_v30 = vpop.permute.xlu0 %3391  ;;  %v7227_v9 = vpop.f32.mrb[81].mxu0  ;;  %v2704_v53 = vpack.c.bf16 %v2685_v11, %v2684_v17  ;;  %v2687_v17 = vld [vmem:[#allocation3 + $0x11e] sm:$0xff] }
 0x369   : > { %3437 = vst.msk [vmem:[#allocation4 + $0xc8] sm:$0xff] %vm2923_vm14, %v3392_v30  ;;  %v7230_v57 = vpop.f32.mrb[82].mxu0  ;;  %2899 = vrot.lane.b32.xlu1 %v2992_v42, %s5645_s12  ;;  %4525 = vrot.lane.b32.xlu0 %v6577_v34, %s5645_s12  ;;  %v3678_v42 = vld [vmem:[#allocation4 + $0x78] sm:$0xff] }
 0x36a   : > { %v7235_v0 = vpop.f32.mrb[83].mxu0 }
 0x36b   : > { %v3029_v5 = vpop.permute.xlu1 %3028  ;;  %v3679_v10 = vld [vmem:[#allocation4 + $0x80] sm:$0xff] }
 0x36c   : > { %3076 = vst.msk [vmem:[#allocation4 + $0xa8] sm:$0xff] %vm3068_vm15, %v3029_v5  ;;  %v3536_v12 = vpop.permute.xlu0 %3535  ;;  %3987 = vmatprep.mubr.bf16.mxu1 %v3679_v10  ;;  %v2975_v5 = vld [vmem:[#allocation3 + $0x11f] sm:$0xff]  ;;  %v2974_v10 = vld [vmem:[#allocation3 + $0x117] sm:$0xff] }
 0x36d   : > { %3581 = vst.msk [vmem:[#allocation4 + $0xc8] sm:$0xff] %vm3068_vm15, %v3536_v12  ;;  %3044 = vrot.lane.b32.xlu1 %v2993_v40, %s5646_s28  ;;  %4529 = vrot.lane.b32.xlu0 %v6601_v61, %s5645_s12  ;;  %v2994_v11 = vpack.c.bf16 %v2975_v5, %v2974_v10  ;;  %v2977_v5 = vld [vmem:[#allocation3 + $0x12f] sm:$0xff]  ;;  %v2976_v10 = vld [vmem:[#allocation3 + $0x127] sm:$0xff] }
 0x36e   : > { %3988 = vmatmul.mubr.bf16.gmra.mrb[56].mxu1 %v3678_v42 }
 0x36f   : > { %v2741_v37 = vpop.permute.xlu1 %2740 }
 0x370   : > { %2787 = vst.msk [vmem:[#allocation4 + $0xc0] sm:$0xff] %vm2778_vm13, %v2741_v37  ;;  %v3250_v30 = vpop.permute.xlu0 %3249  ;;  %v2686_v37 = vld [vmem:[#allocation3 + $0x116] sm:$0xff] }
 0x371   : > { %3294 = vst.msk [vmem:[#allocation4 + $0xe0] sm:$0xff] %vm2778_vm13, %v3250_v30  ;;  %2756 = vrot.lane.b32.xlu1 %v2704_v53, %s5643_s11  ;;  %4533 = vrot.lane.b32.xlu0 %v6620_v19, %s5645_s12 }
 0x373   : > { %v2886_v58 = vpop.permute.xlu1 %2885 }
 0x374   : > { %2932 = vst.msk [vmem:[#allocation4 + $0xc0] sm:$0xff] %vm2923_vm14, %v2886_v58  ;;  %v3394_v18 = vpop.permute.xlu0 %3393 }
 0x375   : > { %3438 = vst.msk [vmem:[#allocation4 + $0xe0] sm:$0xff] %vm2923_vm14, %v3394_v18  ;;  %2901 = vrot.lane.b32.xlu1 %v2993_v40, %s5645_s12  ;;  %4537 = vrot.lane.b32.xlu0 %v6639_v48, %s5645_s12  ;;  %v2705_v40 = vpack.c.bf16 %v2687_v17, %v2686_v37  ;;  %v2995_v17 = vpack.c.bf16 %v2977_v5, %v2976_v10  ;;  %v3625_v5 = vld [vmem:[#allocation3 + $0x13b] sm:$0xff]  ;;  %v3626_v10 = vld [vmem:[#allocation3 + $0x143] sm:$0xff] }
 0x377   : > { %v3388_v12 = vpop.permute.xlu1 %3387 }
 0x378   : > { %3435 = vst.msk [vmem:[#allocation4 + $0x98] sm:$0xff] %vm2923_vm14, %v3388_v12  ;;  %v3538_v42 = vpop.permute.xlu0 %3537 }
 0x379   : > { %3582 = vst.msk [vmem:[#allocation4 + $0xe0] sm:$0xff] %vm3068_vm15, %v3538_v42  ;;  %3046 = vrot.lane.b32.xlu1 %v2994_v11, %s5646_s28  ;;  %4541 = vrot.lane.b32.xlu0 %v6655_v7, %s5645_s12 }
 0x37b   : > { %v3532_v53 = vpop.permute.xlu1 %3531 }
 0x37c   : > { %3579 = vst.msk [vmem:[#allocation4 + $0x98] sm:$0xff] %vm3068_vm15, %v3532_v53  ;;  %v3252_v30 = vpop.permute.xlu0 %3251  ;;  %v3681_v53 = vld [vmem:[#allocation4 + $0x90] sm:$0xff] }
 0x37d   : > { %3295 = vst.msk [vmem:[#allocation4 + $0xf8] sm:$0xff] %vm2778_vm13, %v3252_v30  ;;  %2758 = vrot.lane.b32.xlu1 %v2705_v40, %s5643_s11  ;;  %4545 = vrot.lane.b32.xlu0 %v6671_v36, %s5645_s12  ;;  %s188_s11 = sand.u32 1, %s5625_s16  }
 0x37f   : > { %v3246_v58 = vpop.permute.xlu1 %3245 }
 0x380   : > { %3292 = vst.msk [vmem:[#allocation4 + $0xb0] sm:$0xff] %vm2778_vm13, %v3246_v58  ;;  %v3396_v18 = vpop.permute.xlu0 %3395 }
 0x381   : > { %3439 = vst.msk [vmem:[#allocation4 + $0xf8] sm:$0xff] %vm2923_vm14, %v3396_v18  ;;  %2903 = vrot.lane.b32.xlu1 %v2994_v11, %s5645_s12  ;;  %4549 = vrot.lane.b32.xlu0 %v6687_v4, %s5645_s12 }
 0x383   : > { %v3031_v12 = vpop.permute.xlu1 %3030  ;;  %v3682_v42 = vld [vmem:[#allocation4 + $0x98] sm:$0xff] }
 0x384   : > { %3077 = vst.msk [vmem:[#allocation4 + $0xc0] sm:$0xff] %vm3068_vm15, %v3031_v12  ;;  %v3540_v37 = vpop.permute.xlu0 %3539  ;;  %3995 = vmatprep.mubr.bf16.mxu1 %v3682_v42  ;;  %v3644_v42 = vpack.c.bf16 %v3626_v10, %v3625_v5 }
 0x385   : > { %3583 = vst.msk [vmem:[#allocation4 + $0xf8] sm:$0xff] %vm3068_vm15, %v3540_v37  ;;  %3048 = vrot.lane.b32.xlu1 %v2995_v17, %s5646_s28  ;;  %4553 = vrot.lane.b32.xlu0 %v6706_v50, %s5645_s12  ;;  %s4996_s28 = sshll.u32 %s188_s11, 8 }
 0x386   : > { %3996 = vmatmul.mubr.bf16.gmra.mrb[60].mxu1 %v3681_v53  ;;  %v7272_v40 = vpop.f32.mrb[84].mxu0  ;;  %3662 = vst.msk [vmem:[#allocation4 + $0x1a8] sm:$0xff] %vm1287_vm10, %v3644_v42  ;;  %s7642_s6 = scalar_lea.vmem [#allocation5], %s4996_s28 }
 0x387   : > { %v2743_v11 = vpop.permute.xlu1 %2742  ;;  %v7275_v58 = vpop.f32.mrb[85].mxu0  ;;  %s4930_s7 = sshll.u32 %s7642_s6, 4  ;;  %s7834_s7 = int_to_ptr.vmem [resolvable:$true] %s4930_s7 }
 0x388   : > { %2788 = vst.msk [vmem:[#allocation4 + $0xd8] sm:$0xff] %vm2778_vm13, %v2743_v11  ;;  %v3254_v30 = vpop.permute.xlu0 %3253  ;;  %v7278_v18 = vpop.f32.mrb[86].mxu0  ;;  %p5578_p0 = scmp.lt.s32.totalorder %s7834_s7, %s5576_s23 }
 0x389   : > { %3296 = vst.msk [vmem:[#allocation4 + $0x110] sm:$0xff] %vm2778_vm13, %v3254_v30  ;;  %4523 = vrot.lane.b32.xlu1 %v6570_v24, %s5645_s12  ;;  %4557 = vrot.lane.b32.xlu0 %v6729_v13, %s5645_s12  ;;  %v7284_v12 = vpop.f32.mrb[87].mxu0 }
 0x38b   : > { %v2888_v17 = vpop.permute.xlu1 %2887 }
 0x38c   : > { %2933 = vst.msk [vmem:[#allocation4 + $0xd8] sm:$0xff] %vm2923_vm14, %v2888_v17  ;;  %v3398_v37 = vpop.permute.xlu0 %3397 }
 0x38d   : > { %3440 = vst.msk [vmem:[#allocation4 + $0x110] sm:$0xff] %vm2923_vm14, %v3398_v37  ;;  %4527 = vrot.lane.b32.xlu1 %v6583_v41, %s5645_s12  ;;  %4561 = vrot.lane.b32.xlu0 %v6753_v59, %s5645_s12 }
 0x38f   : > { %v3390_v53 = vpop.permute.xlu1 %3389 }
 0x390   : > { %3436 = vst.msk [vmem:[#allocation4 + $0xb0] sm:$0xff] %vm2923_vm14, %v3390_v53  ;;  %v3542_v11 = vpop.permute.xlu0 %3541 }
 0x391   : > { %3584 = vst.msk [vmem:[#allocation4 + $0x110] sm:$0xff] %vm3068_vm15, %v3542_v11  ;;  %4531 = vrot.lane.b32.xlu1 %v6605_v2, %s5645_s12  ;;  %4565 = vrot.lane.b32.xlu0 %v6777_v29, %s5645_s12  ;;  %v3684_v11 = vld [vmem:[#allocation4 + $0xa8] sm:$0xff]  ;;  %v3710_v29 = vld [vmem:[#allocation4 + $0x178] sm:$0xff] }
 0x393   : > { %v3534_v30 = vpop.permute.xlu1 %3533 }
 0x394   : > { %3580 = vst.msk [vmem:[#allocation4 + $0xb0] sm:$0xff] %vm3068_vm15, %v3534_v30  ;;  %v3256_v5 = vpop.permute.xlu0 %3255  ;;  %v3688_v30 = vld [vmem:[#allocation4 + $0xc8] sm:$0xff] }
 0x395   : > { %3297 = vst.msk [vmem:[#allocation4 + $0x128] sm:$0xff] %vm2778_vm13, %v3256_v5  ;;  %4535 = vrot.lane.b32.xlu1 %v6624_v21, %s5645_s12  ;;  %4569 = vrot.lane.b32.xlu0 %v6801_v14, %s5645_s12 }
 0x397   : > { %v3033_v10 = vpop.permute.xlu1 %3032 }
 0x398   : > { %3078 = vst.msk [vmem:[#allocation4 + $0xd8] sm:$0xff] %vm3068_vm15, %v3033_v10  ;;  %v3400_v42 = vpop.permute.xlu0 %3399 }
 0x399   : > { %3441 = vst.msk [vmem:[#allocation4 + $0x128] sm:$0xff] %vm2923_vm14, %v3400_v42  ;;  %4539 = vrot.lane.b32.xlu1 %v6643_v52, %s5645_s12  ;;  %4573 = vrot.lane.b32.xlu0 %v6830_v54, %s5645_s12 }
 0x39b   : > { %v2745_v17 = vpop.permute.xlu1 %2744  ;;  %v3685_v37 = vld [vmem:[#allocation4 + $0xb0] sm:$0xff] }
 0x39c   : > { %2789 = vst.msk [vmem:[#allocation4 + $0xf0] sm:$0xff] %vm2778_vm13, %v2745_v17  ;;  %v3544_v53 = vpop.permute.xlu0 %3543  ;;  %4003 = vmatprep.mubr.bf16.mxu1 %v3685_v37  ;;  %v3687_v37 = vld [vmem:[#allocation4 + $0xc0] sm:$0xff] }
 0x39d   : > { %3585 = vst.msk [vmem:[#allocation4 + $0x128] sm:$0xff] %vm3068_vm15, %v3544_v53  ;;  %4543 = vrot.lane.b32.xlu1 %v6659_v8, %s5645_s12  ;;  %4577 = vrot.lane.b32.xlu0 %v6866_v51, %s5645_s12  ;;  %v3691_v53 = vld [vmem:[#allocation4 + $0xe0] sm:$0xff] }
 0x39e   : > { %4004 = vmatmul.mubr.bf16.gmra.mrb[64].mxu1 %v3684_v11 }
 0x39f   : > { %4011 = vmatprep.mubr.bf16.mxu1 %v3688_v30  ;;  %v2890_v5 = vpop.permute.xlu1 %2889 }
 0x3a0   : > { %2934 = vst.msk [vmem:[#allocation4 + $0xf0] sm:$0xff] %vm2923_vm14, %v2890_v5  ;;  %v3258_v10 = vpop.permute.xlu0 %3257 }
 0x3a1   : > { %3298 = vst.msk [vmem:[#allocation4 + $0x140] sm:$0xff] %vm2778_vm13, %v3258_v10  ;;  %4547 = vrot.lane.b32.xlu1 %v6675_v44, %s5645_s12  ;;  %4581 = vrot.lane.b32.xlu0 %v6905_v49, %s5645_s12 }
 0x3a3   : > { %v3035_v42 = vpop.permute.xlu1 %3034 }
 0x3a4   : > { %3079 = vst.msk [vmem:[#allocation4 + $0xf0] sm:$0xff] %vm3068_vm15, %v3035_v42  ;;  %v3402_v17 = vpop.permute.xlu0 %3401 }
 0x3a5   : > { %3442 = vst.msk [vmem:[#allocation4 + $0x140] sm:$0xff] %vm2923_vm14, %v3402_v17  ;;  %4551 = vrot.lane.b32.xlu1 %v6691_v6, %s5645_s12  ;;  %4585 = vrot.lane.b32.xlu0 %v6950_v63, %s5645_s12 }
 0x3a6   : > { %4012 = vmatmul.mubr.bf16.gmra.mrb[68].mxu1 %v3687_v37  ;;  %v7329_v11 = vpop.f32.mrb[88].mxu0 }
 0x3a7   : > { %4019 = vmatprep.mubr.bf16.mxu1 %v3691_v53  ;;  %v2747_v30 = vpop.permute.xlu1 %2746  ;;  %v7332_v10 = vpop.f32.mrb[89].mxu0 }
 0x3a8   : > { %2790 = vst.msk [vmem:[#allocation4 + $0x108] sm:$0xff] %vm2778_vm13, %v2747_v30  ;;  %v3546_v5 = vpop.permute.xlu0 %3545  ;;  %v7335_v42 = vpop.f32.mrb[90].mxu0  ;;  %v3690_v30 = vld [vmem:[#allocation4 + $0xd8] sm:$0xff] }
 0x3a9   : > { %3586 = vst.msk [vmem:[#allocation4 + $0x140] sm:$0xff] %vm3068_vm15, %v3546_v5  ;;  %4555 = vrot.lane.b32.xlu1 %v6711_v60, %s5645_s12  ;;  %4589 = vrot.lane.b32.xlu0 %v6983_v32, %s5645_s12  ;;  %v7341_v17 = vpop.f32.mrb[91].mxu0  ;;  %v3694_v5 = vld [vmem:[#allocation4 + $0xf8] sm:$0xff] }
 0x3ab   : > { %v2892_v37 = vpop.permute.xlu1 %2891 }
 0x3ac   : > { %2935 = vst.msk [vmem:[#allocation4 + $0x108] sm:$0xff] %vm2923_vm14, %v2892_v37  ;;  %v3260_v53 = vpop.permute.xlu0 %3259 }
 0x3ad   : > { %3299 = vst.msk [vmem:[#allocation4 + $0x158] sm:$0xff] %vm2778_vm13, %v3260_v53  ;;  %4559 = vrot.lane.b32.xlu1 %v6735_v15, %s5645_s12 }
 0x3ae   : > { %4020 = vmatmul.mubr.bf16.gmra.mrb[72].mxu1 %v3690_v30  ;;  %v3693_v30 = vld [vmem:[#allocation4 + $0xf0] sm:$0xff] }
 0x3af   : > { %4027 = vmatprep.mubr.bf16.mxu1 %v3694_v5  ;;  %v3037_v63 = vpop.permute.xlu1 %3036  ;;  %v3697_v5 = vld [vmem:[#allocation4 + $0x110] sm:$0xff] }
 0x3b0   : > { %3080 = vst.msk [vmem:[#allocation4 + $0x108] sm:$0xff] %vm3068_vm15, %v3037_v63  ;;  %v3404_v51 = vpop.permute.xlu0 %3403 }
 0x3b1   : > { %3443 = vst.msk [vmem:[#allocation4 + $0x158] sm:$0xff] %vm2923_vm14, %v3404_v51  ;;  %4563 = vrot.lane.b32.xlu1 %v6762_v55, %s5645_s12 }
 0x3b3   : > { %v2749_v37 = vpop.permute.xlu1 %2748 }
 0x3b4   : > { %2791 = vst.msk [vmem:[#allocation4 + $0x120] sm:$0xff] %vm2778_vm13, %v2749_v37  ;;  %v3548_v53 = vpop.permute.xlu0 %3547 }
 0x3b5   : > { %3587 = vst.msk [vmem:[#allocation4 + $0x158] sm:$0xff] %vm3068_vm15, %v3548_v53  ;;  %4567 = vrot.lane.b32.xlu1 %v6782_v3, %s5645_s12 }
 0x3b6   : > { %4028 = vmatmul.mubr.bf16.gmra.mrb[76].mxu1 %v3693_v30 }
 0x3b7   : > { %4035 = vmatprep.mubr.bf16.mxu1 %v3697_v5  ;;  %v2894_v63 = vpop.permute.xlu1 %2893  ;;  %v3696_v30 = vld [vmem:[#allocation4 + $0x108] sm:$0xff] }
 0x3b8   : > { %2936 = vst.msk [vmem:[#allocation4 + $0x120] sm:$0xff] %vm2923_vm14, %v2894_v63  ;;  %v3262_v51 = vpop.permute.xlu0 %3261  ;;  %v3700_v5 = vld [vmem:[#allocation4 + $0x128] sm:$0xff] }
 0x3b9   : > { %3300 = vst.msk [vmem:[#allocation4 + $0x170] sm:$0xff] %vm2778_vm13, %v3262_v51  ;;  %4571 = vrot.lane.b32.xlu1 %v6807_v62, %s5645_s12 }
 0x3bb   : > { %v3039_v37 = vpop.permute.xlu1 %3038 }
 0x3bc   : > { %3081 = vst.msk [vmem:[#allocation4 + $0x120] sm:$0xff] %vm3068_vm15, %v3039_v37  ;;  %v3406_v53 = vpop.permute.xlu0 %3405  ;;  %v3706_v49 = vld [vmem:[#allocation4 + $0x158] sm:$0xff] }
 0x3bd   : > { %3444 = vst.msk [vmem:[#allocation4 + $0x170] sm:$0xff] %vm2923_vm14, %v3406_v53  ;;  %4575 = vrot.lane.b32.xlu1 %v6835_v28, %s5645_s12 }
 0x3be   : > { %4036 = vmatmul.mubr.bf16.gmra.mrb[80].mxu1 %v3696_v30  ;;  %v3703_v30 = vld [vmem:[#allocation4 + $0x140] sm:$0xff] }
 0x3bf   : > { %4043 = vmatprep.mubr.bf16.mxu1 %v3700_v5  ;;  %v2751_v63 = vpop.permute.xlu1 %2750 }
 0x3c0   : > { %2792 = vst.msk [vmem:[#allocation4 + $0x138] sm:$0xff] %vm2778_vm13, %v2751_v63  ;;  %v3550_v51 = vpop.permute.xlu0 %3549 }
 0x3c1   : > { %3588 = vst.msk [vmem:[#allocation4 + $0x170] sm:$0xff] %vm3068_vm15, %v3550_v51  ;;  %4579 = vrot.lane.b32.xlu1 %v6875_v56, %s5645_s12 }
 0x3c3   : > { %v2896_v37 = vpop.permute.xlu1 %2895  ;;  %v3699_v32 = vld [vmem:[#allocation4 + $0x120] sm:$0xff] }
 0x3c4   : > { %2937 = vst.msk [vmem:[#allocation4 + $0x138] sm:$0xff] %vm2923_vm14, %v2896_v37  ;;  %v3264_v53 = vpop.permute.xlu0 %3263 }
 0x3c5   : > { %3301 = vst.msk [vmem:[#allocation4 + $0x188] sm:$0xff] %vm2778_vm13, %v3264_v53  ;;  %4583 = vrot.lane.b32.xlu1 %v6914_v33, %s5645_s12 }
 0x3c6   : > { %4044 = vmatmul.mubr.bf16.gmra.mrb[84].mxu1 %v3699_v32  ;;  %v7371_v5 = vpop.f32.mrb[92].mxu0 }
 0x3c7   : > { %4051 = vmatprep.mubr.bf16.mxu1 %v3703_v30  ;;  %v3041_v63 = vpop.permute.xlu1 %3040  ;;  %v7374_v56 = vpop.f32.mrb[93].mxu0 }
 0x3c8   : > { %3082 = vst.msk [vmem:[#allocation4 + $0x138] sm:$0xff] %vm3068_vm15, %v3041_v63  ;;  %v3408_v51 = vpop.permute.xlu0 %3407  ;;  %v7377_v37 = vpop.f32.mrb[94].mxu0 }
 0x3c9   : > { %3445 = vst.msk [vmem:[#allocation4 + $0x188] sm:$0xff] %vm2923_vm14, %v3408_v51  ;;  %4587 = vrot.lane.b32.xlu1 %v6958_v23, %s5645_s12  ;;  %v7381_v53 = vpop.f32.mrb[95].mxu0 }
 0x3cb   : > { %v2753_v32 = vpop.permute.xlu1 %2752 }
 0x3cc   : > { %2793 = vst.msk [vmem:[#allocation4 + $0x150] sm:$0xff] %vm2778_vm13, %v2753_v32  ;;  %v3552_v30 = vpop.permute.xlu0 %3551 }
 0x3cd   : > { %3589 = vst.msk [vmem:[#allocation4 + $0x188] sm:$0xff] %vm3068_vm15, %v3552_v30  ;;  %4591 = vrot.lane.b32.xlu1 %v6993_v45, %s5645_s12 }
 0x3cf   : > { %v2898_v63 = vpop.permute.xlu1 %2897  ;;  %v3702_v33 = vld [vmem:[#allocation4 + $0x138] sm:$0xff] }
 0x3d0   : > { %2938 = vst.msk [vmem:[#allocation4 + $0x150] sm:$0xff] %vm2923_vm14, %v2898_v63  ;;  %v3266_v51 = vpop.permute.xlu0 %3265  ;;  %4052 = vmatmul.mubr.bf16.gmra.mrb[88].mxu1 %v3702_v33  ;;  %v3709_v33 = vld [vmem:[#allocation4 + $0x170] sm:$0xff] }
 0x3d1   : > { %3302 = vst.msk [vmem:[#allocation4 + $0x1a0] sm:$0xff] %vm2778_vm13, %v3266_v51  ;;  %4059 = vmatprep.mubr.bf16.mxu1 %v3706_v49 }
 0x3d2   : > { %3446 = vst.msk [vmem:[#allocation4 + $0x1a0] sm:$0xff] %vm2923_vm14, %v6703_v39 }
 0x3d3   : > { %v3043_v32 = vpop.permute.xlu1 %3042 }
 0x3d4   : > { %3083 = vst.msk [vmem:[#allocation4 + $0x150] sm:$0xff] %vm3068_vm15, %v3043_v32  ;;  %v3554_v30 = vpop.permute.xlu0 %3553  ;;  %v3712_v28 = vld [vmem:[#allocation4 + $0x188] sm:$0xff] }
 0x3d5   : > { %3590 = vst.msk [vmem:[#allocation4 + $0x1a0] sm:$0xff] %vm3068_vm15, %v3554_v30 }
 0x3d7   : > { %v2755_v45 = vpop.permute.xlu1 %2754 }
 0x3d8   : > { %2794 = vst.msk [vmem:[#allocation4 + $0x168] sm:$0xff] %vm2778_vm13, %v2755_v45 }
 0x3db   : > { %v2900_v23 = vpop.permute.xlu1 %2899  ;;  %v3705_v63 = vld [vmem:[#allocation4 + $0x150] sm:$0xff] }
 0x3dc   : > { %2939 = vst.msk [vmem:[#allocation4 + $0x168] sm:$0xff] %vm2923_vm14, %v2900_v23  ;;  %4060 = vmatmul.mubr.bf16.gmra.mrb[92].mxu1 %v3705_v63 }
 0x3dd   : > { %4067 = vmatprep.mubr.bf16.mxu1 %v3709_v33 }
 0x3df   : > { %v3045_v49 = vpop.permute.xlu1 %3044 }
 0x3e0   : > { %3084 = vst.msk [vmem:[#allocation4 + $0x168] sm:$0xff] %vm3068_vm15, %v3045_v49 }
 0x3e3   : > { %v2757_v39 = vpop.permute.xlu1 %2756 }
 0x3e4   : > { %2795 = vst.msk [vmem:[#allocation4 + $0x180] sm:$0xff] %vm2778_vm13, %v2757_v39  ;;  %v3715_v39 = vld [vmem:[#allocation4 + $0x1a0] sm:$0xff] }
 0x3e6   : > { %v7397_v51 = vpop.f32.mrb[96].mxu0 }
 0x3e7   : > { %v2902_v32 = vpop.permute.xlu1 %2901  ;;  %v3708_v30 = vld [vmem:[#allocation4 + $0x168] sm:$0xff]  ;;  %v7400_v45 = vpop.f32.mrb[97].mxu0 }
 0x3e8   : > { %2940 = vst.msk [vmem:[#allocation4 + $0x180] sm:$0xff] %vm2923_vm14, %v2902_v32  ;;  %4068 = vmatmul.mubr.bf16.gmra.mrb[96].mxu1 %v3708_v30  ;;  %v7402_v23 = vpop.f32.mrb[98].mxu0  ;;  %v3707_v30 = vld [vmem:[#allocation4 + $0x160] sm:$0xff] }
 0x3e9   : > { %4075 = vmatprep.mubr.bf16.mxu1 %v3712_v28  ;;  %v7404_v63 = vpop.f32.mrb[99].mxu0 }
 0x3eb   : > { %v3047_v33 = vpop.permute.xlu1 %3046 }
 0x3ec   : > { %3085 = vst.msk [vmem:[#allocation4 + $0x180] sm:$0xff] %vm3068_vm15, %v3047_v33 }
 0x3ef   : > { %v2759_v49 = vpop.permute.xlu1 %2758 }
 0x3f0   : > { %2796 = vst.msk [vmem:[#allocation4 + $0x198] sm:$0xff] %vm2778_vm13, %v2759_v49 }
 0x3f3   : > { %v2904_v54 = vpop.permute.xlu1 %2903  ;;  %v3711_v62 = vld [vmem:[#allocation4 + $0x180] sm:$0xff] }
 0x3f4   : > { %2941 = vst.msk [vmem:[#allocation4 + $0x198] sm:$0xff] %vm2923_vm14, %v2904_v54  ;;  %4076 = vmatmul.mubr.bf16.gmra.mrb[100].mxu1 %v3711_v62  ;;  %v3713_v62 = vld [vmem:[#allocation4 + $0x190] sm:$0xff]  ;;  %v3716_v54 = vld [vmem:[#allocation4 + $0x1a8] sm:$0xff] }
 0x3f5   : > { %4083 = vmatprep.mubr.bf16.mxu1 %v3715_v39 }
 0x3f7   : > { %v3049_v32 = vpop.permute.xlu1 %3048 }
 0x3f8   : > { %3086 = vst.msk [vmem:[#allocation4 + $0x198] sm:$0xff] %vm3068_vm15, %v3049_v32 }
 0x3ff   : > { %v3714_v28 = vld [vmem:[#allocation4 + $0x198] sm:$0xff] }
 0x400   : > { %4084 = vmatmul.mubr.bf16.gmra.mrb[104].mxu1 %v3714_v28 }
 0x401   : > { %5282 = vmatprep.mubr.msk.bf16.mxu1 %vm1287_vm10, %v3707_v30 }
 0x405   : > { %v3949_v14 = vpop.f32.mrb[36].mxu1 }
 0x406   : > { %v4127_v33 = vadd.f32 %v7139_v43, %v3949_v14  ;;  %v3951_v3 = vpop.f32.mrb[37].mxu1 }
 0x407   : > { %v3952_v49 = vpop.f32.mrb[38].mxu1 }
 0x408   : > { %v4130_v55 = vadd.f32 %v7146_v20, %v3952_v49  ;;  %v3954_v59 = vpop.f32.mrb[39].mxu1  ;;  %4305 = vrot.lane.b32.xlu0 %v4127_v33, %s5645_s12  ;;  %5283 = vmatmul.mubr.msk.bf16.vlgmr.msra.gmra.mrb[108].mxu1 %vm1287_vm10, %v3710_v29 }
 0x409   : > { %5286 = vmatprep.mubr.msk.bf16.mxu1 %vm1287_vm10, %v3713_v62 }
 0x40a   : > { %4307 = vrot.lane.b32.xlu1 %v4130_v55, %s5645_s12 }
 0x410   : > { %5287 = vmatmul.mubr.msk.bf16.gmra.mrb[112].mxu1 %vm1287_vm10, %v3716_v54 }
 0x411   : > { %v3957_v39 = vpop.f32.mrb[40].mxu1 }
 0x412   : > { %v4135_v3 = vadd.f32 %v7136_v31, %v3957_v39  ;;  %v3959_v14 = vpop.f32.mrb[41].mxu1 }
 0x413   : > { %v3960_v43 = vpop.f32.mrb[42].mxu1  ;;  %v7431_v14 = vpop.permute.xlu0 %4521 }
 0x414   : > { %v4138_v20 = vadd.f32 %v7142_v25, %v3960_v43  ;;  %v3962_v59 = vpop.f32.mrb[43].mxu1  ;;  %4309 = vrot.lane.b32.xlu0 %v4135_v3, %s5645_s12 }
 0x416   : > { %4311 = vrot.lane.b32.xlu1 %v4138_v20, %s5645_s12 }
 0x41d   : > { %v3965_v29 = vpop.f32.mrb[44].mxu1 }
 0x41e   : > { %v4143_v32 = vadd.f32 %v7186_v1, %v3965_v29  ;;  %v3967_v28 = vpop.f32.mrb[45].mxu1 }
 0x41f   : > { %v3968_v55 = vpop.f32.mrb[46].mxu1 }
 0x420   : > { %v4146_v30 = vadd.f32 %v7193_v47, %v3968_v55  ;;  %v3970_v33 = vpop.f32.mrb[47].mxu1  ;;  %4313 = vrot.lane.b32.xlu0 %v4143_v32, %s5645_s12 }
 0x422   : > { %4315 = vrot.lane.b32.xlu1 %v4146_v30, %s5645_s12 }
 0x429   : > { %v3973_v31 = vpop.f32.mrb[48].mxu1 }
 0x42a   : > { %v4151_v25 = vadd.f32 %v7183_v22, %v3973_v31  ;;  %v3975_v49 = vpop.f32.mrb[49].mxu1  ;;  %v7435_v22 = vpop.permute.xlu1 %4523 }
 0x42b   : > { %v3976_v62 = vpop.f32.mrb[50].mxu1 }
 0x42c   : > { %v4154_v54 = vadd.f32 %v7189_v16, %v3976_v62  ;;  %v3978_v39 = vpop.f32.mrb[51].mxu1  ;;  %4317 = vrot.lane.b32.xlu0 %v4151_v25, %s5645_s12  ;;  %v7438_v16 = vpop.permute.xlu0 %4525 }
 0x42e   : > { %4319 = vrot.lane.b32.xlu1 %v4154_v54, %s5645_s12  ;;  %v7440_v29 = vpop.permute.xlu1 %4527 }
 0x430   : > { %v7443_v55 = vpop.permute.xlu0 %4529 }
 0x432   : > { %v7447_v31 = vpop.permute.xlu1 %4531 }
 0x434   : > { %v7450_v25 = vpop.permute.xlu0 %4533 }
 0x435   : > { %v3981_v1 = vpop.f32.mrb[52].mxu1 }
 0x436   : > { %v4159_v47 = vadd.f32 %v7227_v9, %v3981_v1  ;;  %v3983_v3 = vpop.f32.mrb[53].mxu1  ;;  %v7452_v49 = vpop.permute.xlu1 %4535 }
 0x437   : > { %v3984_v43 = vpop.f32.mrb[54].mxu1 }
 0x438   : > { %v4162_v20 = vadd.f32 %v7235_v0, %v3984_v43  ;;  %v3986_v59 = vpop.f32.mrb[55].mxu1  ;;  %4321 = vrot.lane.b32.xlu0 %v4159_v47, %s5645_s12  ;;  %v7454_v62 = vpop.permute.xlu0 %4537 }
 0x43a   : > { %4323 = vrot.lane.b32.xlu1 %v4162_v20, %s5645_s12 }
 0x43c   : > { %v7458_v54 = vpop.permute.xlu0 %4541 }
 0x440   : > { %v7463_v3 = vpop.permute.xlu0 %4545 }
 0x441   : > { %v3989_v32 = vpop.f32.mrb[56].mxu1 }
 0x442   : > { %v4167_v9 = vadd.f32 %v7224_v27, %v3989_v32  ;;  %v3991_v28 = vpop.f32.mrb[57].mxu1  ;;  %v7456_v27 = vpop.permute.xlu1 %4539 }
 0x443   : > { %v3992_v30 = vpop.f32.mrb[58].mxu1 }
 0x444   : > { %v4170_v0 = vadd.f32 %v7230_v57, %v3992_v30  ;;  %v3994_v33 = vpop.f32.mrb[59].mxu1  ;;  %4325 = vrot.lane.b32.xlu0 %v4167_v9, %s5645_s12  ;;  %v7470_v9 = vpop.permute.xlu0 %4549 }
 0x446   : > { %4327 = vrot.lane.b32.xlu1 %v4170_v0, %s5645_s12  ;;  %v7460_v39 = vpop.permute.xlu1 %4543 }
 0x448   : > { %v7474_v30 = vpop.permute.xlu0 %4553 }
 0x44a   : > { %v7467_v32 = vpop.permute.xlu1 %4547 }
 0x44c   : > { %v7478_v0 = vpop.permute.xlu0 %4557 }
 0x44e   : > { %v7472_v28 = vpop.permute.xlu1 %4551 }
 0x459   : > { %v3997_v57 = vpop.f32.mrb[60].mxu1 }
 0x45a   : > { %v4175_v1 = vadd.f32 %v7275_v58, %v3997_v57  ;;  %v3999_v47 = vpop.f32.mrb[61].mxu1  ;;  %v7476_v58 = vpop.permute.xlu1 %4555 }
 0x45b   : > { %v4000_v43 = vpop.f32.mrb[62].mxu1  ;;  %v7483_v47 = vpop.permute.xlu0 %4561 }
 0x45c   : > { %v4178_v20 = vadd.f32 %v7284_v12, %v4000_v43  ;;  %v4002_v59 = vpop.f32.mrb[63].mxu1  ;;  %4329 = vrot.lane.b32.xlu0 %v4175_v1, %s5645_s12 }
 0x45e   : > { %4331 = vrot.lane.b32.xlu1 %v4178_v20, %s5645_s12  ;;  %v7480_v33 = vpop.permute.xlu1 %4559 }
 0x45f   : > { %v7490_v13 = vpop.permute.xlu0 %4565 }
 0x462   : > { %v7487_v15 = vpop.permute.xlu1 %4563 }
 0x471   : > { %v4005_v12 = vpop.f32.mrb[64].mxu1 }
 0x472   : > { %v4183_v57 = vadd.f32 %v7272_v40, %v4005_v12  ;;  %v4007_v1 = vpop.f32.mrb[65].mxu1  ;;  %v7493_v40 = vpop.permute.xlu1 %4567 }
 0x473   : > { %v4008_v43 = vpop.f32.mrb[66].mxu1 }
 0x474   : > { %v4186_v20 = vadd.f32 %v7278_v18, %v4008_v43  ;;  %v4010_v59 = vpop.f32.mrb[67].mxu1  ;;  %4333 = vrot.lane.b32.xlu0 %v4183_v57, %s5645_s12  ;;  %v7498_v18 = vpop.permute.xlu0 %4569 }
 0x476   : > { %4335 = vrot.lane.b32.xlu1 %v4186_v20, %s5645_s12  ;;  %v7500_v57 = vpop.permute.xlu1 %4571 }
 0x479   : > { %v4013_v60 = vpop.f32.mrb[68].mxu1 }
 0x47a   : > { %v4191_v50 = vadd.f32 %v7332_v10, %v4013_v60  ;;  %v4015_v6 = vpop.f32.mrb[69].mxu1 }
 0x47b   : > { %v4016_v12 = vpop.f32.mrb[70].mxu1 }
 0x47c   : > { %v4194_v1 = vadd.f32 %v7341_v17, %v4016_v12  ;;  %v4018_v4 = vpop.f32.mrb[71].mxu1  ;;  %4337 = vrot.lane.b32.xlu0 %v4191_v50, %s5645_s12  ;;  %v7505_v17 = vpop.permute.xlu0 %4573 }
 0x47d   : > { %v7508_v4 = vpop.permute.xlu1 %4575 }
 0x47e   : > { %4339 = vrot.lane.b32.xlu1 %v4194_v1, %s5645_s12 }
 0x480   : > { %v7511_v44 = vpop.permute.xlu0 %4577 }
 0x481   : > { %v4021_v43 = vpop.f32.mrb[72].mxu1 }
 0x482   : > { %v4199_v20 = vadd.f32 %v7329_v11, %v4021_v43  ;;  %v4023_v59 = vpop.f32.mrb[73].mxu1 }
 0x483   : > { %v4024_v60 = vpop.f32.mrb[74].mxu1  ;;  %v7515_v59 = vpop.permute.xlu1 %4579 }
 0x484   : > { %v4202_v6 = vadd.f32 %v7335_v42, %v4024_v60  ;;  %v4026_v10 = vpop.f32.mrb[75].mxu1  ;;  %4341 = vrot.lane.b32.xlu0 %v4199_v20, %s5645_s12  ;;  %v7518_v20 = vpop.permute.xlu0 %4581 }
 0x486   : > { %4343 = vrot.lane.b32.xlu1 %v4202_v6, %s5645_s12 }
 0x489   : > { %v4029_v50 = vpop.f32.mrb[76].mxu1 }
 0x48a   : > { %v4207_v12 = vadd.f32 %v7374_v56, %v4029_v50  ;;  %v4031_v1 = vpop.f32.mrb[77].mxu1  ;;  %v7521_v56 = vpop.permute.xlu1 %4583 }
 0x48b   : > { %v4032_v11 = vpop.f32.mrb[78].mxu1 }
 0x48c   : > { %v4210_v43 = vadd.f32 %v7381_v53, %v4032_v11  ;;  %4345 = vrot.lane.b32.xlu0 %v4207_v12, %s5645_s12  ;;  %v4034_v42 = vpop.f32.mrb[79].mxu1  ;;  %v7526_v12 = vpop.permute.xlu0 %4585 }
 0x48e   : > { %4347 = vrot.lane.b32.xlu1 %v4210_v43, %s5645_s12  ;;  %v7528_v11 = vpop.permute.xlu1 %4587 }
 0x491   : > { %v4037_v60 = vpop.f32.mrb[80].mxu1 }
 0x492   : > { %v4215_v6 = vadd.f32 %v7371_v5, %v4037_v60  ;;  %v4039_v10 = vpop.f32.mrb[81].mxu1 }
 0x493   : > { %v4040_v50 = vpop.f32.mrb[82].mxu1 }
 0x494   : > { %v4218_v1 = vadd.f32 %v7377_v37, %v4040_v50  ;;  %4349 = vrot.lane.b32.xlu0 %v4215_v6, %s5645_s12  ;;  %v4042_v53 = vpop.f32.mrb[83].mxu1  ;;  %v7533_v37 = vpop.permute.xlu0 %4589 }
 0x495   : > { %v7536_v6 = vpop.permute.xlu1 %4591 }
 0x496   : > { %4351 = vrot.lane.b32.xlu1 %v4218_v1, %s5645_s12 }
 0x498   : > { %v4306_v50 = vpop.permute.xlu0 %4305 }
 0x499   : > { %v4045_v43 = vpop.f32.mrb[84].mxu1  ;;  %v4308_v1 = vpop.permute.xlu1 %4307  ;;  %v4413_v8 = vadd.f32 %v4306_v50, %v6526_v38 }
 0x49a   : > { %v4223_v42 = vadd.f32 %v7400_v45, %v4045_v43  ;;  %v4047_v36 = vpop.f32.mrb[85].mxu1 }
 0x49b   : > { %v4048_v5 = vpop.f32.mrb[86].mxu1 }
 0x49c   : > { %v4226_v60 = vadd.f32 %v7404_v63, %v4048_v5  ;;  %4353 = vrot.lane.b32.xlu0 %v4223_v42, %s5645_s12  ;;  %v4050_v10 = vpop.f32.mrb[87].mxu1  ;;  %v4310_v43 = vpop.permute.xlu0 %4309  ;;  %v4414_v63 = vadd.f32 %v4308_v1, %v6534_v46 }
 0x49d   : > { %v4629_v10 = vmul.f32 %v7431_v14, %v4413_v8  ;;  %v4415_v52 = vadd.f32 %v4310_v43, %v6522_v35 }
 0x49e   : > { %4355 = vrot.lane.b32.xlu1 %v4226_v60, %s5645_s12  ;;  %v4312_v60 = vpop.permute.xlu1 %4311  ;;  %v4630_v38 = vmul.f32 %v7435_v22, %v4414_v63 }
 0x49f   : > { %v4631_v46 = vmul.f32 %v7438_v16, %v4415_v52 }
 0x4a3   : > { %v4053_v53 = vpop.f32.mrb[88].mxu1 }
 0x4a4   : > { %v4231_v45 = vadd.f32 %v7397_v51, %v4053_v53  ;;  %v4055_v36 = vpop.f32.mrb[89].mxu1  ;;  %v8013_v51 = vld [vmem:[#allocation8_spill] sm:$0xff] }
 0x4a5   : > { %v4056_v7 = vpop.f32.mrb[90].mxu1  ;;  %v4416_v50 = vadd.f32 %v4312_v60, %v8013_v51 }
 0x4a6   : > { %v4234_v42 = vadd.f32 %v7402_v23, %v4056_v7  ;;  %4357 = vrot.lane.b32.xlu0 %v4231_v45, %s5645_s12  ;;  %v4058_v5 = vpop.f32.mrb[91].mxu1 }
 0x4a7   : > { %v4632_v7 = vmul.f32 %v7440_v29, %v4416_v50 }
 0x4a8   : > { %4359 = vrot.lane.b32.xlu1 %v4234_v42, %s5645_s12 }
 0x4aa   : > { %4701 = vrot.lane.b32.xlu0 %v4629_v10, %s5645_s12 }
 0x4ac   : > { %4703 = vrot.lane.b32.xlu1 %v4630_v38, %s5645_s12 }
 0x4ae   : > { %4705 = vrot.lane.b32.xlu0 %v4631_v46, %s5645_s12 }
 0x4af   : > { %v4061_v23 = vpop.f32.mrb[92].mxu1 }
 0x4b0   : > { %4707 = vrot.lane.b32.xlu1 %v4632_v7, %s5645_s12  ;;  %v4063_v35 = vpop.f32.mrb[93].mxu1 }
 0x4b1   : > { %v4064_v8 = vpop.f32.mrb[94].mxu1 }
 0x4b2   : > { %v4066_v14 = vpop.f32.mrb[95].mxu1 }
 0x4bb   : > { %v4069_v1 = vpop.f32.mrb[96].mxu1 }
 0x4bc   : > { %v4071_v22 = vpop.f32.mrb[97].mxu1 }
 0x4bd   : > { %v4072_v53 = vpop.f32.mrb[98].mxu1 }
 0x4be   : > { %v4074_v45 = vpop.f32.mrb[99].mxu1 }
 0x4c7   : > { %v4077_v36 = vpop.f32.mrb[100].mxu1 }
 0x4c8   : > { %v4079_v43 = vpop.f32.mrb[101].mxu1 }
 0x4c9   : > { %v4080_v63 = vpop.f32.mrb[102].mxu1  ;;  %v4314_v43 = vpop.permute.xlu0 %4313 }
 0x4ca   : > { %v4082_v52 = vpop.f32.mrb[103].mxu1 }
 0x4d3   : > { %v4085_v16 = vpop.f32.mrb[104].mxu1 }
 0x4d4   : > { %v4087_v42 = vpop.f32.mrb[105].mxu1 }
 0x4d5   : > { %v4088_v5 = vpop.f32.mrb[106].mxu1 }
 0x4d6   : > { %v4090_v29 = vpop.f32.mrb[107].mxu1 }
 0x4db   : > { %v5284_v60 = vpop.f32.mrb[108].mxu1 }
 0x4dc   : > { %v4247_v10 = vadd.f32 %v5284_v60, %v4069_v1  ;;  %v4238_v38 = vpop.f32.mrb[109].mxu1  ;;  %v8014_v60 = vld [vmem:[#allocation9_spill] sm:$0xff] }
 0x4dd   : > { %v4239_v51 = vadd.f32 %v4238_v38, %v4061_v23  ;;  %v5285_v50 = vpop.f32.mrb[110].mxu1  ;;  %v8015_v38 = vld [vmem:[#allocation10_spill] sm:$0xff] }
 0x4de   : > { %v4250_v46 = vadd.f32 %v5285_v50, %v4072_v53  ;;  %v4241_v7 = vpop.f32.mrb[111].mxu1  ;;  %4365 = vrot.lane.b32.xlu0 %v4247_v10, %s5645_s12  ;;  %v4316_v53 = vpop.permute.xlu1 %4315 }
 0x4df   : > { %v4242_v35 = vadd.f32 %v4241_v7, %v4064_v8  ;;  %v4417_v8 = vadd.f32 %v4314_v43, %v8014_v60  ;;  %v4318_v10 = vpop.permute.xlu0 %4317 }
 0x4e0   : > { %4367 = vrot.lane.b32.xlu1 %v4250_v46, %s5645_s12 }
 0x4e1   : > { %v4633_v50 = vmul.f32 %v7443_v55, %v4417_v8  ;;  %v8021_v8 = vld [vmem:[#allocation16_spill] sm:$0xff] }
 0x4e2   : > { %4361 = vrot.lane.b32.xlu0 %v4239_v51, %s5645_s12  ;;  %v4418_v51 = vadd.f32 %v4316_v53, %v8015_v38  ;;  %v8020_v53 = vld [vmem:[#allocation15_spill] sm:$0xff] }
 0x4e3   : > { %v5288_v14 = vpop.f32.mrb[112].mxu1 }
 0x4e4   : > { %v4263_v22 = vadd.f32 %v5288_v14, %v4085_v16  ;;  %v4254_v45 = vpop.f32.mrb[113].mxu1  ;;  %4363 = vrot.lane.b32.xlu1 %v4242_v35, %s5645_s12  ;;  %v4320_v16 = vpop.permute.xlu1 %4319  ;;  %v4634_v7 = vmul.f32 %v7447_v31, %v4418_v51  ;;  %v8022_v51 = vld [vmem:[#allocation18_spill] sm:$0xff] }
 0x4e5   : > { %v4255_v52 = vadd.f32 %v4254_v45, %v4077_v36  ;;  %v5289_v1 = vpop.f32.mrb[114].mxu1  ;;  %v8016_v36 = vld [vmem:[#allocation11_spill] sm:$0xff]  ;;  %v8018_v45 = vld [vmem:[#allocation13_spill] sm:$0xff] }
 0x4e6   : > { %v4266_v42 = vadd.f32 %v5289_v1, %v4088_v5  ;;  %v4257_v23 = vpop.f32.mrb[115].mxu1  ;;  %4373 = vrot.lane.b32.xlu0 %v4263_v22, %s5645_s12  ;;  %v4419_v46 = vadd.f32 %v4318_v10, %v8016_v36  ;;  %v4322_v5 = vpop.permute.xlu0 %4321  ;;  %v8019_v1 = vld [vmem:[#allocation14_spill] sm:$0xff]  ;;  %v8023_v36 = vld [vmem:[#allocation19_spill] sm:$0xff] }
 0x4e7   : > { %v4258_v29 = vadd.f32 %v4257_v23, %v4080_v63  ;;  %v8017_v63 = vld [vmem:[#allocation12_spill] sm:$0xff]  ;;  %v4421_v43 = vadd.f32 %v4322_v5, %v8018_v45 }
 0x4e8   : > { %4375 = vrot.lane.b32.xlu1 %v4266_v42, %s5645_s12  ;;  %v4420_v35 = vadd.f32 %v4320_v16, %v8017_v63  ;;  %v4324_v14 = vpop.permute.xlu1 %4323  ;;  %v4635_v22 = vmul.f32 %v7450_v25, %v4419_v46 }
 0x4e9   : > { %v4422_v42 = vadd.f32 %v4324_v14, %v8019_v1  ;;  %v4637_v31 = vmul.f32 %v7454_v62, %v4421_v43  ;;  %v8025_v14 = vld [vmem:[#allocation23_spill] sm:$0xff]  ;;  %v8026_v43 = vld [vmem:[#allocation26_spill] sm:$0xff] }
 0x4ea   : > { %4369 = vrot.lane.b32.xlu0 %v4255_v52, %s5645_s12  ;;  %v4326_v52 = vpop.permute.xlu0 %4325  ;;  %v4636_v55 = vmul.f32 %v7452_v49, %v4420_v35  ;;  %v8027_v1 = vld [vmem:[#allocation27_spill] sm:$0xff] }
 0x4eb   : > { %v4638_v25 = vmul.f32 %v7456_v27, %v4422_v42 }
 0x4ec   : > { %4371 = vrot.lane.b32.xlu1 %v4258_v29, %s5645_s12  ;;  %v4328_v23 = vpop.permute.xlu1 %4327  ;;  %v4423_v29 = vadd.f32 %v4326_v52, %v8020_v53 }
 0x4ed   : > { %v4424_v10 = vadd.f32 %v4328_v23, %v8021_v8 }
 0x4ee   : > { %4709 = vrot.lane.b32.xlu0 %v4633_v50, %s5645_s12  ;;  %v4330_v60 = vpop.permute.xlu0 %4329  ;;  %v4639_v49 = vmul.f32 %v7458_v54, %v4423_v29 }
 0x4ef   : > { %v4425_v16 = vadd.f32 %v4330_v60, %v8022_v51  ;;  %v4640_v62 = vmul.f32 %v7460_v39, %v4424_v10  ;;  %v8029_v60 = vld [vmem:[#allocation31_spill] sm:$0xff]  ;;  %v8030_v10 = vld [vmem:[#allocation34_spill] sm:$0xff] }
 0x4f0   : > { %4711 = vrot.lane.b32.xlu1 %v4634_v7, %s5645_s12  ;;  %v4332_v38 = vpop.permute.xlu1 %4331  ;;  %v8024_v7 = vld [vmem:[#allocation22_spill] sm:$0xff]  ;;  %v8031_v51 = vld [vmem:[#allocation35_spill] sm:$0xff] }
 0x4f1   : > { %v4426_v46 = vadd.f32 %v4332_v38, %v8023_v36  ;;  %v4641_v27 = vmul.f32 %v7463_v3, %v4425_v16 }
 0x4f2   : > { %4713 = vrot.lane.b32.xlu0 %v4635_v22, %s5645_s12  ;;  %v4334_v50 = vpop.permute.xlu0 %4333 }
 0x4f3   : > { %v4427_v63 = vadd.f32 %v4334_v50, %v8024_v7  ;;  %v4642_v54 = vmul.f32 %v7467_v32, %v4426_v46  ;;  %v8033_v46 = vld [vmem:[#allocation39_spill] sm:$0xff]  ;;  %v8034_v7 = vld [vmem:[#allocation42_spill] sm:$0xff] }
 0x4f4   : > { %4715 = vrot.lane.b32.xlu1 %v4636_v55, %s5645_s12  ;;  %v4336_v5 = vpop.permute.xlu1 %4335 }
 0x4f5   : > { %v4428_v22 = vadd.f32 %v4336_v5, %v8025_v14  ;;  %v4643_v39 = vmul.f32 %v7470_v9, %v4427_v63 }
 0x4f6   : > { %4717 = vrot.lane.b32.xlu0 %v4637_v31, %s5645_s12  ;;  %v4338_v35 = vpop.permute.xlu0 %4337  ;;  %v8028_v31 = vld [vmem:[#allocation30_spill] sm:$0xff] }
 0x4f7   : > { %v4429_v52 = vadd.f32 %v4338_v35, %v8026_v43  ;;  %v4644_v3 = vmul.f32 %v7472_v28, %v4428_v22  ;;  %v4450_v43 = vsub.f32 1.0, %v6570_v24 }
 0x4f8   : > { %4719 = vrot.lane.b32.xlu1 %v4638_v25, %s5645_s12  ;;  %v4340_v45 = vpop.permute.xlu1 %4339 }
 0x4f9   : > { %v4430_v42 = vadd.f32 %v4340_v45, %v8027_v1  ;;  %v4645_v32 = vmul.f32 %v7474_v30, %v4429_v52  ;;  %v8036_v45 = vld [vmem:[#allocation46_spill] sm:$0xff] }
 0x4fa   : > { %4721 = vrot.lane.b32.xlu0 %v4639_v49, %s5645_s12  ;;  %v4342_v55 = vpop.permute.xlu0 %4341 }
 0x4fb   : > { %v4431_v53 = vadd.f32 %v4342_v55, %v8028_v31  ;;  %v4646_v9 = vmul.f32 %v7476_v58, %v4430_v42  ;;  %v8037_v55 = vld [vmem:[#allocation47_spill] sm:$0xff]  ;;  %v5536_v31 = vld [vmem:[%s5736_s9 + $0x20] sm:$0xff] }
 0x4fc   : > { %4723 = vrot.lane.b32.xlu1 %v4640_v62, %s5645_s12  ;;  %v4344_v23 = vpop.permute.xlu1 %4343  ;;  %v8032_v62 = vld [vmem:[#allocation38_spill] sm:$0xff]  ;;  %v4486_v24 = vmul.f32 %v5536_v31, %v4450_v43  ;;  %v5542_v31 = vld [vmem:[%s5736_s9 + $0x50] sm:$0xff] }
 0x4fd   : > { %v4432_v25 = vadd.f32 %v4344_v23, %v8029_v60  ;;  %v4647_v28 = vmul.f32 %v7478_v0, %v4431_v53  ;;  %v4452_v53 = vsub.f32 1.0, %v6583_v41  ;;  %v5538_v60 = vld [vmem:[%s5736_s9 + $0x30] sm:$0xff] }
 0x4fe   : > { %4725 = vrot.lane.b32.xlu0 %v4641_v27, %s5645_s12  ;;  %v4346_v29 = vpop.permute.xlu0 %4345 }
 0x4ff   : > { %v4433_v38 = vadd.f32 %v4346_v29, %v8030_v10  ;;  %v4648_v30 = vmul.f32 %v7480_v33, %v4432_v25  ;;  %v4488_v25 = vmul.f32 %v5538_v60, %v4452_v53  ;;  %v8046_v53 = vld [vmem:[#allocation17_spill] sm:$0xff] }
 0x500   : > { %4727 = vrot.lane.b32.xlu1 %v4642_v54, %s5645_s12  ;;  %v4348_v8 = vpop.permute.xlu1 %4347  ;;  %v8035_v54 = vld [vmem:[#allocation43_spill] sm:$0xff] }
 0x501   : > { %v4434_v16 = vadd.f32 %v4348_v8, %v8031_v51  ;;  %v4649_v58 = vmul.f32 %v7483_v47, %v4433_v38  ;;  %v8038_v38 = vld [vmem:[#allocation54_spill] sm:$0xff] }
 0x502   : > { %4729 = vrot.lane.b32.xlu0 %v4643_v39, %s5645_s12 }
 0x503   : > { %v4650_v0 = vmul.f32 %v7487_v15, %v4434_v16  ;;  %v8039_v16 = vld [vmem:[#allocation55_spill] sm:$0xff] }
 0x504   : > { %4731 = vrot.lane.b32.xlu1 %v4644_v3, %s5645_s12  ;;  %v5535_v3 = vld [vmem:[%s5736_s9 + $0x18] sm:$0xff] }
 0x506   : > { %4733 = vrot.lane.b32.xlu0 %v4645_v32, %s5645_s12  ;;  %v4350_v49 = vpop.permute.xlu0 %4349 }
 0x507   : > { %v4435_v36 = vadd.f32 %v4350_v49, %v8032_v62 }
 0x508   : > { %4735 = vrot.lane.b32.xlu1 %v4646_v9, %s5645_s12  ;;  %v4352_v50 = vpop.permute.xlu1 %4351 }
 0x509   : > { %v4436_v5 = vadd.f32 %v4352_v50, %v8033_v46  ;;  %v4651_v33 = vmul.f32 %v7490_v13, %v4435_v36  ;;  %v4449_v13 = vsub.f32 1.0, %v6565_v26  ;;  %v4451_v26 = vsub.f32 1.0, %v6577_v34  ;;  %v8040_v36 = vld [vmem:[#allocation50_spill] sm:$0xff] }
 0x50a   : > { %4737 = vrot.lane.b32.xlu0 %v4647_v28, %s5645_s12 }
 0x50b   : > { %v4652_v47 = vmul.f32 %v7493_v40, %v4436_v5  ;;  %v4485_v1 = vmul.f32 %v5535_v3, %v4449_v13  ;;  %v8043_v13 = vld [vmem:[#allocation62_spill] sm:$0xff] }
 0x50c   : > { %4739 = vrot.lane.b32.xlu1 %v4648_v30, %s5645_s12 }
 0x50e   : > { %v4354_v27 = vpop.permute.xlu0 %4353  ;;  %4741 = vrot.lane.b32.xlu0 %v4649_v58, %s5645_s12 }
 0x50f   : > { %v4437_v63 = vadd.f32 %v4354_v27, %v8034_v7  ;;  %v8041_v27 = vld [vmem:[#allocation51_spill] sm:$0xff] }
 0x510   : > { %v4356_v35 = vpop.permute.xlu1 %4355  ;;  %4743 = vrot.lane.b32.xlu1 %v4650_v0, %s5645_s12 }
 0x511   : > { %v4438_v14 = vadd.f32 %v4356_v35, %v8035_v54  ;;  %v4653_v15 = vmul.f32 %v7498_v18, %v4437_v63  ;;  %v8042_v54 = vld [vmem:[#allocation58_spill] sm:$0xff] }
 0x512   : > { %4745 = vrot.lane.b32.xlu0 %v4651_v33, %s5645_s12 }
 0x513   : > { %v4654_v22 = vmul.f32 %v7500_v57, %v4438_v14 }
 0x514   : > { %4747 = vrot.lane.b32.xlu1 %v4652_v47, %s5645_s12  ;;  %v4454_v47 = vsub.f32 1.0, %v6605_v2  ;;  %v5540_v2 = vld [vmem:[%s5736_s9 + $0x40] sm:$0xff] }
 0x516   : > { %4749 = vrot.lane.b32.xlu0 %v4653_v15, %s5645_s12  ;;  %v5539_v15 = vld [vmem:[%s5736_s9 + $0x38] sm:$0xff] }
 0x518   : > { %4751 = vrot.lane.b32.xlu1 %v4654_v22, %s5645_s12  ;;  %v4358_v40 = vpop.permute.xlu0 %4357 }
 0x519   : > { %v4439_v39 = vadd.f32 %v4358_v40, %v8036_v45  ;;  %v8044_v45 = vld [vmem:[#allocation59_spill] sm:$0xff] }
 0x51a   : > { %v4360_v18 = vpop.permute.xlu1 %4359 }
 0x51b   : > { %v4655_v52 = vmul.f32 %v7505_v17, %v4439_v39  ;;  %v4440_v57 = vadd.f32 %v4360_v18, %v8037_v55  ;;  %v4490_v18 = vmul.f32 %v5540_v2, %v4454_v47  ;;  %v5550_v2 = vld [vmem:[%s5736_s9 + $0x90] sm:$0xff] }
 0x51c   : > { %v4702_v42 = vpop.permute.xlu0 %4701 }
 0x51d   : > { %v4656_v23 = vmul.f32 %v7508_v4, %v4440_v57  ;;  %v4809_v32 = vadd.f32 %v4702_v42, %v4485_v1  ;;  %4753 = vrot.lane.b32.xlu0 %v4655_v52, %s5645_s12  ;;  %v5537_v4 = vld [vmem:[%s5736_s9 + $0x28] sm:$0xff] }
 0x51e   : > { %v4704_v17 = vpop.permute.xlu1 %4703  ;;  %v4487_v29 = vmul.f32 %v5537_v4, %v4451_v26  ;;  %v8045_v52 = vld [vmem:[#allocation63_spill] sm:$0xff] }
 0x51f   : > { %4846 = vst.msk [vmem:[%s7642_s6 - $0x1] sm:$0xfe] %vm4845_vm0, %v4809_v32  ;;  %v4810_v34 = vadd.f32 %v4704_v17, %v4486_v24  ;;  %4755 = vrot.lane.b32.xlu1 %v4656_v23, %s5645_s12  ;;  %v4457_v23 = vsub.f32 1.0, %v6639_v48  ;;  %v4458_v17 = vsub.f32 1.0, %v8046_v53  ;;  %v5553_v53 = vld [vmem:[%s5736_s9 + $0xa8] sm:$0xff] }
 0x520   : > { %v4706_v9 = vpop.permute.xlu0 %4705 }
 0x521   : > { %4847 = vst.msk [vmem:[%s7642_s6 + $0x7] sm:$0xff] %vm1287_vm10, %v4810_v34  ;;  %v4811_v41 = vadd.f32 %v4706_v9, %v4487_v29  ;;  %v8047_v29 = vld [vmem:[#allocation20_spill] sm:$0xff] }
 0x522   : > { %v4708_v8 = vpop.permute.xlu1 %4707  ;;  %v4459_v9 = vsub.f32 1.0, %v8047_v29  ;;  %v5554_v29 = vld [vmem:[%s5736_s9 + $0xb0] sm:$0xff] }
 0x523   : > { %4849 = vst.msk [vmem:[%s7642_s6 + $0xf] sm:$0x1] %vm4848_vm1, %v4811_v41  ;;  %v4812_v28 = vadd.f32 %v4708_v8, %v4488_v25  ;;  %v5544_v25 = vld [vmem:[%s5736_s9 + $0x60] sm:$0xff] }
 0x524   : > { %5110 = vst.msk [vmem:[%s7642_s6 + $0xd] sm:$0xf8] %vm4851_vm2, %v4811_v41  ;;  %v4494_v8 = vmul.f32 %v5544_v25, %v4458_v17 }
 0x525   : > { %5111 = vst.msk [vmem:[%s7642_s6 + $0x15] sm:$0xff] %vm1287_vm10, %v4812_v28  ;;  %v8048_v28 = vld [vmem:[#allocation21_spill] sm:$0xff] }
 0x550   : > { %v4366_v10 = vpop.permute.xlu0 %4365 }
 0x551   : > { %v4443_v49 = vadd.f32 %v4366_v10, %v8038_v38  ;;  %v4460_v10 = vsub.f32 1.0, %v8048_v28  ;;  %v5555_v28 = vld [vmem:[%s5736_s9 + $0xb8] sm:$0xff] }
 0x552   : > { %v4368_v30 = vpop.permute.xlu1 %4367 }
 0x553   : > { %v4659_v51 = vmul.f32 %v7518_v20, %v4443_v49  ;;  %v4444_v50 = vadd.f32 %v4368_v30, %v8039_v16  ;;  %v5545_v30 = vld [vmem:[%s5736_s9 + $0x68] sm:$0xff]  ;;  %v8049_v16 = vld [vmem:[#allocation24_spill] sm:$0xff] }
 0x554   : > { %v4362_v58 = vpop.permute.xlu0 %4361 }
 0x555   : > { %v4660_v62 = vmul.f32 %v7521_v56, %v4444_v50  ;;  %v4441_v0 = vadd.f32 %v4362_v58, %v8040_v36  ;;  %4761 = vrot.lane.b32.xlu0 %v4659_v51, %s5645_s12  ;;  %v4453_v56 = vsub.f32 1.0, %v6601_v61  ;;  %v4455_v61 = vsub.f32 1.0, %v6620_v19  ;;  %v5546_v36 = vld [vmem:[%s5736_s9 + $0x70] sm:$0xff] }
 0x556   : > { %v4364_v46 = vpop.permute.xlu1 %4363  ;;  %v4495_v51 = vmul.f32 %v5545_v30, %v4459_v9  ;;  %v4461_v50 = vsub.f32 1.0, %v8049_v16  ;;  %v5556_v16 = vld [vmem:[%s5736_s9 + $0xc0] sm:$0xff] }
 0x557   : > { %v4657_v5 = vmul.f32 %v7511_v44, %v4441_v0  ;;  %v4442_v33 = vadd.f32 %v4364_v46, %v8041_v27  ;;  %4763 = vrot.lane.b32.xlu1 %v4660_v62, %s5645_s12  ;;  %v4489_v22 = vmul.f32 %v5539_v15, %v4453_v56  ;;  %v4496_v0 = vmul.f32 %v5546_v36, %v4460_v10  ;;  %v8050_v46 = vld [vmem:[#allocation25_spill] sm:$0xff] }
 0x558   : > { %v4374_v7 = vpop.permute.xlu0 %4373 }
 0x559   : > { %v4658_v20 = vmul.f32 %v7515_v59, %v4442_v33  ;;  %4757 = vrot.lane.b32.xlu0 %v4657_v5, %s5645_s12  ;;  %v4447_v40 = vadd.f32 %v4374_v7, %v8043_v13  ;;  %v4462_v5 = vsub.f32 1.0, %v8050_v46  ;;  %v5547_v7 = vld [vmem:[%s5736_s9 + $0x78] sm:$0xff]  ;;  %v5557_v46 = vld [vmem:[%s5736_s9 + $0xc8] sm:$0xff] }
 0x55a   : > { %v4376_v63 = vpop.permute.xlu1 %4375 }
 0x55b   : > { %4759 = vrot.lane.b32.xlu1 %v4658_v20, %s5645_s12  ;;  %v4448_v55 = vadd.f32 %v4376_v63, %v8045_v52  ;;  %v4663_v19 = vmul.f32 %v7533_v37, %v4447_v40  ;;  %v4497_v20 = vmul.f32 %v5547_v7, %v4461_v50  ;;  %v8051_v63 = vld [vmem:[#allocation28_spill] sm:$0xff]  ;;  %v5549_v40 = vld [vmem:[%s5736_s9 + $0x88] sm:$0xff]  ;;  %v8054_v52 = vld [vmem:[#allocation33_spill] sm:$0xff] }
 0x55c   : > { %v4370_v35 = vpop.permute.xlu0 %4369  ;;  %v4463_v56 = vsub.f32 1.0, %v8051_v63  ;;  %v5558_v63 = vld [vmem:[%s5736_s9 + $0xd0] sm:$0xff] }
 0x55d   : > { %v4445_v44 = vadd.f32 %v4370_v35, %v8042_v54  ;;  %v4664_v32 = vmul.f32 %v7536_v6, %v4448_v55  ;;  %v5543_v6 = vld [vmem:[%s5736_s9 + $0x58] sm:$0xff]  ;;  %v5548_v54 = vld [vmem:[%s5736_s9 + $0x80] sm:$0xff]  ;;  %v4466_v55 = vsub.f32 1.0, %v8054_v52  ;;  %v5561_v52 = vld [vmem:[%s5736_s9 + $0xe8] sm:$0xff] }
 0x55e   : > { %v4372_v14 = vpop.permute.xlu1 %4371  ;;  %v4493_v4 = vmul.f32 %v5543_v6, %v4457_v23  ;;  %v5552_v23 = vld [vmem:[%s5736_s9 + $0xa0] sm:$0xff] }
 0x55f   : > { %v4661_v59 = vmul.f32 %v7526_v12, %v4445_v44  ;;  %v4446_v39 = vadd.f32 %v4372_v14, %v8044_v45  ;;  %v4456_v12 = vsub.f32 1.0, %v6624_v21  ;;  %v4498_v44 = vmul.f32 %v5548_v54, %v4462_v5  ;;  %v8052_v14 = vld [vmem:[#allocation29_spill] sm:$0xff]  ;;  %v8053_v45 = vld [vmem:[#allocation32_spill] sm:$0xff] }
 0x560   : > { %v4710_v43 = vpop.permute.xlu0 %4709  ;;  %v4464_v15 = vsub.f32 1.0, %v8052_v14  ;;  %v5559_v14 = vld [vmem:[%s5736_s9 + $0xd8] sm:$0xff] }
 0x561   : > { %v4662_v57 = vmul.f32 %v7528_v11, %v4446_v39  ;;  %v4813_v3 = vadd.f32 %v4710_v43, %v4489_v22  ;;  %4765 = vrot.lane.b32.xlu0 %v4661_v59, %s5645_s12  ;;  %v5541_v11 = vld [vmem:[%s5736_s9 + $0x48] sm:$0xff]  ;;  %v4492_v24 = vmul.f32 %v5542_v31, %v4456_v12  ;;  %v4499_v59 = vmul.f32 %v5549_v40, %v4463_v56  ;;  %v5551_v12 = vld [vmem:[%s5736_s9 + $0x98] sm:$0xff]  ;;  %v5560_v40 = vld [vmem:[%s5736_s9 + $0xe0] sm:$0xff] }
 0x562   : > { %v4712_v1 = vpop.permute.xlu1 %4711  ;;  %v4491_v42 = vmul.f32 %v5541_v11, %v4455_v61  ;;  %v4465_v39 = vsub.f32 1.0, %v8053_v45 }
 0x563   : > { %5112 = vst.msk [vmem:[%s7642_s6 + $0x1d] sm:$0x7] %vm4854_vm3, %v4813_v3  ;;  %v4814_v26 = vadd.f32 %v4712_v1, %v4490_v18  ;;  %4767 = vrot.lane.b32.xlu1 %v4662_v57, %s5645_s12  ;;  %v4500_v18 = vmul.f32 %v5550_v2, %v4464_v15  ;;  %v8064_v2 = vld [vmem:[#allocation53_spill] sm:$0xff] }
 0x564   : > { %5113 = vst.msk [vmem:[%s7642_s6 + $0x1b] sm:$0xe0] %vm4857_vm4, %v4813_v3  ;;  %v4714_v21 = vpop.permute.xlu0 %4713  ;;  %v4501_v1 = vmul.f32 %v5551_v12, %v4465_v39  ;;  %v8063_v39 = vld [vmem:[#allocation52_spill] sm:$0xff] }
 0x565   : > { %5114 = vst.msk [vmem:[%s7642_s6 + $0x23] sm:$0xff] %vm1287_vm10, %v4814_v26  ;;  %v4815_v37 = vadd.f32 %v4714_v21, %v4491_v42  ;;  %4769 = vrot.lane.b32.xlu0 %v4663_v19, %s5645_s12  ;;  %v8055_v19 = vld [vmem:[#allocation36_spill] sm:$0xff]  ;;  %v4502_v21 = vmul.f32 %v5552_v23, %v4466_v55  ;;  %v8066_v23 = vld [vmem:[#allocation61_spill] sm:$0xff] }
 0x566   : > { %v4716_v34 = vpop.permute.xlu1 %4715  ;;  %v4467_v26 = vsub.f32 1.0, %v8055_v19  ;;  %v5562_v12 = vld [vmem:[%s5736_s9 + $0xf0] sm:$0xff] }
 0x567   : > { %5115 = vst.msk [vmem:[%s7642_s6 + $0x2b] sm:$0x1f] %vm4860_vm5, %v4815_v37  ;;  %v4816_v48 = vadd.f32 %v4716_v34, %v4492_v24  ;;  %4771 = vrot.lane.b32.xlu1 %v4664_v32, %s5645_s12  ;;  %v8056_v32 = vld [vmem:[#allocation37_spill] sm:$0xff]  ;;  %v8057_v34 = vld [vmem:[#allocation40_spill] sm:$0xff]  ;;  %s5160_s12 = sshll.u32 %s5696_s19, 12  ;;  %s7842_s19 = scalar_lea.sflag [#allocation6], %s188_s11 }
 0x568   : > { %5116 = vst.msk [vmem:[%s7642_s6 + $0x29] sm:$0x80] %vm4863_vm6, %v4815_v37  ;;  %v4718_v41 = vpop.permute.xlu0 %4717  ;;  %v4468_v37 = vsub.f32 1.0, %v8056_v32  ;;  %v4503_v17 = vmul.f32 %v5553_v53, %v4467_v26  ;;  %v5563_v32 = vld [vmem:[%s5736_s9 + $0x108] sm:$0xff]  ;;  %s7832_s13 = scalar_lea.hbm %s7887_s4, %s5160_s12 }
 0x569   : > { %5117 = vst.msk [vmem:[%s7642_s6 + $0x31] sm:$0xff] %vm1287_vm10, %v4816_v48  ;;  %v4817_v60 = vadd.f32 %v4718_v41, %v4493_v4  ;;  %v4469_v48 = vsub.f32 1.0, %v8057_v34  ;;  %v8058_v41 = vld [vmem:[#allocation41_spill] sm:$0xff]  ;;  %v5564_v34 = vld [vmem:[%s5736_s9 + $0x110] sm:$0xff] }
 0x56a   : > { %v4720_v38 = vpop.permute.xlu1 %4719  ;;  %v4504_v9 = vmul.f32 %v5554_v29, %v4468_v37 }
 0x56b   : > { %5118 = vst.msk [vmem:[%s7642_s6 + $0x39] sm:$0x7f] %vm4866_vm7, %v4817_v60  ;;  %v4818_v49 = vadd.f32 %v4720_v38, %v4494_v8  ;;  %v4470_v60 = vsub.f32 1.0, %v8058_v41  ;;  %v4505_v10 = vmul.f32 %v5555_v28, %v4469_v48  ;;  %v8059_v38 = vld [vmem:[#allocation44_spill] sm:$0xff]  ;;  %v5565_v41 = vld [vmem:[%s5736_s9 + $0xf8] sm:$0xff]  ;;  %v5566_v28 = vld [vmem:[%s5736_s9 + $0x100] sm:$0xff] }
 0x56c   : > { %v4722_v58 = vpop.permute.xlu0 %4721 }
 0x56d   : > { %5119 = vst.msk [vmem:[%s7642_s6 + $0x3f] sm:$0xfe] %vm4845_vm0, %v4818_v49  ;;  %v4819_v62 = vadd.f32 %v4722_v58, %v4495_v51  ;;  %v4471_v49 = vsub.f32 1.0, %v8059_v38  ;;  %v4506_v50 = vmul.f32 %v5556_v16, %v4470_v60  ;;  %v8060_v58 = vld [vmem:[#allocation45_spill] sm:$0xff] }
 0x56e   : > { %v4724_v27 = vpop.permute.xlu1 %4723  ;;  %v8070_v16 = vld [vmem:[#allocation65_spill] sm:$0xff] }
 0x56f   : > { %5120 = vst.msk [vmem:[%s7642_s6 + $0x47] sm:$0xff] %vm1287_vm10, %v4819_v62  ;;  %v4820_v33 = vadd.f32 %v4724_v27, %v4496_v0  ;;  %v4472_v62 = vsub.f32 1.0, %v8060_v58  ;;  %v4507_v5 = vmul.f32 %v5557_v46, %v4471_v49  ;;  %v8061_v27 = vld [vmem:[#allocation48_spill] sm:$0xff]  ;;  %v5567_v58 = vld [vmem:[%s5736_s9 + $0x118] sm:$0xff] }
 0x570   : > { %v4726_v35 = vpop.permute.xlu0 %4725 }
 0x571   : > { %5121 = vst.msk [vmem:[%s7642_s6 + $0x4f] sm:$0x1] %vm4848_vm1, %v4820_v33  ;;  %v4821_v47 = vadd.f32 %v4726_v35, %v4497_v20  ;;  %v4508_v56 = vmul.f32 %v5558_v63, %v4472_v62  ;;  %v8062_v35 = vld [vmem:[#allocation49_spill] sm:$0xff] }
 0x572   : > { %5122 = vst.msk [vmem:[%s7642_s6 + $0x4d] sm:$0xf8] %vm4851_vm2, %v4820_v33  ;;  %v4728_v22 = vpop.permute.xlu1 %4727  ;;  %v4473_v33 = vsub.f32 1.0, %v8061_v27  ;;  %v5568_v27 = vld [vmem:[%s5736_s9 + $0x120] sm:$0xff] }
 0x573   : > { %5123 = vst.msk [vmem:[%s7642_s6 + $0x55] sm:$0xff] %vm1287_vm10, %v4821_v47  ;;  %v4822_v13 = vadd.f32 %v4728_v22, %v4498_v44  ;;  %v4474_v47 = vsub.f32 1.0, %v8062_v35  ;;  %v5569_v35 = vld [vmem:[%s5736_s9 + $0x128] sm:$0xff] }
 0x574   : > { %v4730_v61 = vpop.permute.xlu0 %4729  ;;  %v4509_v15 = vmul.f32 %v5559_v14, %v4473_v33  ;;  %v5570_v14 = vld [vmem:[%s5736_s9 + $0x130] sm:$0xff]  ;;  %s5571_s9 = scalar_lea.vmem %s7834_s7, 4096 }
 0x575   : > { %5124 = vst.msk [vmem:[%s7642_s6 + $0x5d] sm:$0x7] %vm4854_vm3, %v4822_v13  ;;  %v4823_v43 = vadd.f32 %v4730_v61, %v4499_v59  ;;  %v4510_v59 = vmul.f32 %v5560_v40, %v4474_v47  ;;  %v4475_v61 = vsub.f32 1.0, %v8063_v39  ;;  %p5572_p11 = scmp.ne.s32.totalorder %s7834_s7, %s5571_s9  ;;  %p5579_p1 = scmp.lt.s32.totalorder %s5577_s27, %s5571_s9 }
 0x576   : > { %5125 = vst.msk [vmem:[%s7642_s6 + $0x5b] sm:$0xe0] %vm4857_vm4, %v4822_v13  ;;  %v4732_v57 = vpop.permute.xlu1 %4731 }
 0x577   : > { %5126 = vst.msk [vmem:[%s7642_s6 + $0x63] sm:$0xff] %vm1287_vm10, %v4823_v43  ;;  %v4824_v3 = vadd.f32 %v4732_v57, %v4500_v18  ;;  %v4476_v18 = vsub.f32 1.0, %v8064_v2  ;;  %v4511_v55 = vmul.f32 %v5561_v52, %v4475_v61  ;;  %p5573_p12 = pnand %p5572_p11, %p5713_p5  ;;  %p5580_p2 = por %p5579_p1, %p5578_p0 }
 0x578   : > { %v4734_v11 = vpop.permute.xlu0 %4733 }
 0x579   : > { %5127 = vst.msk [vmem:[%s7642_s6 + $0x6b] sm:$0x1f] %vm4860_vm5, %v4824_v3  ;;  %v4825_v42 = vadd.f32 %v4734_v11, %v4501_v1  ;;  %v4512_v1 = vmul.f32 %v5562_v12, %v4476_v18  ;;  %v8065_v11 = vld [vmem:[#allocation60_spill] sm:$0xff]  ;;  %p5574_p13 = pneg %p5573_p12 }
 0x57a   : > { %5128 = vst.msk [vmem:[%s7642_s6 + $0x69] sm:$0x80] %vm4863_vm6, %v4824_v3  ;;  %v4736_v31 = vpop.permute.xlu1 %4735 }
 0x57b   : > { %5129 = vst.msk [vmem:[%s7642_s6 + $0x71] sm:$0xff] %vm1287_vm10, %v4825_v42  ;;  %v4826_v24 = vadd.f32 %v4736_v31, %v4502_v21  ;;  %v4479_v42 = vsub.f32 1.0, %v8065_v11  ;;  %v4480_v21 = vsub.f32 1.0, %v8066_v23  ;;  %v8067_v31 = vld [vmem:[#allocation56_spill] sm:$0xff]  ;;  %p5581_p3 = pnand %p5580_p2, %p5574_p13 }
 0x57c   : > { %v4738_v6 = vpop.permute.xlu0 %4737 }
 0x57d   : > { %5130 = vst.msk [vmem:[%s7642_s6 + $0x79] sm:$0x7f] %vm4866_vm7, %v4826_v24  ;;  %v4827_v4 = vadd.f32 %v4738_v6, %v4503_v17  ;;  %v4515_v37 = vmul.f32 %v5563_v32, %v4479_v42  ;;  %v4477_v24 = vsub.f32 1.0, %v8067_v31  ;;  %v4516_v48 = vmul.f32 %v5564_v34, %v4480_v21  ;;  %v8068_v6 = vld [vmem:[#allocation57_spill] sm:$0xff] }
 0x57e   : > { %v4740_v25 = vpop.permute.xlu1 %4739 }
 0x57f   : > { %5131 = vst.msk [vmem:[%s7642_s6 + $0x7f] sm:$0xfe] %vm4845_vm0, %v4827_v4  ;;  %v4828_v8 = vadd.f32 %v4740_v25, %v4504_v9  ;;  %v4478_v4 = vsub.f32 1.0, %v8068_v6  ;;  %v4513_v60 = vmul.f32 %v5565_v41, %v4477_v24 }
 0x580   : > { %v4742_v30 = vpop.permute.xlu0 %4741 }
 0x581   : > { %5132 = vst.msk [vmem:[%s7642_s6 + $0x87] sm:$0xff] %vm1287_vm10, %v4828_v8  ;;  %v4829_v51 = vadd.f32 %v4742_v30, %v4505_v10  ;;  %v4514_v10 = vmul.f32 %v5566_v28, %v4478_v4  ;;  %v8069_v30 = vld [vmem:[#allocation64_spill] sm:$0xff] }
 0x582   : > { %v4744_v36 = vpop.permute.xlu1 %4743 }
 0x583   : > { %5133 = vst.msk [vmem:[%s7642_s6 + $0x8f] sm:$0x1] %vm4848_vm1, %v4829_v51  ;;  %v4830_v0 = vadd.f32 %v4744_v36, %v4506_v50  ;;  %v4482_v50 = vsub.f32 1.0, %v8070_v16  ;;  %v8071_v36 = vld [vmem:[#allocation66_spill] sm:$0xff] }
 0x584   : > { %5134 = vst.msk [vmem:[%s7642_s6 + $0x8d] sm:$0xf8] %vm4851_vm2, %v4829_v51  ;;  %v4746_v7 = vpop.permute.xlu0 %4745  ;;  %v4481_v51 = vsub.f32 1.0, %v8069_v30 }
 0x585   : > { %5135 = vst.msk [vmem:[%s7642_s6 + $0x95] sm:$0xff] %vm1287_vm10, %v4830_v0  ;;  %v4831_v20 = vadd.f32 %v4746_v7, %v4507_v5  ;;  %v4483_v0 = vsub.f32 1.0, %v8071_v36  ;;  %v4518_v33 = vmul.f32 %v5568_v27, %v4482_v50  ;;  %v8072_v7 = vld [vmem:[#allocation67_spill] sm:$0xff] }
 0x586   : > { %v4748_v54 = vpop.permute.xlu1 %4747  ;;  %v4517_v62 = vmul.f32 %v5567_v58, %v4481_v51 }
 0x587   : > { %5136 = vst.msk [vmem:[%s7642_s6 + $0x9d] sm:$0x7] %vm4854_vm3, %v4831_v20  ;;  %v4832_v44 = vadd.f32 %v4748_v54, %v4508_v56  ;;  %v4519_v47 = vmul.f32 %v5569_v35, %v4483_v0 }
 0x588   : > { %5137 = vst.msk [vmem:[%s7642_s6 + $0x9b] sm:$0xe0] %vm4857_vm4, %v4831_v20  ;;  %v4750_v22 = vpop.permute.xlu0 %4749  ;;  %v4484_v20 = vsub.f32 1.0, %v8072_v7 }
 0x589   : > { %5138 = vst.msk [vmem:[%s7642_s6 + $0xa3] sm:$0xff] %vm1287_vm10, %v4832_v44  ;;  %v4833_v13 = vadd.f32 %v4750_v22, %v4509_v15 }
 0x58a   : > { %v4752_v45 = vpop.permute.xlu1 %4751  ;;  %v4520_v15 = vmul.f32 %v5570_v14, %v4484_v20 }
 0x58b   : > { %5139 = vst.msk [vmem:[%s7642_s6 + $0xab] sm:$0x1f] %vm4860_vm5, %v4833_v13  ;;  %v4834_v43 = vadd.f32 %v4752_v45, %v4510_v59 }
 0x58c   : > { %5140 = vst.msk [vmem:[%s7642_s6 + $0xa9] sm:$0x80] %vm4863_vm6, %v4833_v13 }
 0x58d   : > { %5141 = vst.msk [vmem:[%s7642_s6 + $0xb1] sm:$0xff] %vm1287_vm10, %v4834_v43 }
 0x58f   : > { %v4754_v57 = vpop.permute.xlu0 %4753 }
 0x590   : > { %v4835_v3 = vadd.f32 %v4754_v57, %v4511_v55 }
 0x591   : > { %v4756_v19 = vpop.permute.xlu1 %4755 }
 0x592   : > { %5142 = vst.msk [vmem:[%s7642_s6 + $0xb9] sm:$0x7f] %vm4866_vm7, %v4835_v3  ;;  %v4836_v26 = vadd.f32 %v4756_v19, %v4512_v1 }
 0x594   : > { %5143 = vst.msk [vmem:[%s7642_s6 + $0xbf] sm:$0xfe] %vm4845_vm0, %v4836_v26 }
 0x5c7   : > { %v4762_v53 = vpop.permute.xlu0 %4761 }
 0x5c8   : > { %v4839_v17 = vadd.f32 %v4762_v53, %v4515_v37 }
 0x5c9   : > { %v4764_v29 = vpop.permute.xlu1 %4763 }
 0x5ca   : > { %5147 = vst.msk [vmem:[%s7642_s6 + $0xd5] sm:$0xff] %vm1287_vm10, %v4839_v17  ;;  %v4840_v9 = vadd.f32 %v4764_v29, %v4516_v48 }
 0x5cb   : > { %v4758_v25 = vpop.permute.xlu0 %4757 }
 0x5cc   : > { %5148 = vst.msk [vmem:[%s7642_s6 + $0xdd] sm:$0x7] %vm4854_vm3, %v4840_v9  ;;  %v4837_v8 = vadd.f32 %v4758_v25, %v4513_v60 }
 0x5cd   : > { %5149 = vst.msk [vmem:[%s7642_s6 + $0xdb] sm:$0xe0] %vm4857_vm4, %v4840_v9  ;;  %v4760_v38 = vpop.permute.xlu1 %4759 }
 0x5ce   : > { %5144 = vst.msk [vmem:[%s7642_s6 + $0xc7] sm:$0xff] %vm1287_vm10, %v4837_v8  ;;  %v4838_v49 = vadd.f32 %v4760_v38, %v4514_v10 }
 0x5d0   : > { %5145 = vst.msk [vmem:[%s7642_s6 + $0xcf] sm:$0x1] %vm4848_vm1, %v4838_v49 }
 0x5d1   : > { %5146 = vst.msk [vmem:[%s7642_s6 + $0xcd] sm:$0xf8] %vm4851_vm2, %v4838_v49 }
 0x5d3   : > { %v4766_v46 = vpop.permute.xlu0 %4765 }
 0x5d4   : > { %v4841_v5 = vadd.f32 %v4766_v46, %v4517_v62 }
 0x5d5   : > { %v4768_v63 = vpop.permute.xlu1 %4767 }
 0x5d6   : > { %5150 = vst.msk [vmem:[%s7642_s6 + $0xe3] sm:$0xff] %vm1287_vm10, %v4841_v5  ;;  %v4842_v56 = vadd.f32 %v4768_v63, %v4518_v33 }
 0x5d7   : > { %v4770_v54 = vpop.permute.xlu0 %4769 }
 0x5d8   : > { %5151 = vst.msk [vmem:[%s7642_s6 + $0xeb] sm:$0x1f] %vm4860_vm5, %v4842_v56  ;;  %v4843_v44 = vadd.f32 %v4770_v54, %v4519_v47 }
 0x5d9   : > { %5152 = vst.msk [vmem:[%s7642_s6 + $0xe9] sm:$0x80] %vm4863_vm6, %v4842_v56  ;;  %v4772_v22 = vpop.permute.xlu1 %4771 }
 0x5da   : > { %5153 = vst.msk [vmem:[%s7642_s6 + $0xf1] sm:$0xff] %vm1287_vm10, %v4843_v44  ;;  %v4844_v13 = vadd.f32 %v4772_v22, %v4520_v15 }
 0x5dc   : > { %5154 = vst.msk [vmem:[%s7642_s6 + $0xf9] sm:$0x7f] %vm4866_vm7, %v4844_v13 }
 0x5dd   : > { %5584 = shalt.err (!%p5581_p3)
}
 0x5de   : > { %s5585_s20 = scalar_lea.hbm %s7832_s13, 4096  ;;  %s5589_s30 = scalar_lea.hbm %s7887_s4, 8192 }
 0x5df   : > { %p5586_p4 = scmp.ne.s32.totalorder %s7832_s13, %s5585_s20  ;;  %p5590_p9 = scmp.lt.u32.totalorder %s7832_s13, %s7887_s4 }
 0x5e0   : > { %p5591_p10 = scmp.lt.u32.totalorder %s5589_s30, %s5585_s20  ;;  %p5593_p12 = scmp.lt.u32.totalorder %s5585_s20, %s7832_s13 }
 0x5e1   : > { %p5587_p7 = pnand %p5586_p4, %p5713_p5 }
 0x5e2   : > { %p5592_p11 = por %p5591_p10, %p5590_p9 }
 0x5e3   : > { %p5588_p8 = pneg %p5587_p7 }
 0x5e4   : > { %p5594_p13 = por %p5593_p12, %p5592_p11 }
 0x5e6   : > { %p5595_p0 = pnand %p5594_p13, %p5588_p8 }
 0x5e8   : > { %5598 = shalt.err (!%p5595_p0)
}
 0x5e9   : > { %s5648_s28 = smov 128   ;;  %s5649_s6 = smov 8  }
 0x5ea   : > { %5296 = dma.vmem_to_hbm [thread:$0]  (%p5713_p5), %s7834_s7, 4096, %s7832_s13, %s7842_s19, %s5648_s28, %s5648_s28, %s5649_s6  }
 0x5eb PF: > { %p5302_p1 = scmp.ge.s32.totalorder %s5633_s18, 2  ;;  %s4945_s12 = sand.u32 1, %s5621_s15  }
 0x5ec   : > { %s4946_s8 = scalar_lea.sflag [#allocation6], %s4945_s12 }
 0x5ed   : > { %p5299_p2 = pnand %p5302_p1, %p5717_p6 }
 0x5ef   : > { %5616 = dma.done.wait (!%p5299_p2), %s4946_s8, 4096  }
 0x5f0   : > { %5618 = vsyncadd (!%p5299_p2), %s4946_s8, 4294963200  ;;  %p14_p3 = scmp.ge.s32.totalorder %s5700_s21, 4   ;;  %s8073_s15 = smov %s5625_s16 }
 0x5f1   : > { %s8074_s16 = smov %s5629_s17  ;;  %s8075_s17 = smov %s5711_s24 }
 0x5f2   : > { %s8076_s18 = smov %s5700_s21  ;;  %16 = sbr.rel (!%p14_p3) target bundleno = 3 (0x3), region = 86 }
 0x5f9   :  { %4951 = vsyncpa [#allocation6], 1 }
 0x5fa   :  { %4953 = vsyncpa [#allocation6 + $0x1], 1 }

</bundles_post_ra>
